<compile_context>
chip_gen: v5e
topology: v5e:2x2
jax: 0.10.0
libtpu: 0.0.40
codegen_flags: <defaults>
</compile_context>

<pallas_src>
import functools

import numpy as np
import jax
import jax.numpy as jnp
from jax import lax
from jax.experimental import pallas as pl
from jax.experimental.pallas import tpu as pltpu

BN_EPS = 1e-5

_VMEM_SPEC = pl.BlockSpec(memory_space=pltpu.MemorySpace.VMEM)


# ---------------------------------------------------------------------------
# Combined Sobel tap set (exact fold of the 8 fixed depthwise filters).
# ---------------------------------------------------------------------------
def _combined_sobel_kernel():
    k3 = [
        [[2, 4, 2], [0, 0, 0], [-2, -4, -2]],
        [[4, 2, 0], [2, 0, -2], [0, -2, -4]],
        [[2, 0, -2], [4, 0, -4], [2, 0, -2]],
        [[0, -2, -4], [2, 0, -2], [4, 2, 0]],
    ]
    k5 = [
        [[0, 0, 0, 0, 0], [0, -2, -4, -2, 0], [-1, -4, 0, 4, 1],
         [0, 2, 4, 2, 0], [0, 0, 0, 0, 0]],
        [[0, 0, -1, 0, 0], [0, -2, -4, 2, 0], [0, -4, 0, 4, 0],
         [0, -2, 4, 2, 0], [0, 0, 1, 0, 0]],
        [[0, 0, 1, 0, 0], [0, -2, 4, 2, 0], [0, -4, 0, 4, 0],
         [0, -2, -4, 2, 0], [0, 0, -1, 0, 0]],
        [[0, 0, 0, 0, 0], [0, 2, 4, 2, 0], [-1, -4, 0, 4, 1],
         [0, -2, -4, -2, 0], [0, 0, 0, 0, 0]],
    ]
    comb = np.zeros((5, 5), np.float32)
    for k in k3:
        comb[1:4, 1:4] += np.asarray(k, np.float32)   # 3x3/pad-1 == centred 5x5/pad-2
    for k in k5:
        comb += np.asarray(k, np.float32)
    return comb


# ---------------------------------------------------------------------------
# Kernel builder (all shapes / tap shifts are static and closed over).
# ---------------------------------------------------------------------------
def _make_kernel(H, W, L, c_in, c_full, half, lpad, sob_taps):

    def bn_relu(acc, gb_ref):
        # Training-mode BatchNorm2d + ReLU on a (Cout, L) slab.
        # Per-channel stats over the L = N*H*W lane axis; two-pass variance.
        inv_n = 1.0 / float(L)
        mean = jnp.sum(acc, axis=1, keepdims=True) * inv_n
        cen = acc - mean
        var = jnp.sum(cen * cen, axis=1, keepdims=True) * inv_n
        scale = gb_ref[:, 0:1] * lax.rsqrt(var + BN_EPS)   # gamma * rsqrt(var+eps)
        return jnp.maximum(cen * scale + gb_ref[:, 1:2], 0.0)

    def conv3x3_bn_relu(pf_ref, patch_ref, x, cin, m3_ref, w_ref, gb_ref):
        # 3x3 "same" conv as ONE matmul: build the (9*cin, L) patch matrix from
        # shifted, zero-pad-masked slabs, then (Cout, 9*cin) @ (9*cin, L).
        pf_ref[0:cin, lpad:lpad + L] = x              # halo columns stay zero
        for t in range(9):
            dy, dx = divmod(t, 3)
            s = (dy - 1) * W + (dx - 1)               # flat spatial shift
            shifted = pf_ref[0:cin, lpad + s:lpad + s + L]
            if s == 0:                                # centre tap: mask is all-ones
                patch_ref[t * cin:(t + 1) * cin, :] = shifted
            else:
                patch_ref[t * cin:(t + 1) * cin, :] = m3_ref[t:t + 1, :] * shifted
        acc = jnp.dot(w_ref[...], patch_ref[0:9 * cin, :],
                      preferred_element_type=jnp.float32)
        return bn_relu(acc, gb_ref)

    def sobel(pf_ref, x, sob_ref):
        # Combined depthwise 5x5 edge filter; per-tap (coef * validity) rows are
        # precomputed host-side, so each tap is one shifted-slab FMA.
        c = x.shape[0]
        pf_ref[0:c, lpad:lpad + L] = x
        acc = jnp.zeros_like(x)
        for r, s in sob_taps:
            acc = acc + sob_ref[r:r + 1, :] * pf_ref[0:c, lpad + s:lpad + s + L]
        return acc

    def kernel(x_ref, w1_ref, gb1_ref, w2_ref, gb2_ref, w3_ref, gb3_ref,
               w4_ref, gb4_ref, m3_ref, sob_ref, out_ref, pf_ref, patch_ref):
        # Zero the shared padded-flat scratch ONCE; only the halo needs to stay
        # zero, interiors are overwritten by every stage that uses it.
        pf_ref[...] = jnp.zeros(pf_ref.shape, pf_ref.dtype)
        x = x_ref[...]                                # (c_in, L)

        # conv4: independent 3x3 branch on the raw input -> first half of out.
        c4 = conv3x3_bn_relu(pf_ref, patch_ref, x, c_in, m3_ref, w4_ref, gb4_ref)
        out_ref[0:half, :] = c4

        # conv1 (1x1) -> conv2 (3x3) -> sobel -> conv3 (3x3) -> second half.
        c1 = bn_relu(jnp.dot(w1_ref[...], x, preferred_element_type=jnp.float32),
                     gb1_ref)
        c2 = conv3x3_bn_relu(pf_ref, patch_ref, c1, c_full, m3_ref, w2_ref, gb2_ref)
        edge = sobel(pf_ref, c2, sob_ref)
        c3 = conv3x3_bn_relu(pf_ref, patch_ref, edge, half, m3_ref, w3_ref, gb3_ref)
        out_ref[half:2 * half, :] = c3

    return kernel


# ---------------------------------------------------------------------------
# Parameters (deterministic synthetic init; BN gamma=1 / beta=0 as in PyTorch).
# ---------------------------------------------------------------------------
def init_params(key, in_channels, out_channels):
    """Conv weights are stored "patch-major": (Cout, ks*ks*Cin), column index
    (dy*ks + dx)*Cin + ci, matching the in-kernel patch-matrix layout.
    Conv biases are omitted: a per-channel constant is cancelled exactly by the
    training-mode BatchNorm mean subtraction that follows every conv."""
    half = out_channels // 2

    def conv(k, cin, cout, ks):
        w = jax.random.normal(k, (cout, cin, ks, ks), jnp.float32) * 0.1
        w2d = jnp.transpose(w, (0, 2, 3, 1)).reshape(cout, ks * ks * cin)
        gb = jnp.stack([jnp.ones((cout,), jnp.float32),      # BN gamma
                        jnp.zeros((cout,), jnp.float32)],    # BN beta
                       axis=1)                                # (Cout, 2)
        return dict(w=w2d, gb=gb, ks=ks, cin=cin)

    k1, k2, k3, k4 = jax.random.split(key, 4)
    return dict(conv1=conv(k1, in_channels, out_channels, 1),
                conv2=conv(k2, out_channels, half, 3),
                conv3=conv(k3, half, half, 3),
                conv4=conv(k4, in_channels, half, 3))


# ---------------------------------------------------------------------------
# Forward pass (mirrors Edge_aware_unit.forward) — one pallas_call total.
# ---------------------------------------------------------------------------
def edge_aware_unit_forward(params, x_nchw):
    N, c_in, H, W = x_nchw.shape
    L = N * H * W
    c_full = params["conv1"]["w"].shape[0]
    half = params["conv3"]["w"].shape[0]
    lpad = max(128, 2 * W + 2)      # halo >= max |flat shift|; 128 keeps the
                                    # interior store lane-aligned

    # ---- host-side (trace-time) constants: zero-padding validity masks ----
    idx = np.arange(L)
    hh = (idx // W) % H
    ww = idx % W

    def valid(oy, ox):
        return (((hh + oy) >= 0) & ((hh + oy) < H) &
                ((ww + ox) >= 0) & ((ww + ox) < W)).astype(np.float32)

    m3 = np.stack([valid(dy - 1, dx - 1)
                   for dy in range(3) for dx in range(3)], axis=0)       # (9, L)

    comb = _combined_sobel_kernel()
    sob_rows, sob_taps = [], []
    for dy in range(5):
        for dx in range(5):
            coef = float(comb[dy, dx])
            if coef == 0.0:
                continue
            oy, ox = dy - 2, dx - 2
            sob_taps.append((len(sob_rows), oy * W + ox))
            sob_rows.append(coef * valid(oy, ox))
    sob = np.stack(sob_rows, axis=0).astype(np.float32)                  # (8, L)

    # ---- lane-dense input layout: (channels, N*H*W) ----
    x_flat = jnp.transpose(x_nchw.astype(jnp.float32), (1, 0, 2, 3)).reshape(c_in, L)

    max_c = max(c_in, c_full, half)
    kernel = _make_kernel(H, W, L, c_in, c_full, half, lpad, sob_taps)

    args = (x_flat,
            params["conv1"]["w"], params["conv1"]["gb"],
            params["conv2"]["w"], params["conv2"]["gb"],
            params["conv3"]["w"], params["conv3"]["gb"],
            params["conv4"]["w"], params["conv4"]["gb"],
            jnp.asarray(m3), jnp.asarray(sob))

    out = pl.pallas_call(
        kernel,
        out_shape=jax.ShapeDtypeStruct((2 * half, L), jnp.float32),
        in_specs=[_VMEM_SPEC] * len(args),
        out_specs=_VMEM_SPEC,
        scratch_shapes=[
            pltpu.VMEM((max_c, lpad + L + lpad), jnp.float32),  # shared padded-flat buf
            pltpu.VMEM((9 * max_c, L), jnp.float32),            # conv patch matrix
        ],
    )(*args)

    # rows = [conv4 (half), conv3 (half)]  (== torch.cat([input_f, conv3], 1)),
    # cols = n*H*W + h*W + w  ->  fold back to NCHW.
    return out.reshape(2 * half, N, H, W).transpose(1, 0, 2, 3)


# ---------------------------------------------------------------------------
# Pure-XLA reference (same training-mode BN math) for a sanity check.
# ---------------------------------------------------------------------------
def _reference_forward(params, x_nchw):
    def conv_bn_relu(x, p):
        w2d, gb = p["w"], p["gb"]
        cout, cin, ks = w2d.shape[0], p["cin"], p["ks"]
        w = w2d.reshape(cout, ks, ks, cin).transpose(0, 3, 1, 2)        # OIHW
        pad = (ks - 1) // 2
        y = lax.conv_general_dilated(x, w, (1, 1), [(pad, pad), (pad, pad)],
                                     dimension_numbers=("NCHW", "OIHW", "NCHW"))
        mean = jnp.mean(y, axis=(0, 2, 3), keepdims=True)
        var = jnp.mean((y - mean) ** 2, axis=(0, 2, 3), keepdims=True)
        g = gb[:, 0].reshape(1, -1, 1, 1)
        b = gb[:, 1].reshape(1, -1, 1, 1)
        return jnp.maximum((y - mean) * g * lax.rsqrt(var + BN_EPS) + b, 0.0)

    def sobel(x):
        c = x.shape[1]
        k = jnp.asarray(_combined_sobel_kernel()).reshape(1, 1, 5, 5)
        k = jnp.tile(k, (c, 1, 1, 1))
        return lax.conv_general_dilated(x, k, (1, 1), [(2, 2), (2, 2)],
                                        dimension_numbers=("NCHW", "OIHW", "NCHW"),
                                        feature_group_count=c)

    x = x_nchw.astype(jnp.float32)
    c1 = conv_bn_relu(x, params["conv1"])
    c2 = conv_bn_relu(c1, params["conv2"])
    edge = sobel(c2)
    c3 = conv_bn_relu(edge, params["conv3"])
    c4 = conv_bn_relu(x, params["conv4"])
    return jnp.concatenate([c4, c3], axis=1)


if __name__ == "__main__":
    key = jax.random.PRNGKey(0)
    pkey, xkey = jax.random.split(key)

    in_channels, out_channels = 4, 8
    N, H, W = 2, 16, 16

    params = init_params(pkey, in_channels, out_channels)
    x = jax.random.normal(xkey, (N, in_channels, H, W), jnp.float32)

    fwd = jax.jit(functools.partial(edge_aware_unit_forward, params))
    out = fwd(x)
    jax.block_until_ready(out)

    assert out.shape == (N, out_channels, H, W), out.shape
    assert out.dtype == jnp.float32

    # Correctness sanity check against a plain-XLA implementation of the same
    # forward math (loose tolerance; a logic error would be O(1) off).
    ref = _reference_forward(params, x)
    err = float(jnp.max(jnp.abs(out - ref)))
    assert err < 1e-2, f"kernel/reference mismatch: max abs err = {err}"

    print("KERNEL_OK")
</pallas_src>

<mosaic_0001>
module attributes {stable_mosaic.version = 11 : i64} {
  func.func @kernel(%arg0: memref<4x512xf32, #tpu.memory_space<vmem>>, %arg1: memref<8x4xf32, #tpu.memory_space<vmem>>, %arg2: memref<8x2xf32, #tpu.memory_space<vmem>>, %arg3: memref<4x72xf32, #tpu.memory_space<vmem>>, %arg4: memref<4x2xf32, #tpu.memory_space<vmem>>, %arg5: memref<4x36xf32, #tpu.memory_space<vmem>>, %arg6: memref<4x2xf32, #tpu.memory_space<vmem>>, %arg7: memref<4x36xf32, #tpu.memory_space<vmem>>, %arg8: memref<4x2xf32, #tpu.memory_space<vmem>>, %arg9: memref<9x512xf32, #tpu.memory_space<vmem>>, %arg10: memref<8x512xf32, #tpu.memory_space<vmem>>, %arg11: memref<8x512xf32, #tpu.memory_space<vmem>>, %arg12: memref<8x768xf32, #tpu.memory_space<vmem>>, %arg13: memref<72x512xf32, #tpu.memory_space<vmem>>) attributes {dimension_semantics = [], scalar_prefetch = 0 : i64, scratch_operands = 2 : i64, tpu.core_type = #tpu.core_type<tc>} {
    %cst = arith.constant 0.000000e+00 : f32
    %0 = vector.broadcast %cst : f32 to vector<8x768xf32>
    %c0 = arith.constant 0 : index
    %c0_0 = arith.constant 0 : index
    %1 = vector.load %arg12[%c0, %c0_0] : memref<8x768xf32, #tpu.memory_space<vmem>>, vector<8x768xf32>
    tpu.vector_store %arg12[%c0, %c0_0], %0 {strides = array<i32>} : memref<8x768xf32, #tpu.memory_space<vmem>>, vector<8x768xf32>,
    %c0_1 = arith.constant 0 : index
    %c0_2 = arith.constant 0 : index
    %2 = vector.load %arg0[%c0_1, %c0_2] : memref<4x512xf32, #tpu.memory_space<vmem>>, vector<4x512xf32>
    %c0_3 = arith.constant 0 : index
    %c128 = arith.constant 128 : index
    %3 = vector.load %arg12[%c0_3, %c128] : memref<8x768xf32, #tpu.memory_space<vmem>>, vector<4x512xf32>
    tpu.vector_store %arg12[%c0_3, %c128], %2 {strides = array<i32>} : memref<8x768xf32, #tpu.memory_space<vmem>>, vector<4x512xf32>,
    %c0_4 = arith.constant 0 : index
    %c111 = arith.constant 111 : index
    %4 = vector.load %arg12[%c0_4, %c111] : memref<8x768xf32, #tpu.memory_space<vmem>>, vector<4x512xf32>
    %c0_5 = arith.constant 0 : index
    %c0_6 = arith.constant 0 : index
    %5 = vector.load %arg9[%c0_5, %c0_6] : memref<9x512xf32, #tpu.memory_space<vmem>>, vector<1x512xf32>
    %6 = vector.broadcast %5 : vector<1x512xf32> to vector<4x512xf32>
    %7 = arith.mulf %6, %4 : vector<4x512xf32>
    %c0_7 = arith.constant 0 : index
    %c0_8 = arith.constant 0 : index
    %8 = vector.load %arg13[%c0_7, %c0_8] : memref<72x512xf32, #tpu.memory_space<vmem>>, vector<4x512xf32>
    tpu.vector_store %arg13[%c0_7, %c0_8], %7 {strides = array<i32>} : memref<72x512xf32, #tpu.memory_space<vmem>>, vector<4x512xf32>,
    %c0_9 = arith.constant 0 : index
    %c112 = arith.constant 112 : index
    %9 = vector.load %arg12[%c0_9, %c112] : memref<8x768xf32, #tpu.memory_space<vmem>>, vector<4x512xf32>
    %c1 = arith.constant 1 : index
    %c0_10 = arith.constant 0 : index
    %10 = vector.load %arg9[%c1, %c0_10] : memref<9x512xf32, #tpu.memory_space<vmem>>, vector<1x512xf32>
    %11 = vector.broadcast %10 : vector<1x512xf32> to vector<4x512xf32>
    %12 = arith.mulf %11, %9 : vector<4x512xf32>
    %c4 = arith.constant 4 : index
    %c0_11 = arith.constant 0 : index
    %13 = vector.load %arg13[%c4, %c0_11] : memref<72x512xf32, #tpu.memory_space<vmem>>, vector<4x512xf32>
    tpu.vector_store %arg13[%c4, %c0_11], %12 {strides = array<i32>} : memref<72x512xf32, #tpu.memory_space<vmem>>, vector<4x512xf32>,
    %c0_12 = arith.constant 0 : index
    %c113 = arith.constant 113 : index
    %14 = vector.load %arg12[%c0_12, %c113] : memref<8x768xf32, #tpu.memory_space<vmem>>, vector<4x512xf32>
    %c2 = arith.constant 2 : index
    %c0_13 = arith.constant 0 : index
    %15 = vector.load %arg9[%c2, %c0_13] : memref<9x512xf32, #tpu.memory_space<vmem>>, vector<1x512xf32>
    %16 = vector.broadcast %15 : vector<1x512xf32> to vector<4x512xf32>
    %17 = arith.mulf %16, %14 : vector<4x512xf32>
    %c8 = arith.constant 8 : index
    %c0_14 = arith.constant 0 : index
    %18 = vector.load %arg13[%c8, %c0_14] : memref<72x512xf32, #tpu.memory_space<vmem>>, vector<4x512xf32>
    tpu.vector_store %arg13[%c8, %c0_14], %17 {strides = array<i32>} : memref<72x512xf32, #tpu.memory_space<vmem>>, vector<4x512xf32>,
    %c0_15 = arith.constant 0 : index
    %c127 = arith.constant 127 : index
    %19 = vector.load %arg12[%c0_15, %c127] : memref<8x768xf32, #tpu.memory_space<vmem>>, vector<4x512xf32>
    %c3 = arith.constant 3 : index
    %c0_16 = arith.constant 0 : index
    %20 = vector.load %arg9[%c3, %c0_16] : memref<9x512xf32, #tpu.memory_space<vmem>>, vector<1x512xf32>
    %21 = vector.broadcast %20 : vector<1x512xf32> to vector<4x512xf32>
    %22 = arith.mulf %21, %19 : vector<4x512xf32>
    %c12 = arith.constant 12 : index
    %c0_17 = arith.constant 0 : index
    %23 = vector.load %arg13[%c12, %c0_17] : memref<72x512xf32, #tpu.memory_space<vmem>>, vector<4x512xf32>
    tpu.vector_store %arg13[%c12, %c0_17], %22 {strides = array<i32>} : memref<72x512xf32, #tpu.memory_space<vmem>>, vector<4x512xf32>,
    %c0_18 = arith.constant 0 : index
    %c128_19 = arith.constant 128 : index
    %24 = vector.load %arg12[%c0_18, %c128_19] : memref<8x768xf32, #tpu.memory_space<vmem>>, vector<4x512xf32>
    %c16 = arith.constant 16 : index
    %c0_20 = arith.constant 0 : index
    %25 = vector.load %arg13[%c16, %c0_20] : memref<72x512xf32, #tpu.memory_space<vmem>>, vector<4x512xf32>
    tpu.vector_store %arg13[%c16, %c0_20], %24 {strides = array<i32>} : memref<72x512xf32, #tpu.memory_space<vmem>>, vector<4x512xf32>,
    %c0_21 = arith.constant 0 : index
    %c129 = arith.constant 129 : index
    %26 = vector.load %arg12[%c0_21, %c129] : memref<8x768xf32, #tpu.memory_space<vmem>>, vector<4x512xf32>
    %c5 = arith.constant 5 : index
    %c0_22 = arith.constant 0 : index
    %27 = vector.load %arg9[%c5, %c0_22] : memref<9x512xf32, #tpu.memory_space<vmem>>, vector<1x512xf32>
    %28 = vector.broadcast %27 : vector<1x512xf32> to vector<4x512xf32>
    %29 = arith.mulf %28, %26 : vector<4x512xf32>
    %c20 = arith.constant 20 : index
    %c0_23 = arith.constant 0 : index
    %30 = vector.load %arg13[%c20, %c0_23] : memref<72x512xf32, #tpu.memory_space<vmem>>, vector<4x512xf32>
    tpu.vector_store %arg13[%c20, %c0_23], %29 {strides = array<i32>} : memref<72x512xf32, #tpu.memory_space<vmem>>, vector<4x512xf32>,
    %c0_24 = arith.constant 0 : index
    %c143 = arith.constant 143 : index
    %31 = vector.load %arg12[%c0_24, %c143] : memref<8x768xf32, #tpu.memory_space<vmem>>, vector<4x512xf32>
    %c6 = arith.constant 6 : index
    %c0_25 = arith.constant 0 : index
    %32 = vector.load %arg9[%c6, %c0_25] : memref<9x512xf32, #tpu.memory_space<vmem>>, vector<1x512xf32>
    %33 = vector.broadcast %32 : vector<1x512xf32> to vector<4x512xf32>
    %34 = arith.mulf %33, %31 : vector<4x512xf32>
    %c24 = arith.constant 24 : index
    %c0_26 = arith.constant 0 : index
    %35 = vector.load %arg13[%c24, %c0_26] : memref<72x512xf32, #tpu.memory_space<vmem>>, vector<4x512xf32>
    tpu.vector_store %arg13[%c24, %c0_26], %34 {strides = array<i32>} : memref<72x512xf32, #tpu.memory_space<vmem>>, vector<4x512xf32>,
    %c0_27 = arith.constant 0 : index
    %c144 = arith.constant 144 : index
    %36 = vector.load %arg12[%c0_27, %c144] : memref<8x768xf32, #tpu.memory_space<vmem>>, vector<4x512xf32>
    %c7 = arith.constant 7 : index
    %c0_28 = arith.constant 0 : index
    %37 = vector.load %arg9[%c7, %c0_28] : memref<9x512xf32, #tpu.memory_space<vmem>>, vector<1x512xf32>
    %38 = vector.broadcast %37 : vector<1x512xf32> to vector<4x512xf32>
    %39 = arith.mulf %38, %36 : vector<4x512xf32>
    %c28 = arith.constant 28 : index
    %c0_29 = arith.constant 0 : index
    %40 = vector.load %arg13[%c28, %c0_29] : memref<72x512xf32, #tpu.memory_space<vmem>>, vector<4x512xf32>
    tpu.vector_store %arg13[%c28, %c0_29], %39 {strides = array<i32>} : memref<72x512xf32, #tpu.memory_space<vmem>>, vector<4x512xf32>,
    %c0_30 = arith.constant 0 : index
    %c145 = arith.constant 145 : index
    %41 = vector.load %arg12[%c0_30, %c145] : memref<8x768xf32, #tpu.memory_space<vmem>>, vector<4x512xf32>
    %c8_31 = arith.constant 8 : index
    %c0_32 = arith.constant 0 : index
    %42 = vector.load %arg9[%c8_31, %c0_32] : memref<9x512xf32, #tpu.memory_space<vmem>>, vector<1x512xf32>
    %43 = vector.broadcast %42 : vector<1x512xf32> to vector<4x512xf32>
    %44 = arith.mulf %43, %41 : vector<4x512xf32>
    %c32 = arith.constant 32 : index
    %c0_33 = arith.constant 0 : index
    %45 = vector.load %arg13[%c32, %c0_33] : memref<72x512xf32, #tpu.memory_space<vmem>>, vector<4x512xf32>
    tpu.vector_store %arg13[%c32, %c0_33], %44 {strides = array<i32>} : memref<72x512xf32, #tpu.memory_space<vmem>>, vector<4x512xf32>,
    %c0_34 = arith.constant 0 : index
    %c0_35 = arith.constant 0 : index
    %46 = vector.load %arg7[%c0_34, %c0_35] : memref<4x36xf32, #tpu.memory_space<vmem>>, vector<4x36xf32>
    %c0_36 = arith.constant 0 : index
    %c0_37 = arith.constant 0 : index
    %47 = vector.load %arg13[%c0_36, %c0_37] : memref<72x512xf32, #tpu.memory_space<vmem>>, vector<36x512xf32>
    %cst_38 = arith.constant dense<0.000000e+00> : vector<4x512xf32>
    %48 = tpu.matmul %46, %47, %cst_38 {dimension_numbers = #tpu.dot_dimension_numbers<[1], [0], [0], [1], [0, 0, 1, 1], [], []>} : vector<4x36xf32>, vector<36x512xf32>, vector<4x512xf32> -> vector<4x512xf32>
    %cst_39 = arith.constant dense<0.000000e+00> : vector<4xf32>
    %49 = vector.multi_reduction <add>, %48, %cst_39 [1] : vector<4x512xf32> to vector<4xf32>
    %50 = vector.shape_cast %49 : vector<4xf32> to vector<4x1xf32>
    %cst_40 = arith.constant 0.001953125 : f32
    %51 = vector.broadcast %cst_40 : f32 to vector<4x1xf32>
    %52 = arith.mulf %50, %51 : vector<4x1xf32>
    %53 = vector.broadcast %52 : vector<4x1xf32> to vector<4x512xf32>
    %54 = arith.subf %48, %53 : vector<4x512xf32>
    %55 = arith.mulf %54, %54 : vector<4x512xf32>
    %cst_41 = arith.constant dense<0.000000e+00> : vector<4xf32>
    %56 = vector.multi_reduction <add>, %55, %cst_41 [1] : vector<4x512xf32> to vector<4xf32>
    %57 = vector.shape_cast %56 : vector<4xf32> to vector<4x1xf32>
    %cst_42 = arith.constant 0.001953125 : f32
    %58 = vector.broadcast %cst_42 : f32 to vector<4x1xf32>
    %59 = arith.mulf %57, %58 : vector<4x1xf32>
    %c0_43 = arith.constant 0 : index
    %c0_44 = arith.constant 0 : index
    %60 = vector.load %arg8[%c0_43, %c0_44] : memref<4x2xf32, #tpu.memory_space<vmem>>, vector<4x1xf32>
    %cst_45 = arith.constant 9.99999974E-6 : f32
    %61 = vector.broadcast %cst_45 : f32 to vector<4x1xf32>
    %62 = arith.addf %59, %61 : vector<4x1xf32>
    %63 = math.rsqrt %62 : vector<4x1xf32>
    %64 = arith.mulf %60, %63 : vector<4x1xf32>
    %65 = vector.broadcast %64 : vector<4x1xf32> to vector<4x512xf32>
    %66 = arith.mulf %54, %65 : vector<4x512xf32>
    %c0_46 = arith.constant 0 : index
    %c1_47 = arith.constant 1 : index
    %67 = vector.load %arg8[%c0_46, %c1_47] : memref<4x2xf32, #tpu.memory_space<vmem>>, vector<4x1xf32>
    %68 = vector.broadcast %67 : vector<4x1xf32> to vector<4x512xf32>
    %69 = arith.addf %66, %68 : vector<4x512xf32>
    %cst_48 = arith.constant 0.000000e+00 : f32
    %70 = vector.broadcast %cst_48 : f32 to vector<4x512xf32>
    %71 = arith.maximumf %69, %70 : vector<4x512xf32>
    %c0_49 = arith.constant 0 : index
    %c0_50 = arith.constant 0 : index
    %72 = vector.load %arg11[%c0_49, %c0_50] : memref<8x512xf32, #tpu.memory_space<vmem>>, vector<4x512xf32>
    tpu.vector_store %arg11[%c0_49, %c0_50], %71 {strides = array<i32>} : memref<8x512xf32, #tpu.memory_space<vmem>>, vector<4x512xf32>,
    %c0_51 = arith.constant 0 : index
    %c0_52 = arith.constant 0 : index
    %73 = vector.load %arg1[%c0_51, %c0_52] : memref<8x4xf32, #tpu.memory_space<vmem>>, vector<8x4xf32>
    %cst_53 = arith.constant dense<0.000000e+00> : vector<8x512xf32>
    %74 = tpu.matmul %73, %2, %cst_53 {dimension_numbers = #tpu.dot_dimension_numbers<[1], [0], [0], [1], [0, 0, 1, 1], [], []>} : vector<8x4xf32>, vector<4x512xf32>, vector<8x512xf32> -> vector<8x512xf32>
    %cst_54 = arith.constant dense<0.000000e+00> : vector<8xf32>
    %75 = vector.multi_reduction <add>, %74, %cst_54 [1] : vector<8x512xf32> to vector<8xf32>
    %76 = vector.shape_cast %75 : vector<8xf32> to vector<8x1xf32>
    %cst_55 = arith.constant 0.001953125 : f32
    %77 = vector.broadcast %cst_55 : f32 to vector<8x1xf32>
    %78 = arith.mulf %76, %77 : vector<8x1xf32>
    %79 = vector.broadcast %78 : vector<8x1xf32> to vector<8x512xf32>
    %80 = arith.subf %74, %79 : vector<8x512xf32>
    %81 = arith.mulf %80, %80 : vector<8x512xf32>
    %cst_56 = arith.constant dense<0.000000e+00> : vector<8xf32>
    %82 = vector.multi_reduction <add>, %81, %cst_56 [1] : vector<8x512xf32> to vector<8xf32>
    %83 = vector.shape_cast %82 : vector<8xf32> to vector<8x1xf32>
    %cst_57 = arith.constant 0.001953125 : f32
    %84 = vector.broadcast %cst_57 : f32 to vector<8x1xf32>
    %85 = arith.mulf %83, %84 : vector<8x1xf32>
    %c0_58 = arith.constant 0 : index
    %c0_59 = arith.constant 0 : index
    %86 = vector.load %arg2[%c0_58, %c0_59] : memref<8x2xf32, #tpu.memory_space<vmem>>, vector<8x1xf32>
    %cst_60 = arith.constant 9.99999974E-6 : f32
    %87 = vector.broadcast %cst_60 : f32 to vector<8x1xf32>
    %88 = arith.addf %85, %87 : vector<8x1xf32>
    %89 = math.rsqrt %88 : vector<8x1xf32>
    %90 = arith.mulf %86, %89 : vector<8x1xf32>
    %91 = vector.broadcast %90 : vector<8x1xf32> to vector<8x512xf32>
    %92 = arith.mulf %80, %91 : vector<8x512xf32>
    %c0_61 = arith.constant 0 : index
    %c1_62 = arith.constant 1 : index
    %93 = vector.load %arg2[%c0_61, %c1_62] : memref<8x2xf32, #tpu.memory_space<vmem>>, vector<8x1xf32>
    %94 = vector.broadcast %93 : vector<8x1xf32> to vector<8x512xf32>
    %95 = arith.addf %92, %94 : vector<8x512xf32>
    %cst_63 = arith.constant 0.000000e+00 : f32
    %96 = vector.broadcast %cst_63 : f32 to vector<8x512xf32>
    %97 = arith.maximumf %95, %96 : vector<8x512xf32>
    %c0_64 = arith.constant 0 : index
    %c128_65 = arith.constant 128 : index
    %98 = vector.load %arg12[%c0_64, %c128_65] : memref<8x768xf32, #tpu.memory_space<vmem>>, vector<8x512xf32>
    tpu.vector_store %arg12[%c0_64, %c128_65], %97 {strides = array<i32>} : memref<8x768xf32, #tpu.memory_space<vmem>>, vector<8x512xf32>,
    %c0_66 = arith.constant 0 : index
    %c111_67 = arith.constant 111 : index
    %99 = vector.load %arg12[%c0_66, %c111_67] : memref<8x768xf32, #tpu.memory_space<vmem>>, vector<8x512xf32>
    %c0_68 = arith.constant 0 : index
    %c0_69 = arith.constant 0 : index
    %100 = vector.load %arg9[%c0_68, %c0_69] : memref<9x512xf32, #tpu.memory_space<vmem>>, vector<1x512xf32>
    %101 = vector.broadcast %100 : vector<1x512xf32> to vector<8x512xf32>
    %102 = arith.mulf %101, %99 : vector<8x512xf32>
    %c0_70 = arith.constant 0 : index
    %c0_71 = arith.constant 0 : index
    %103 = vector.load %arg13[%c0_70, %c0_71] : memref<72x512xf32, #tpu.memory_space<vmem>>, vector<8x512xf32>
    tpu.vector_store %arg13[%c0_70, %c0_71], %102 {strides = array<i32>} : memref<72x512xf32, #tpu.memory_space<vmem>>, vector<8x512xf32>,
    %c0_72 = arith.constant 0 : index
    %c112_73 = arith.constant 112 : index
    %104 = vector.load %arg12[%c0_72, %c112_73] : memref<8x768xf32, #tpu.memory_space<vmem>>, vector<8x512xf32>
    %c1_74 = arith.constant 1 : index
    %c0_75 = arith.constant 0 : index
    %105 = vector.load %arg9[%c1_74, %c0_75] : memref<9x512xf32, #tpu.memory_space<vmem>>, vector<1x512xf32>
    %106 = vector.broadcast %105 : vector<1x512xf32> to vector<8x512xf32>
    %107 = arith.mulf %106, %104 : vector<8x512xf32>
    %c8_76 = arith.constant 8 : index
    %c0_77 = arith.constant 0 : index
    %108 = vector.load %arg13[%c8_76, %c0_77] : memref<72x512xf32, #tpu.memory_space<vmem>>, vector<8x512xf32>
    tpu.vector_store %arg13[%c8_76, %c0_77], %107 {strides = array<i32>} : memref<72x512xf32, #tpu.memory_space<vmem>>, vector<8x512xf32>,
    %c0_78 = arith.constant 0 : index
    %c113_79 = arith.constant 113 : index
    %109 = vector.load %arg12[%c0_78, %c113_79] : memref<8x768xf32, #tpu.memory_space<vmem>>, vector<8x512xf32>
    %c2_80 = arith.constant 2 : index
    %c0_81 = arith.constant 0 : index
    %110 = vector.load %arg9[%c2_80, %c0_81] : memref<9x512xf32, #tpu.memory_space<vmem>>, vector<1x512xf32>
    %111 = vector.broadcast %110 : vector<1x512xf32> to vector<8x512xf32>
    %112 = arith.mulf %111, %109 : vector<8x512xf32>
    %c16_82 = arith.constant 16 : index
    %c0_83 = arith.constant 0 : index
    %113 = vector.load %arg13[%c16_82, %c0_83] : memref<72x512xf32, #tpu.memory_space<vmem>>, vector<8x512xf32>
    tpu.vector_store %arg13[%c16_82, %c0_83], %112 {strides = array<i32>} : memref<72x512xf32, #tpu.memory_space<vmem>>, vector<8x512xf32>,
    %c0_84 = arith.constant 0 : index
    %c127_85 = arith.constant 127 : index
    %114 = vector.load %arg12[%c0_84, %c127_85] : memref<8x768xf32, #tpu.memory_space<vmem>>, vector<8x512xf32>
    %c3_86 = arith.constant 3 : index
    %c0_87 = arith.constant 0 : index
    %115 = vector.load %arg9[%c3_86, %c0_87] : memref<9x512xf32, #tpu.memory_space<vmem>>, vector<1x512xf32>
    %116 = vector.broadcast %115 : vector<1x512xf32> to vector<8x512xf32>
    %117 = arith.mulf %116, %114 : vector<8x512xf32>
    %c24_88 = arith.constant 24 : index
    %c0_89 = arith.constant 0 : index
    %118 = vector.load %arg13[%c24_88, %c0_89] : memref<72x512xf32, #tpu.memory_space<vmem>>, vector<8x512xf32>
    tpu.vector_store %arg13[%c24_88, %c0_89], %117 {strides = array<i32>} : memref<72x512xf32, #tpu.memory_space<vmem>>, vector<8x512xf32>,
    %c0_90 = arith.constant 0 : index
    %c128_91 = arith.constant 128 : index
    %119 = vector.load %arg12[%c0_90, %c128_91] : memref<8x768xf32, #tpu.memory_space<vmem>>, vector<8x512xf32>
    %c32_92 = arith.constant 32 : index
    %c0_93 = arith.constant 0 : index
    %120 = vector.load %arg13[%c32_92, %c0_93] : memref<72x512xf32, #tpu.memory_space<vmem>>, vector<8x512xf32>
    tpu.vector_store %arg13[%c32_92, %c0_93], %119 {strides = array<i32>} : memref<72x512xf32, #tpu.memory_space<vmem>>, vector<8x512xf32>,
    %c0_94 = arith.constant 0 : index
    %c129_95 = arith.constant 129 : index
    %121 = vector.load %arg12[%c0_94, %c129_95] : memref<8x768xf32, #tpu.memory_space<vmem>>, vector<8x512xf32>
    %c5_96 = arith.constant 5 : index
    %c0_97 = arith.constant 0 : index
    %122 = vector.load %arg9[%c5_96, %c0_97] : memref<9x512xf32, #tpu.memory_space<vmem>>, vector<1x512xf32>
    %123 = vector.broadcast %122 : vector<1x512xf32> to vector<8x512xf32>
    %124 = arith.mulf %123, %121 : vector<8x512xf32>
    %c40 = arith.constant 40 : index
    %c0_98 = arith.constant 0 : index
    %125 = vector.load %arg13[%c40, %c0_98] : memref<72x512xf32, #tpu.memory_space<vmem>>, vector<8x512xf32>
    tpu.vector_store %arg13[%c40, %c0_98], %124 {strides = array<i32>} : memref<72x512xf32, #tpu.memory_space<vmem>>, vector<8x512xf32>,
    %c0_99 = arith.constant 0 : index
    %c143_100 = arith.constant 143 : index
    %126 = vector.load %arg12[%c0_99, %c143_100] : memref<8x768xf32, #tpu.memory_space<vmem>>, vector<8x512xf32>
    %c6_101 = arith.constant 6 : index
    %c0_102 = arith.constant 0 : index
    %127 = vector.load %arg9[%c6_101, %c0_102] : memref<9x512xf32, #tpu.memory_space<vmem>>, vector<1x512xf32>
    %128 = vector.broadcast %127 : vector<1x512xf32> to vector<8x512xf32>
    %129 = arith.mulf %128, %126 : vector<8x512xf32>
    %c48 = arith.constant 48 : index
    %c0_103 = arith.constant 0 : index
    %130 = vector.load %arg13[%c48, %c0_103] : memref<72x512xf32, #tpu.memory_space<vmem>>, vector<8x512xf32>
    tpu.vector_store %arg13[%c48, %c0_103], %129 {strides = array<i32>} : memref<72x512xf32, #tpu.memory_space<vmem>>, vector<8x512xf32>,
    %c0_104 = arith.constant 0 : index
    %c144_105 = arith.constant 144 : index
    %131 = vector.load %arg12[%c0_104, %c144_105] : memref<8x768xf32, #tpu.memory_space<vmem>>, vector<8x512xf32>
    %c7_106 = arith.constant 7 : index
    %c0_107 = arith.constant 0 : index
    %132 = vector.load %arg9[%c7_106, %c0_107] : memref<9x512xf32, #tpu.memory_space<vmem>>, vector<1x512xf32>
    %133 = vector.broadcast %132 : vector<1x512xf32> to vector<8x512xf32>
    %134 = arith.mulf %133, %131 : vector<8x512xf32>
    %c56 = arith.constant 56 : index
    %c0_108 = arith.constant 0 : index
    %135 = vector.load %arg13[%c56, %c0_108] : memref<72x512xf32, #tpu.memory_space<vmem>>, vector<8x512xf32>
    tpu.vector_store %arg13[%c56, %c0_108], %134 {strides = array<i32>} : memref<72x512xf32, #tpu.memory_space<vmem>>, vector<8x512xf32>,
    %c0_109 = arith.constant 0 : index
    %c145_110 = arith.constant 145 : index
    %136 = vector.load %arg12[%c0_109, %c145_110] : memref<8x768xf32, #tpu.memory_space<vmem>>, vector<8x512xf32>
    %c8_111 = arith.constant 8 : index
    %c0_112 = arith.constant 0 : index
    %137 = vector.load %arg9[%c8_111, %c0_112] : memref<9x512xf32, #tpu.memory_space<vmem>>, vector<1x512xf32>
    %138 = vector.broadcast %137 : vector<1x512xf32> to vector<8x512xf32>
    %139 = arith.mulf %138, %136 : vector<8x512xf32>
    %c64 = arith.constant 64 : index
    %c0_113 = arith.constant 0 : index
    %140 = vector.load %arg13[%c64, %c0_113] : memref<72x512xf32, #tpu.memory_space<vmem>>, vector<8x512xf32>
    tpu.vector_store %arg13[%c64, %c0_113], %139 {strides = array<i32>} : memref<72x512xf32, #tpu.memory_space<vmem>>, vector<8x512xf32>,
    %c0_114 = arith.constant 0 : index
    %c0_115 = arith.constant 0 : index
    %141 = vector.load %arg3[%c0_114, %c0_115] : memref<4x72xf32, #tpu.memory_space<vmem>>, vector<4x72xf32>
    %c0_116 = arith.constant 0 : index
    %c0_117 = arith.constant 0 : index
    %142 = vector.load %arg13[%c0_116, %c0_117] : memref<72x512xf32, #tpu.memory_space<vmem>>, vector<72x512xf32>
    %cst_118 = arith.constant dense<0.000000e+00> : vector<4x512xf32>
    %143 = tpu.matmul %141, %142, %cst_118 {dimension_numbers = #tpu.dot_dimension_numbers<[1], [0], [0], [1], [0, 0, 1, 1], [], []>} : vector<4x72xf32>, vector<72x512xf32>, vector<4x512xf32> -> vector<4x512xf32>
    %cst_119 = arith.constant dense<0.000000e+00> : vector<4xf32>
    %144 = vector.multi_reduction <add>, %143, %cst_119 [1] : vector<4x512xf32> to vector<4xf32>
    %145 = vector.shape_cast %144 : vector<4xf32> to vector<4x1xf32>
    %cst_120 = arith.constant 0.001953125 : f32
    %146 = vector.broadcast %cst_120 : f32 to vector<4x1xf32>
    %147 = arith.mulf %145, %146 : vector<4x1xf32>
    %148 = vector.broadcast %147 : vector<4x1xf32> to vector<4x512xf32>
    %149 = arith.subf %143, %148 : vector<4x512xf32>
    %150 = arith.mulf %149, %149 : vector<4x512xf32>
    %cst_121 = arith.constant dense<0.000000e+00> : vector<4xf32>
    %151 = vector.multi_reduction <add>, %150, %cst_121 [1] : vector<4x512xf32> to vector<4xf32>
    %152 = vector.shape_cast %151 : vector<4xf32> to vector<4x1xf32>
    %cst_122 = arith.constant 0.001953125 : f32
    %153 = vector.broadcast %cst_122 : f32 to vector<4x1xf32>
    %154 = arith.mulf %152, %153 : vector<4x1xf32>
    %c0_123 = arith.constant 0 : index
    %c0_124 = arith.constant 0 : index
    %155 = vector.load %arg4[%c0_123, %c0_124] : memref<4x2xf32, #tpu.memory_space<vmem>>, vector<4x1xf32>
    %cst_125 = arith.constant 9.99999974E-6 : f32
    %156 = vector.broadcast %cst_125 : f32 to vector<4x1xf32>
    %157 = arith.addf %154, %156 : vector<4x1xf32>
    %158 = math.rsqrt %157 : vector<4x1xf32>
    %159 = arith.mulf %155, %158 : vector<4x1xf32>
    %160 = vector.broadcast %159 : vector<4x1xf32> to vector<4x512xf32>
    %161 = arith.mulf %149, %160 : vector<4x512xf32>
    %c0_126 = arith.constant 0 : index
    %c1_127 = arith.constant 1 : index
    %162 = vector.load %arg4[%c0_126, %c1_127] : memref<4x2xf32, #tpu.memory_space<vmem>>, vector<4x1xf32>
    %163 = vector.broadcast %162 : vector<4x1xf32> to vector<4x512xf32>
    %164 = arith.addf %161, %163 : vector<4x512xf32>
    %cst_128 = arith.constant 0.000000e+00 : f32
    %165 = vector.broadcast %cst_128 : f32 to vector<4x512xf32>
    %166 = arith.maximumf %164, %165 : vector<4x512xf32>
    %c0_129 = arith.constant 0 : index
    %c128_130 = arith.constant 128 : index
    %167 = vector.load %arg12[%c0_129, %c128_130] : memref<8x768xf32, #tpu.memory_space<vmem>>, vector<4x512xf32>
    tpu.vector_store %arg12[%c0_129, %c128_130], %166 {strides = array<i32>} : memref<8x768xf32, #tpu.memory_space<vmem>>, vector<4x512xf32>,
    %cst_131 = arith.constant 0.000000e+00 : f32
    %168 = vector.broadcast %cst_131 : f32 to vector<4x512xf32>
    %c0_132 = arith.constant 0 : index
    %c0_133 = arith.constant 0 : index
    %169 = vector.load %arg10[%c0_132, %c0_133] : memref<8x512xf32, #tpu.memory_space<vmem>>, vector<1x512xf32>
    %c0_134 = arith.constant 0 : index
    %c111_135 = arith.constant 111 : index
    %170 = vector.load %arg12[%c0_134, %c111_135] : memref<8x768xf32, #tpu.memory_space<vmem>>, vector<4x512xf32>
    %171 = vector.broadcast %169 : vector<1x512xf32> to vector<4x512xf32>
    %172 = arith.mulf %171, %170 : vector<4x512xf32>
    %173 = arith.addf %168, %172 : vector<4x512xf32>
    %c1_136 = arith.constant 1 : index
    %c0_137 = arith.constant 0 : index
    %174 = vector.load %arg10[%c1_136, %c0_137] : memref<8x512xf32, #tpu.memory_space<vmem>>, vector<1x512xf32>
    %c0_138 = arith.constant 0 : index
    %c112_139 = arith.constant 112 : index
    %175 = vector.load %arg12[%c0_138, %c112_139] : memref<8x768xf32, #tpu.memory_space<vmem>>, vector<4x512xf32>
    %176 = vector.broadcast %174 : vector<1x512xf32> to vector<4x512xf32>
    %177 = arith.mulf %176, %175 : vector<4x512xf32>
    %178 = arith.addf %173, %177 : vector<4x512xf32>
    %c2_140 = arith.constant 2 : index
    %c0_141 = arith.constant 0 : index
    %179 = vector.load %arg10[%c2_140, %c0_141] : memref<8x512xf32, #tpu.memory_space<vmem>>, vector<1x512xf32>
    %c0_142 = arith.constant 0 : index
    %c126 = arith.constant 126 : index
    %180 = vector.load %arg12[%c0_142, %c126] : memref<8x768xf32, #tpu.memory_space<vmem>>, vector<4x512xf32>
    %181 = vector.broadcast %179 : vector<1x512xf32> to vector<4x512xf32>
    %182 = arith.mulf %181, %180 : vector<4x512xf32>
    %183 = arith.addf %178, %182 : vector<4x512xf32>
    %c3_143 = arith.constant 3 : index
    %c0_144 = arith.constant 0 : index
    %184 = vector.load %arg10[%c3_143, %c0_144] : memref<8x512xf32, #tpu.memory_space<vmem>>, vector<1x512xf32>
    %c0_145 = arith.constant 0 : index
    %c127_146 = arith.constant 127 : index
    %185 = vector.load %arg12[%c0_145, %c127_146] : memref<8x768xf32, #tpu.memory_space<vmem>>, vector<4x512xf32>
    %186 = vector.broadcast %184 : vector<1x512xf32> to vector<4x512xf32>
    %187 = arith.mulf %186, %185 : vector<4x512xf32>
    %188 = arith.addf %183, %187 : vector<4x512xf32>
    %c4_147 = arith.constant 4 : index
    %c0_148 = arith.constant 0 : index
    %189 = vector.load %arg10[%c4_147, %c0_148] : memref<8x512xf32, #tpu.memory_space<vmem>>, vector<1x512xf32>
    %c0_149 = arith.constant 0 : index
    %c129_150 = arith.constant 129 : index
    %190 = vector.load %arg12[%c0_149, %c129_150] : memref<8x768xf32, #tpu.memory_space<vmem>>, vector<4x512xf32>
    %191 = vector.broadcast %189 : vector<1x512xf32> to vector<4x512xf32>
    %192 = arith.mulf %191, %190 : vector<4x512xf32>
    %193 = arith.addf %188, %192 : vector<4x512xf32>
    %c5_151 = arith.constant 5 : index
    %c0_152 = arith.constant 0 : index
    %194 = vector.load %arg10[%c5_151, %c0_152] : memref<8x512xf32, #tpu.memory_space<vmem>>, vector<1x512xf32>
    %c0_153 = arith.constant 0 : index
    %c130 = arith.constant 130 : index
    %195 = vector.load %arg12[%c0_153, %c130] : memref<8x768xf32, #tpu.memory_space<vmem>>, vector<4x512xf32>
    %196 = vector.broadcast %194 : vector<1x512xf32> to vector<4x512xf32>
    %197 = arith.mulf %196, %195 : vector<4x512xf32>
    %198 = arith.addf %193, %197 : vector<4x512xf32>
    %c6_154 = arith.constant 6 : index
    %c0_155 = arith.constant 0 : index
    %199 = vector.load %arg10[%c6_154, %c0_155] : memref<8x512xf32, #tpu.memory_space<vmem>>, vector<1x512xf32>
    %c0_156 = arith.constant 0 : index
    %c144_157 = arith.constant 144 : index
    %200 = vector.load %arg12[%c0_156, %c144_157] : memref<8x768xf32, #tpu.memory_space<vmem>>, vector<4x512xf32>
    %201 = vector.broadcast %199 : vector<1x512xf32> to vector<4x512xf32>
    %202 = arith.mulf %201, %200 : vector<4x512xf32>
    %203 = arith.addf %198, %202 : vector<4x512xf32>
    %c7_158 = arith.constant 7 : index
    %c0_159 = arith.constant 0 : index
    %204 = vector.load %arg10[%c7_158, %c0_159] : memref<8x512xf32, #tpu.memory_space<vmem>>, vector<1x512xf32>
    %c0_160 = arith.constant 0 : index
    %c145_161 = arith.constant 145 : index
    %205 = vector.load %arg12[%c0_160, %c145_161] : memref<8x768xf32, #tpu.memory_space<vmem>>, vector<4x512xf32>
    %206 = vector.broadcast %204 : vector<1x512xf32> to vector<4x512xf32>
    %207 = arith.mulf %206, %205 : vector<4x512xf32>
    %208 = arith.addf %203, %207 : vector<4x512xf32>
    %c0_162 = arith.constant 0 : index
    %c128_163 = arith.constant 128 : index
    %209 = vector.load %arg12[%c0_162, %c128_163] : memref<8x768xf32, #tpu.memory_space<vmem>>, vector<4x512xf32>
    tpu.vector_store %arg12[%c0_162, %c128_163], %208 {strides = array<i32>} : memref<8x768xf32, #tpu.memory_space<vmem>>, vector<4x512xf32>,
    %c0_164 = arith.constant 0 : index
    %c111_165 = arith.constant 111 : index
    %210 = vector.load %arg12[%c0_164, %c111_165] : memref<8x768xf32, #tpu.memory_space<vmem>>, vector<4x512xf32>
    %c0_166 = arith.constant 0 : index
    %c0_167 = arith.constant 0 : index
    %211 = vector.load %arg9[%c0_166, %c0_167] : memref<9x512xf32, #tpu.memory_space<vmem>>, vector<1x512xf32>
    %212 = vector.broadcast %211 : vector<1x512xf32> to vector<4x512xf32>
    %213 = arith.mulf %212, %210 : vector<4x512xf32>
    %c0_168 = arith.constant 0 : index
    %c0_169 = arith.constant 0 : index
    %214 = vector.load %arg13[%c0_168, %c0_169] : memref<72x512xf32, #tpu.memory_space<vmem>>, vector<4x512xf32>
    tpu.vector_store %arg13[%c0_168, %c0_169], %213 {strides = array<i32>} : memref<72x512xf32, #tpu.memory_space<vmem>>, vector<4x512xf32>,
    %c0_170 = arith.constant 0 : index
    %c112_171 = arith.constant 112 : index
    %215 = vector.load %arg12[%c0_170, %c112_171] : memref<8x768xf32, #tpu.memory_space<vmem>>, vector<4x512xf32>
    %c1_172 = arith.constant 1 : index
    %c0_173 = arith.constant 0 : index
    %216 = vector.load %arg9[%c1_172, %c0_173] : memref<9x512xf32, #tpu.memory_space<vmem>>, vector<1x512xf32>
    %217 = vector.broadcast %216 : vector<1x512xf32> to vector<4x512xf32>
    %218 = arith.mulf %217, %215 : vector<4x512xf32>
    %c4_174 = arith.constant 4 : index
    %c0_175 = arith.constant 0 : index
    %219 = vector.load %arg13[%c4_174, %c0_175] : memref<72x512xf32, #tpu.memory_space<vmem>>, vector<4x512xf32>
    tpu.vector_store %arg13[%c4_174, %c0_175], %218 {strides = array<i32>} : memref<72x512xf32, #tpu.memory_space<vmem>>, vector<4x512xf32>,
    %c0_176 = arith.constant 0 : index
    %c113_177 = arith.constant 113 : index
    %220 = vector.load %arg12[%c0_176, %c113_177] : memref<8x768xf32, #tpu.memory_space<vmem>>, vector<4x512xf32>
    %c2_178 = arith.constant 2 : index
    %c0_179 = arith.constant 0 : index
    %221 = vector.load %arg9[%c2_178, %c0_179] : memref<9x512xf32, #tpu.memory_space<vmem>>, vector<1x512xf32>
    %222 = vector.broadcast %221 : vector<1x512xf32> to vector<4x512xf32>
    %223 = arith.mulf %222, %220 : vector<4x512xf32>
    %c8_180 = arith.constant 8 : index
    %c0_181 = arith.constant 0 : index
    %224 = vector.load %arg13[%c8_180, %c0_181] : memref<72x512xf32, #tpu.memory_space<vmem>>, vector<4x512xf32>
    tpu.vector_store %arg13[%c8_180, %c0_181], %223 {strides = array<i32>} : memref<72x512xf32, #tpu.memory_space<vmem>>, vector<4x512xf32>,
    %c0_182 = arith.constant 0 : index
    %c127_183 = arith.constant 127 : index
    %225 = vector.load %arg12[%c0_182, %c127_183] : memref<8x768xf32, #tpu.memory_space<vmem>>, vector<4x512xf32>
    %c3_184 = arith.constant 3 : index
    %c0_185 = arith.constant 0 : index
    %226 = vector.load %arg9[%c3_184, %c0_185] : memref<9x512xf32, #tpu.memory_space<vmem>>, vector<1x512xf32>
    %227 = vector.broadcast %226 : vector<1x512xf32> to vector<4x512xf32>
    %228 = arith.mulf %227, %225 : vector<4x512xf32>
    %c12_186 = arith.constant 12 : index
    %c0_187 = arith.constant 0 : index
    %229 = vector.load %arg13[%c12_186, %c0_187] : memref<72x512xf32, #tpu.memory_space<vmem>>, vector<4x512xf32>
    tpu.vector_store %arg13[%c12_186, %c0_187], %228 {strides = array<i32>} : memref<72x512xf32, #tpu.memory_space<vmem>>, vector<4x512xf32>,
    %c0_188 = arith.constant 0 : index
    %c128_189 = arith.constant 128 : index
    %230 = vector.load %arg12[%c0_188, %c128_189] : memref<8x768xf32, #tpu.memory_space<vmem>>, vector<4x512xf32>
    %c16_190 = arith.constant 16 : index
    %c0_191 = arith.constant 0 : index
    %231 = vector.load %arg13[%c16_190, %c0_191] : memref<72x512xf32, #tpu.memory_space<vmem>>, vector<4x512xf32>
    tpu.vector_store %arg13[%c16_190, %c0_191], %230 {strides = array<i32>} : memref<72x512xf32, #tpu.memory_space<vmem>>, vector<4x512xf32>,
    %c0_192 = arith.constant 0 : index
    %c129_193 = arith.constant 129 : index
    %232 = vector.load %arg12[%c0_192, %c129_193] : memref<8x768xf32, #tpu.memory_space<vmem>>, vector<4x512xf32>
    %c5_194 = arith.constant 5 : index
    %c0_195 = arith.constant 0 : index
    %233 = vector.load %arg9[%c5_194, %c0_195] : memref<9x512xf32, #tpu.memory_space<vmem>>, vector<1x512xf32>
    %234 = vector.broadcast %233 : vector<1x512xf32> to vector<4x512xf32>
    %235 = arith.mulf %234, %232 : vector<4x512xf32>
    %c20_196 = arith.constant 20 : index
    %c0_197 = arith.constant 0 : index
    %236 = vector.load %arg13[%c20_196, %c0_197] : memref<72x512xf32, #tpu.memory_space<vmem>>, vector<4x512xf32>
    tpu.vector_store %arg13[%c20_196, %c0_197], %235 {strides = array<i32>} : memref<72x512xf32, #tpu.memory_space<vmem>>, vector<4x512xf32>,
    %c0_198 = arith.constant 0 : index
    %c143_199 = arith.constant 143 : index
    %237 = vector.load %arg12[%c0_198, %c143_199] : memref<8x768xf32, #tpu.memory_space<vmem>>, vector<4x512xf32>
    %c6_200 = arith.constant 6 : index
    %c0_201 = arith.constant 0 : index
    %238 = vector.load %arg9[%c6_200, %c0_201] : memref<9x512xf32, #tpu.memory_space<vmem>>, vector<1x512xf32>
    %239 = vector.broadcast %238 : vector<1x512xf32> to vector<4x512xf32>
    %240 = arith.mulf %239, %237 : vector<4x512xf32>
    %c24_202 = arith.constant 24 : index
    %c0_203 = arith.constant 0 : index
    %241 = vector.load %arg13[%c24_202, %c0_203] : memref<72x512xf32, #tpu.memory_space<vmem>>, vector<4x512xf32>
    tpu.vector_store %arg13[%c24_202, %c0_203], %240 {strides = array<i32>} : memref<72x512xf32, #tpu.memory_space<vmem>>, vector<4x512xf32>,
    %c0_204 = arith.constant 0 : index
    %c144_205 = arith.constant 144 : index
    %242 = vector.load %arg12[%c0_204, %c144_205] : memref<8x768xf32, #tpu.memory_space<vmem>>, vector<4x512xf32>
    %c7_206 = arith.constant 7 : index
    %c0_207 = arith.constant 0 : index
    %243 = vector.load %arg9[%c7_206, %c0_207] : memref<9x512xf32, #tpu.memory_space<vmem>>, vector<1x512xf32>
    %244 = vector.broadcast %243 : vector<1x512xf32> to vector<4x512xf32>
    %245 = arith.mulf %244, %242 : vector<4x512xf32>
    %c28_208 = arith.constant 28 : index
    %c0_209 = arith.constant 0 : index
    %246 = vector.load %arg13[%c28_208, %c0_209] : memref<72x512xf32, #tpu.memory_space<vmem>>, vector<4x512xf32>
    tpu.vector_store %arg13[%c28_208, %c0_209], %245 {strides = array<i32>} : memref<72x512xf32, #tpu.memory_space<vmem>>, vector<4x512xf32>,
    %c0_210 = arith.constant 0 : index
    %c145_211 = arith.constant 145 : index
    %247 = vector.load %arg12[%c0_210, %c145_211] : memref<8x768xf32, #tpu.memory_space<vmem>>, vector<4x512xf32>
    %c8_212 = arith.constant 8 : index
    %c0_213 = arith.constant 0 : index
    %248 = vector.load %arg9[%c8_212, %c0_213] : memref<9x512xf32, #tpu.memory_space<vmem>>, vector<1x512xf32>
    %249 = vector.broadcast %248 : vector<1x512xf32> to vector<4x512xf32>
    %250 = arith.mulf %249, %247 : vector<4x512xf32>
    %c32_214 = arith.constant 32 : index
    %c0_215 = arith.constant 0 : index
    %251 = vector.load %arg13[%c32_214, %c0_215] : memref<72x512xf32, #tpu.memory_space<vmem>>, vector<4x512xf32>
    tpu.vector_store %arg13[%c32_214, %c0_215], %250 {strides = array<i32>} : memref<72x512xf32, #tpu.memory_space<vmem>>, vector<4x512xf32>,
    %c0_216 = arith.constant 0 : index
    %c0_217 = arith.constant 0 : index
    %252 = vector.load %arg5[%c0_216, %c0_217] : memref<4x36xf32, #tpu.memory_space<vmem>>, vector<4x36xf32>
    %c0_218 = arith.constant 0 : index
    %c0_219 = arith.constant 0 : index
    %253 = vector.load %arg13[%c0_218, %c0_219] : memref<72x512xf32, #tpu.memory_space<vmem>>, vector<36x512xf32>
    %cst_220 = arith.constant dense<0.000000e+00> : vector<4x512xf32>
    %254 = tpu.matmul %252, %253, %cst_220 {dimension_numbers = #tpu.dot_dimension_numbers<[1], [0], [0], [1], [0, 0, 1, 1], [], []>} : vector<4x36xf32>, vector<36x512xf32>, vector<4x512xf32> -> vector<4x512xf32>
    %cst_221 = arith.constant dense<0.000000e+00> : vector<4xf32>
    %255 = vector.multi_reduction <add>, %254, %cst_221 [1] : vector<4x512xf32> to vector<4xf32>
    %256 = vector.shape_cast %255 : vector<4xf32> to vector<4x1xf32>
    %cst_222 = arith.constant 0.001953125 : f32
    %257 = vector.broadcast %cst_222 : f32 to vector<4x1xf32>
    %258 = arith.mulf %256, %257 : vector<4x1xf32>
    %259 = vector.broadcast %258 : vector<4x1xf32> to vector<4x512xf32>
    %260 = arith.subf %254, %259 : vector<4x512xf32>
    %261 = arith.mulf %260, %260 : vector<4x512xf32>
    %cst_223 = arith.constant dense<0.000000e+00> : vector<4xf32>
    %262 = vector.multi_reduction <add>, %261, %cst_223 [1] : vector<4x512xf32> to vector<4xf32>
    %263 = vector.shape_cast %262 : vector<4xf32> to vector<4x1xf32>
    %cst_224 = arith.constant 0.001953125 : f32
    %264 = vector.broadcast %cst_224 : f32 to vector<4x1xf32>
    %265 = arith.mulf %263, %264 : vector<4x1xf32>
    %c0_225 = arith.constant 0 : index
    %c0_226 = arith.constant 0 : index
    %266 = vector.load %arg6[%c0_225, %c0_226] : memref<4x2xf32, #tpu.memory_space<vmem>>, vector<4x1xf32>
    %cst_227 = arith.constant 9.99999974E-6 : f32
    %267 = vector.broadcast %cst_227 : f32 to vector<4x1xf32>
    %268 = arith.addf %265, %267 : vector<4x1xf32>
    %269 = math.rsqrt %268 : vector<4x1xf32>
    %270 = arith.mulf %266, %269 : vector<4x1xf32>
    %271 = vector.broadcast %270 : vector<4x1xf32> to vector<4x512xf32>
    %272 = arith.mulf %260, %271 : vector<4x512xf32>
    %c0_228 = arith.constant 0 : index
    %c1_229 = arith.constant 1 : index
    %273 = vector.load %arg6[%c0_228, %c1_229] : memref<4x2xf32, #tpu.memory_space<vmem>>, vector<4x1xf32>
    %274 = vector.broadcast %273 : vector<4x1xf32> to vector<4x512xf32>
    %275 = arith.addf %272, %274 : vector<4x512xf32>
    %cst_230 = arith.constant 0.000000e+00 : f32
    %276 = vector.broadcast %cst_230 : f32 to vector<4x512xf32>
    %277 = arith.maximumf %275, %276 : vector<4x512xf32>
    %c4_231 = arith.constant 4 : index
    %c0_232 = arith.constant 0 : index
    %278 = vector.load %arg11[%c4_231, %c0_232] : memref<8x512xf32, #tpu.memory_space<vmem>>, vector<4x512xf32>
    tpu.vector_store %arg11[%c4_231, %c0_232], %277 {strides = array<i32>} : memref<8x512xf32, #tpu.memory_space<vmem>>, vector<4x512xf32>,
    return
  }
}

</mosaic_0001>

<bundles_post_ra>
// kernel: edge_aware_unit_forward.1
= control target key start
LH: loop header
LB: loop body
LE: loop exit
PB: predicated region body
PF: predicated region fallthrough
CT: control target
= control target key end

     0   :  { %v2454_v0 = vmov 0.0   ;;  %s2455_s21 = smov 112   ;;  %s2457_s22 = smov 127   ;;  %vm317_vm0 = vcmask 1039360   ;;  %vm485_vm1 = vcmask 908288   ;;  %vm425_vm2 = vcmask 916480   ;;  %s3529_s0 = inlined_call_operand.vmem [shape: f32[4,512], index: 0, kind: input, shape index: {}]   ;;  %s3530_s9 = inlined_call_operand.vmem [shape: f32[9,512], index: 9, kind: input, shape index: {}]   ;;  %s3531_s7 = inlined_call_operand.vmem [shape: f32[4,36], index: 7, kind: input, shape index: {}]   ;;  %s3532_s1 = inlined_call_operand.vmem [shape: f32[8,4], index: 1, kind: input, shape index: {}]   ;;  %s3533_s2 = inlined_call_operand.vmem [shape: f32[8,2], index: 2, kind: input, shape index: {}]   ;;  %s3534_s3 = inlined_call_operand.vmem [shape: f32[4,72], index: 3, kind: input, shape index: {}]   ;;  %s3535_s4 = inlined_call_operand.vmem [shape: f32[4,2], index: 4, kind: input, shape index: {}, may-alias: {4,6,8}]   ;;  %s3536_s10 = inlined_call_operand.vmem [shape: f32[8,512], index: 10, kind: input, shape index: {}]   ;;  %s3537_s5 = inlined_call_operand.vmem [shape: f32[4,36], index: 5, kind: input, shape index: {}]   ;;  %s3538_s8 = inlined_call_operand.vmem [shape: f32[4,2], index: 8, kind: input, shape index: {}, may-alias: {4,6,8}]   ;;  %s3539_s6 = inlined_call_operand.vmem [shape: f32[4,2], index: 6, kind: input, shape index: {}, may-alias: {4,6,8}]   ;;  %s3540_s11 = inlined_call_operand.vmem [shape: f32[8,512], index: 11, kind: output, shape index: {}]  }
   0x1   :  { %43 = vst [vmem:[#allocation2 + $0x20] sm:$0xff] %v2454_v0  ;;  %v45_v1 = vld [vmem:[%s3529_s0 + $0x8] sm:$0xff]  ;;  %v44_v2 = vld [vmem:[%s3529_s0] sm:$0xff]  ;;  %s2456_s0 = smov 111   ;;  %s2458_s23 = smov 113   ;;  %vm377_vm3 = vcmask 924672  }
   0x2   :  { %38 = vst [vmem:[#allocation2 + $0x28] sm:$0xff] %v2454_v0  ;;  %s2459_s24 = smov 1   ;;  %s2460_s25 = smov 15   ;;  %v2580_v47 = vld [vmem:[%s3530_s9 + $0x5] ss:$8 sm:$0xf] }
   0x3   :  { %39 = vst [vmem:[#allocation2 + $0x10] sm:$0xff] %v2454_v0  ;;  %s2461_s26 = smov 16   ;;  %s2462_s27 = smov 17   ;;  %v296_v49 = vperm.slane %v2580_v47, 2  ;;  %vm527_vm4 = vcmask 1043456   ;;  %vm249_vm5 = vcmask 7168  }
   0x4   :  { %40 = vst [vmem:[#allocation2 + $0x8] sm:$0xff] %v2454_v0  ;;  %v2601_v60 = vld [vmem:[%s3530_s9 + $0x20] ss:$8 sm:$0xf]  ;;  %vm141_vm6 = vcmask 130048   ;;  %vm201_vm7 = vcmask 121856  }
   0x5   :  { %41 = vst [vmem:[#allocation2] sm:$0xff] %v2454_v0  ;;  %v2606_v61 = vld [vmem:[%s3530_s9 + $0x7] ss:$8 sm:$0xf]  ;;  %v464_v62 = vperm.slane %v2601_v60, 2  ;;  %vm93_vm8 = vcmask 138240  }
   0x6   :  { %42 = vst [vmem:[#allocation2 + $0x18] sm:$0xff] %v2454_v0  ;;  %v404_v63 = vperm.slane %v2606_v61, 2  ;;  %vm523_vm9 = vcmask 293888   ;;  %vm695_vm10 = vcmask 31744   ;;  %vm1259_vm14 = vcmask 588800   ;;  %s2466_s20 = smov 126  }
   0x7   :  { %50 = vst [vmem:[#allocation1 + $0x10] ss:$2 sm:$0xff] %v45_v1 }
   0x8   :  { %v398_v3 = vld [vmem:[#allocation2 + $0x20] sm:$0xf]  ;;  %48 = vst [vmem:[#allocation1] ss:$2 sm:$0xff] %v44_v2 }
   0x9   :  { %423 = vrot.lane.b32.xlu2 %v398_v3, %s2455_s21  ;;  %v458_v17 = vld [vmem:[#allocation2 + $0x20] sm:$0xf]  ;;  %v218_v39 = vld [vmem:[#allocation2 + $0x28] sm:$0xf]  ;;  %v463_v3 = vperm.slane %v2601_v60, 1 }
   0xa   :  { %v290_v20 = vld [vmem:[#allocation2 + $0x20] sm:$0xf]  ;;  %v110_v43 = vld [vmem:[#allocation2 + $0x28] sm:$0xf] }
   0xb   :  { %v350_v21 = vld [vmem:[#allocation2 + $0x20] sm:$0xf]  ;;  %v170_v45 = vld [vmem:[#allocation2 + $0x28] sm:$0xf] }
   0xc   :  { %v63_v48 = vld [vmem:[#allocation2 + $0x28] sm:$0xf] }
   0xe   :  { %v53_v4 = vld.sshfl [vmem:[#allocation1 + $0x10] sm:$0xff pattern:$0x75316420]  ;;  %v54_v5 = vld.sshfl [vmem:[#allocation1 + $0x18] sm:$0xff pattern:$0x75316420] }
   0xf   :  { %61 = vst [vmem:[#allocation2] sm:$0xf] %v53_v4  ;;  %v52_v6 = vld.sshfl [vmem:[#allocation1 + $0x8] sm:$0xff pattern:$0x75316420] }
  0x10   :  { %62 = vst [vmem:[#allocation2 + $0x18] sm:$0xf] %v54_v5  ;;  %v51_v7 = vld.sshfl [vmem:[#allocation1] sm:$0xff pattern:$0x75316420] }
  0x11   :  { %690 = vst [vmem:[#allocation1 + $0x10] ss:$2 sm:$0xff] %v45_v1  ;;  %v405_v1 = vperm.slane %v2606_v61, 3 }
  0x12   :  { %60 = vst [vmem:[#allocation2 + $0x8] sm:$0xf] %v52_v6 }
  0x13   :  { %59 = vst [vmem:[#allocation2 + $0x10] sm:$0xf] %v51_v7 }
  0x14   :  { %688 = vst [vmem:[#allocation1] ss:$2 sm:$0xff] %v44_v2 }
  0x16   :  { %v456_v8 = vld [vmem:[#allocation2] sm:$0xf] }
  0x17   :  { %v396_v9 = vld [vmem:[#allocation2] sm:$0xf]  ;;  %479 = vrot.lane.b32.xlu1 %v456_v8, %s2456_s0  ;;  %v457_v11 = vld [vmem:[#allocation2 + $0x18] sm:$0xf] }
  0x18   :  { %v288_v10 = vld [vmem:[#allocation2] sm:$0xf]  ;;  %419 = vrot.lane.b32.xlu0 %v396_v9, %s2455_s21  ;;  %v397_v12 = vld [vmem:[#allocation2 + $0x18] sm:$0xf] }
  0x19   :  { %311 = vrot.lane.b32.xlu2 %v288_v10, %s2457_s22  ;;  %v289_v13 = vld [vmem:[#allocation2 + $0x18] sm:$0xf]  ;;  %v348_v15 = vld [vmem:[#allocation2] sm:$0xf]  ;;  %v220_v18 = vld [vmem:[#allocation2 + $0x8] sm:$0xf] }
  0x1a   :  { %v349_v14 = vld [vmem:[#allocation2 + $0x18] sm:$0xf]  ;;  %v221_v16 = vld [vmem:[#allocation2] sm:$0xf]  ;;  %v394_v19 = vld [vmem:[#allocation2 + $0x10] sm:$0xf] }
  0x1b   :  { %v455_v22 = vld [vmem:[#allocation2 + $0x8] sm:$0xf]  ;;  %v454_v24 = vld [vmem:[#allocation2 + $0x10] sm:$0xf]  ;;  %v113_v27 = vld [vmem:[#allocation2] sm:$0xf] }
  0x1c   :  { %v395_v23 = vld [vmem:[#allocation2 + $0x8] sm:$0xf]  ;;  %v286_v28 = vld [vmem:[#allocation2 + $0x10] sm:$0xf]  ;;  %v173_v29 = vld [vmem:[#allocation2] sm:$0xf] }
  0x1d   :  { %v172_v25 = vld [vmem:[#allocation2 + $0x8] sm:$0xf]  ;;  %v222_v30 = vld [vmem:[#allocation2 + $0x18] sm:$0xf]  ;;  %v346_v33 = vld [vmem:[#allocation2 + $0x10] sm:$0xf] }
  0x1e   :  { %v112_v26 = vld [vmem:[#allocation2 + $0x8] sm:$0xf]  ;;  %v114_v34 = vld [vmem:[#allocation2 + $0x18] sm:$0xf]  ;;  %v66_v36 = vld [vmem:[#allocation2] sm:$0xf] }
  0x1f   :  { %481 = vrot.lane.b32.xlu1 %v457_v11, %s2456_s0  ;;  %v347_v31 = vld [vmem:[#allocation2 + $0x8] sm:$0xf]  ;;  %v219_v37 = vld [vmem:[#allocation2 + $0x10] sm:$0xf]  ;;  %v174_v38 = vld [vmem:[#allocation2 + $0x18] sm:$0xf] }
  0x20   :  { %421 = vrot.lane.b32.xlu0 %v397_v12, %s2455_s21  ;;  %v287_v32 = vld [vmem:[#allocation2 + $0x8] sm:$0xf]  ;;  %v111_v40 = vld [vmem:[#allocation2 + $0x10] sm:$0xf]  ;;  %v67_v42 = vld [vmem:[#allocation2 + $0x18] sm:$0xf] }
  0x21   :  { %313 = vrot.lane.b32.xlu2 %v289_v13, %s2457_s22  ;;  %v65_v35 = vld [vmem:[#allocation2 + $0x8] sm:$0xf]  ;;  %v171_v46 = vld [vmem:[#allocation2 + $0x10] sm:$0xf]  ;;  %v280_v55 = vld [vmem:[#allocation2] sm:$0xf] }
  0x22   :  { %v64_v53 = vld [vmem:[#allocation2 + $0x10] sm:$0xf]  ;;  %284 = vst [vmem:[#allocation3 + $0x50] sm:$0xf] %v280_v55  ;;  %v281_v2 = vld [vmem:[#allocation2 + $0x18] sm:$0xf] }
  0x23   :  { %285 = vst [vmem:[#allocation3] sm:$0xf] %v281_v2 }
  0x27   :  { %373 = vrot.lane.b32.xlu1 %v349_v14, %s2458_s23 }
  0x28   :  { %371 = vrot.lane.b32.xlu0 %v348_v15, %s2458_s23  ;;  %v2623_v15 = vld [vmem:[%s3530_s9 + $0x6] ss:$8 sm:$0xf] }
  0x29   :  { %245 = vrot.lane.b32.xlu2 %v221_v16, %s2459_s24 }
  0x2f   :  { %243 = vrot.lane.b32.xlu1 %v220_v18, %s2459_s24  ;;  %v356_v18 = vperm.slane %v2623_v15, 2 }
  0x30   :  { %483 = vrot.lane.b32.xlu0 %v458_v17, %s2456_s0 }
  0x31   :  { %415 = vrot.lane.b32.xlu2 %v394_v19, %s2455_s21 }
  0x37   :  { %375 = vrot.lane.b32.xlu1 %v350_v21, %s2458_s23 }
  0x38   :  { %315 = vrot.lane.b32.xlu0 %v290_v20, %s2457_s22 }
  0x39   :  { %477 = vrot.lane.b32.xlu2 %v455_v22, %s2456_s0 }
  0x3f   :  { %475 = vrot.lane.b32.xlu1 %v454_v24, %s2456_s0 }
  0x40   :  { %417 = vrot.lane.b32.xlu0 %v395_v23, %s2455_s21 }
  0x41   :  { %195 = vrot.lane.b32.xlu2 %v172_v25, %s2460_s25  ;;  %v2632_v25 = vld [vmem:[%s3530_s9 + $0x3] ss:$8 sm:$0xf] }
  0x47   :  { %137 = vrot.lane.b32.xlu1 %v113_v27, %s2461_s26  ;;  %v465_v27 = vperm.slane %v2601_v60, 3 }
  0x48   :  { %135 = vrot.lane.b32.xlu0 %v112_v26, %s2461_s26 }
  0x49   :  { %307 = vrot.lane.b32.xlu2 %v286_v28, %s2457_s22  ;;  %v228_v28 = vperm.slane %v2632_v25, 2 }
  0x4f   :  { %247 = vrot.lane.b32.xlu1 %v222_v30, %s2459_s24 }
  0x50   :  { %197 = vrot.lane.b32.xlu0 %v173_v29, %s2460_s25 }
  0x51   :  { %369 = vrot.lane.b32.xlu2 %v347_v31, %s2458_s23 }
  0x57   :  { %367 = vrot.lane.b32.xlu1 %v346_v33, %s2458_s23 }
  0x58   :  { %309 = vrot.lane.b32.xlu0 %v287_v32, %s2457_s22 }
  0x59   :  { %139 = vrot.lane.b32.xlu2 %v114_v34, %s2461_s26 }
  0x5f   :  { %89 = vrot.lane.b32.xlu1 %v66_v36, %s2462_s27 }
  0x60   :  { %87 = vrot.lane.b32.xlu0 %v65_v35, %s2462_s27 }
  0x61   :  { %241 = vrot.lane.b32.xlu2 %v219_v37, %s2459_s24 }
  0x63   :  { %v424_v41 = vpop.permute.xlu2 %423 }
  0x67   :  { %239 = vrot.lane.b32.xlu1 %v218_v39, %s2459_s24  ;;  %v297_v39 = vperm.slane %v2580_v47, 3 }
  0x68   :  { %199 = vrot.lane.b32.xlu0 %v174_v38, %s2460_s25 }
  0x69   :  { %133 = vrot.lane.b32.xlu2 %v111_v40, %s2461_s26  ;;  %v357_v40 = vperm.slane %v2623_v15, 3 }
  0x6f   :  { %131 = vrot.lane.b32.xlu1 %v110_v43, %s2461_s26 }
  0x70   :  { %91 = vrot.lane.b32.xlu0 %v67_v42, %s2462_s27 }
  0x71   :  { %83 = vrot.lane.b32.xlu2 %v63_v48, %s2462_s27 }
  0x73   :  { %v2575_v44 = vpop.permute.xlu2 %311 }
  0x77   :  { %193 = vrot.lane.b32.xlu1 %v171_v46, %s2460_s25 }
  0x78   :  { %191 = vrot.lane.b32.xlu0 %v170_v45, %s2460_s25 }
  0x7b   :  { %v2586_v50 = vpop.permute.xlu2 %313 }
  0x7c   :  { %v320_v51 = vsel %vm317_vm0, %v2575_v44, %v2586_v50 }
  0x7d   :  { %v328_v52 = vmul.f32 %v320_v51, %v296_v49 }
  0x7f   :  { %v336_v54 = vrot.slane %v328_v52, 4 }
  0x80   :  { %85 = vrot.lane.b32.xlu0 %v64_v53, %s2462_s27 }
  0x81   :  { %344 = vst [vmem:[#allocation3 + $0x50] sm:$0xf0] %v336_v54 }
  0x83   :  { %v2592_v56 = vpop.permute.xlu2 %245 }
  0x88   :  { %v513_v37 = vld [vmem:[#allocation3 + $0x50] sm:$0xff] }
  0x89   :  { %v480_v57 = vpop.permute.xlu1 %479 }
  0x8a   :  { %v2594_v58 = vpop.permute.xlu0 %419 }
  0x8b   :  { %v2596_v59 = vpop.permute.xlu2 %415 }
  0x91   :  { %v482_v4 = vpop.permute.xlu1 %481 }
  0x92   :  { %v422_v5 = vpop.permute.xlu0 %421  ;;  %v488_v6 = vsel %vm485_vm1, %v480_v57, %v482_v4 }
  0x93   :  { %v428_v7 = vsel %vm425_vm2, %v2594_v58, %v422_v5  ;;  %v429_v8 = vsel %vm425_vm2, %v422_v5, %v424_v41  ;;  %v2616_v9 = vpop.permute.xlu2 %477  ;;  %v496_v10 = vmul.f32 %v488_v6, %v464_v62  ;;  %v355_v41 = vperm.slane %v2623_v15, 1 }
  0x94   :  { %v436_v11 = vmul.f32 %v428_v7, %v404_v63  ;;  %v437_v12 = vmul.f32 %v429_v8, %v405_v1  ;;  %v487_v13 = vsel %vm485_vm1, %v2616_v9, %v480_v57  ;;  %v402_v57 = vperm.slane %v2606_v61, 0  ;;  %v278_v63 = vld [vmem:[#allocation2 + $0x10] sm:$0xf]  ;;  %v279_v1 = vld [vmem:[#allocation2 + $0x8] sm:$0xf] }
  0x95   :  { %v495_v14 = vmul.f32 %v487_v13, %v463_v3  ;;  %500 = vst [vmem:[#allocation3 + $0xc0] sm:$0xf] %v496_v10  ;;  %v462_v62 = vperm.slane %v2601_v60, 0 }
  0x96   :  { %v444_v16 = vrot.slane %v436_v11, 4  ;;  %v445_v17 = vrot.slane %v437_v12, 4  ;;  %282 = vst [vmem:[#allocation3 + $0x28] sm:$0xf] %v278_v63 }
  0x97   :  { %499 = vst [vmem:[#allocation3 + $0x70] sm:$0xf] %v495_v14  ;;  %v2669_v11 = vld [vmem:[%s3530_s9 + $0x1] ss:$8 sm:$0xf]  ;;  %v227_v14 = vperm.slane %v2632_v25, 1 }
  0x98   :  { %452 = vst [vmem:[#allocation3 + $0xb0] sm:$0xf0] %v444_v16 }
  0x99   :  { %453 = vst [vmem:[#allocation3 + $0x78] sm:$0xf0] %v445_v17  ;;  %v374_v19 = vpop.permute.xlu1 %373 }
  0x9a   :  { %v372_v20 = vpop.permute.xlu0 %371  ;;  %283 = vst [vmem:[#allocation3 + $0xa8] sm:$0xf] %v279_v1 }
  0x9b   :  { %v380_v21 = vsel %vm377_vm3, %v372_v20, %v374_v19  ;;  %v2627_v22 = vpop.permute.xlu2 %195 }
  0x9c   :  { %v388_v23 = vmul.f32 %v380_v21, %v356_v18  ;;  %v521_v24 = vld [vmem:[#allocation3 + $0xc0] sm:$0xf] }
  0x9d   :  { %2365 = vmatpush.msk.msra.mxu2 %vm527_vm4, %v521_v24 }
  0x9e   :  { %392 = vst [vmem:[#allocation3 + $0xb0] sm:$0xf] %v388_v23  ;;  %v520_v26 = vld [vmem:[#allocation3 + $0x70] sm:$0xf] }
  0x9f   :  { %2363 = vmatpush.msk.msra.mxu1 %vm527_vm4, %v520_v26 }
  0xa1   :  { %v2638_v30 = vpop.permute.xlu1 %243 }
  0xa2   :  { %v484_v29 = vpop.permute.xlu0 %483  ;;  %v252_v32 = vsel %vm249_vm5, %v2638_v30, %v2592_v56 }
  0xa3   :  { %v489_v31 = vsel %vm485_vm1, %v482_v4, %v484_v29  ;;  %v2644_v33 = vpop.permute.xlu2 %307  ;;  %v260_v35 = vmul.f32 %v252_v32, %v228_v28 }
  0xa4   :  { %v497_v34 = vmul.f32 %v489_v31, %v465_v27  ;;  %v2684_v27 = vld [vmem:[%s3530_s9 + $0x2] ss:$8 sm:$0xf] }
  0xa5   :  { %v517_v36 = vld [vmem:[#allocation3 + $0xb0] sm:$0xff]  ;;  %v268_v38 = vrot.slane %v260_v35, 4  ;;  %v180_v35 = vperm.slane %v2684_v27, 2 }
  0xa6   :  { %501 = vst [vmem:[#allocation3 + $0x68] sm:$0xf] %v497_v34  ;;  %592 = vmatpush.msra.mxu2 %v517_v36  ;;  %v229_v36 = vperm.slane %v2632_v25, 3 }
  0xa7   :  { %276 = vst [vmem:[#allocation3 + $0x118] sm:$0xf0] %v268_v38 }
  0xa8   :  { %593 = vmatpush.msra.mxu2 %v513_v37 }
  0xa9   :  { %v376_v43 = vpop.permute.xlu1 %375 }
  0xaa   :  { %v316_v42 = vpop.permute.xlu0 %315  ;;  %v381_v46 = vsel %vm377_vm3, %v374_v19, %v376_v43 }
  0xab   :  { %v321_v45 = vsel %vm317_vm0, %v2586_v50, %v316_v42  ;;  %v2652_v48 = vpop.permute.xlu2 %369  ;;  %v389_v51 = vmul.f32 %v381_v46, %v357_v40  ;;  %v403_v50 = vperm.slane %v2606_v61, 1 }
  0xac   :  { %v329_v49 = vmul.f32 %v321_v45, %v297_v39  ;;  %v379_v52 = vsel %vm377_vm3, %v2652_v48, %v372_v20 }
  0xad   :  { %v387_v53 = vmul.f32 %v379_v52, %v355_v41  ;;  %v522_v54 = vld [vmem:[#allocation3 + $0x68] sm:$0xf]  ;;  %393 = vst [vmem:[#allocation3 + $0x78] sm:$0xf] %v389_v51  ;;  %v294_v52 = vperm.slane %v2580_v47, 0 }
  0xae   :  { %v337_v55 = vrot.slane %v329_v49, 4  ;;  %2367 = vmatpush.msk.msra.mxu3 %vm527_vm4, %v522_v54  ;;  %v354_v54 = vperm.slane %v2623_v15, 0 }
  0xaf   :  { %391 = vst [vmem:[#allocation3 + $0xf0] sm:$0xf] %v387_v53  ;;  %v295_v53 = vperm.slane %v2580_v47, 1  ;;  %v2710_v47 = vld [vmem:[%s3530_s9] ss:$8 sm:$0xf] }
  0xb0   :  { %345 = vst [vmem:[#allocation3] sm:$0xf0] %v337_v55 }
  0xb1   :  { %v476_v3 = vpop.permute.xlu1 %475 }
  0xb2   :  { %v418_v2 = vpop.permute.xlu0 %417  ;;  %v486_v6 = vsel %vm485_vm1, %v476_v3, %v2616_v9  ;;  %v121_v9 = vperm.slane %v2669_v11, 3 }
  0xb3   :  { %v426_v4 = vsel %vm425_vm2, %v2596_v59, %v418_v2  ;;  %v427_v5 = vsel %vm425_vm2, %v418_v2, %v2594_v58  ;;  %v140_v7 = vpop.permute.xlu2 %139  ;;  %v494_v10 = vmul.f32 %v486_v6, %v462_v62  ;;  %v120_v58 = vperm.slane %v2669_v11, 2 }
  0xb4   :  { %v434_v8 = vmul.f32 %v426_v4, %v402_v57  ;;  %v435_v61 = vmul.f32 %v427_v5, %v403_v50  ;;  %v518_v60 = vld [vmem:[#allocation3 + $0x78] sm:$0xff] }
  0xb5   :  { %498 = vst [vmem:[#allocation3 + $0x88] sm:$0xf] %v494_v10  ;;  %612 = vmatpush.msra.mxu3 %v518_v60  ;;  %v181_v10 = vperm.slane %v2684_v27, 3  ;;  %v226_v60 = vperm.slane %v2632_v25, 0 }
  0xb6   :  { %v442_v12 = vrot.slane %v434_v8, 4  ;;  %v443_v13 = vrot.slane %v435_v61, 4 }
  0xb7   :  { %v514_v59 = vld [vmem:[#allocation3] sm:$0xff] }
  0xb8   :  { %450 = vst [vmem:[#allocation3 + $0x108] sm:$0xf0] %v442_v12  ;;  %613 = vmatpush.msra.mxu3 %v514_v59 }
  0xb9   :  { %451 = vst [vmem:[#allocation3 + $0xf0] sm:$0xf0] %v443_v13  ;;  %v138_v17 = vpop.permute.xlu1 %137 }
  0xba   :  { %v136_v16 = vpop.permute.xlu0 %135  ;;  %v145_v19 = vsel %vm141_vm6, %v138_v17, %v140_v7 }
  0xbb   :  { %v144_v18 = vsel %vm141_vm6, %v136_v16, %v138_v17  ;;  %v2676_v20 = vpop.permute.xlu2 %241  ;;  %v153_v23 = vmul.f32 %v145_v19, %v121_v9  ;;  %v73_v19 = vperm.slane %v2710_v47, 3 }
  0xbc   :  { %v152_v21 = vmul.f32 %v144_v18, %v120_v58  ;;  %v251_v24 = vsel %vm249_vm5, %v2676_v20, %v2638_v30  ;;  %v519_v28 = vld [vmem:[#allocation3 + $0x88] sm:$0xf]  ;;  %v119_v30 = vperm.slane %v2669_v11, 1  ;;  %v693_v18 = vld.sshfl [vmem:[#allocation1 + $0x10] sm:$0xff pattern:$0x75316420] }
  0xbd   :  { %v259_v26 = vmul.f32 %v251_v24, %v227_v14  ;;  %v161_v31 = vrot.slane %v153_v23, 4  ;;  %2361 = vmatpush.msk.msra.mxu0 %vm527_vm4, %v519_v28 }
  0xbe   :  { %v160_v29 = vrot.slane %v152_v21, 4 }
  0xbf   :  { %v267_v32 = vrot.slane %v259_v26, 4  ;;  %169 = vst [vmem:[#allocation3 + $0xe0] sm:$0xf0] %v161_v31  ;;  %v687_v31 = vld [vmem:[%s3532_s1] sm:$0xff] }
  0xc0   :  { %168 = vst [vmem:[#allocation3 + $0xd8] sm:$0xf0] %v160_v29  ;;  %v516_v34 = vld [vmem:[#allocation3 + $0xf0] sm:$0xff] }
  0xc1   :  { %572 = vmatpush.msra.mxu1 %v516_v34  ;;  %275 = vst [vmem:[#allocation3 + $0xe8] sm:$0xf0] %v267_v32  ;;  %v248_v38 = vpop.permute.xlu1 %247 }
  0xc2   :  { %v198_v37 = vpop.permute.xlu0 %197  ;;  %v253_v40 = vsel %vm249_vm5, %v2592_v56, %v248_v38 }
  0xc3   :  { %v204_v39 = vsel %vm201_vm7, %v2627_v22, %v198_v37  ;;  %v2694_v41 = vpop.permute.xlu2 %133  ;;  %v261_v43 = vmul.f32 %v253_v40, %v229_v36 }
  0xc4   :  { %v212_v42 = vmul.f32 %v204_v39, %v180_v35  ;;  %v143_v45 = vsel %vm141_vm6, %v2694_v41, %v136_v16  ;;  %v2725_v16 = vld [vmem:[%s3531_s7] sm:$0xf]  ;;  %v179_v35 = vperm.slane %v2684_v27, 1 }
  0xc5   :  { %v151_v46 = vmul.f32 %v143_v45, %v119_v30  ;;  %v269_v49 = vrot.slane %v261_v43, 4  ;;  %v71_v45 = vperm.slane %v2710_v47, 1 }
  0xc6   :  { %216 = vst [vmem:[#allocation3 + $0x118] sm:$0xf] %v212_v42  ;;  %v694_v42 = vld.sshfl [vmem:[#allocation1 + $0x18] sm:$0xff pattern:$0x75316420] }
  0xc7   :  { %v159_v51 = vrot.slane %v151_v46, 4  ;;  %277 = vst [vmem:[#allocation3 + $0xd0] sm:$0xf0] %v269_v49 }
  0xc9   :  { %167 = vst [vmem:[#allocation3 + $0x18] sm:$0xf0] %v159_v51  ;;  %v368_v55 = vpop.permute.xlu1 %367 }
  0xca   :  { %v310_v56 = vpop.permute.xlu0 %309  ;;  %v378_v62 = vsel %vm377_vm3, %v368_v55, %v2652_v48  ;;  %v691_v55 = vld.sshfl [vmem:[#allocation1] sm:$0xff pattern:$0x75316420] }
  0xcb   :  { %v318_v57 = vsel %vm317_vm0, %v2644_v33, %v310_v56  ;;  %v319_v50 = vsel %vm317_vm0, %v310_v56, %v2575_v44  ;;  %v386_v2 = vmul.f32 %v378_v62, %v354_v54  ;;  %v72_v33 = vperm.slane %v2710_v47, 2  ;;  %v84_v43 = vpop.permute.xlu2 %83 }
  0xcc   :  { %v326_v63 = vmul.f32 %v318_v57, %v294_v52  ;;  %v327_v1 = vmul.f32 %v319_v50, %v295_v53  ;;  %v692_v50 = vld.sshfl [vmem:[#allocation1 + $0x8] sm:$0xff pattern:$0x75316420] }
  0xcd   :  { %v509_v3 = vld [vmem:[#allocation3 + $0x118] sm:$0xff]  ;;  %390 = vst [vmem:[#allocation3 + $0x108] sm:$0xf] %v386_v2 }
  0xce   :  { %v334_v15 = vrot.slane %v326_v63, 4  ;;  %v335_v4 = vrot.slane %v327_v1, 4  ;;  %594 = vmatpush.msra.mxu2 %v509_v3 }
  0xd0   :  { %342 = vst [vmem:[#allocation3 + $0x28] sm:$0xf0] %v334_v15 }
  0xd1   :  { %343 = vst [vmem:[#allocation3 + $0xa8] sm:$0xf0] %v335_v4  ;;  %v90_v48 = vpop.permute.xlu1 %89 }
  0xd2   :  { %v2713_v44 = vpop.permute.xlu0 %87 }
  0xd3   :  { %v96_v5 = vsel %vm93_vm8, %v2713_v44, %v90_v48 }
  0xd4   :  { %v104_v6 = vmul.f32 %v96_v5, %v72_v33  ;;  %v515_v7 = vld [vmem:[#allocation3 + $0x108] sm:$0xff] }
  0xd5   :  { %552 = vmatpush.msra.mxu0 %v515_v7 }
  0xd6   :  { %108 = vst [vmem:[#allocation3 + $0xd8] sm:$0xf] %v104_v6 }
  0xd7   :  { %v511_v8 = vld [vmem:[#allocation3 + $0x28] sm:$0xff] }
  0xd8   :  { %553 = vmatpush.msra.mxu0 %v511_v8  ;;  %v512_v61 = vld [vmem:[#allocation3 + $0xa8] sm:$0xff] }
  0xd9   :  { %573 = vmatpush.msra.mxu1 %v512_v61  ;;  %v240_v13 = vpop.permute.xlu1 %239 }
  0xda   :  { %v200_v12 = vpop.permute.xlu0 %199  ;;  %v250_v58 = vsel %vm249_vm5, %v240_v13, %v2676_v20  ;;  %v118_v20 = vperm.slane %v2669_v11, 0  ;;  %v178_v11 = vperm.slane %v2684_v27, 0  ;;  %v70_v27 = vperm.slane %v2710_v47, 0 }
  0xdb   :  { %v205_v59 = vsel %vm201_vm7, %v198_v37, %v200_v12  ;;  %v258_v14 = vmul.f32 %v250_v58, %v226_v60 }
  0xdc   :  { %v213_v9 = vmul.f32 %v205_v59, %v181_v10 }
  0xdd   :  { %v505_v17 = vld [vmem:[#allocation3 + $0xd8] sm:$0xff]  ;;  %v266_v25 = vrot.slane %v258_v14, 4 }
  0xde   :  { %217 = vst [vmem:[#allocation3 + $0xd0] sm:$0xf] %v213_v9  ;;  %595 = vmatpush.msra.mxu2 %v505_v17  ;;  %v807_v17 = vld [vmem:[%s3533_s2] sm:$0xff] }
  0xdf   :  { %2366 = vmatmul.msk.f32.vlgmr.msra.gmra.mxu2 %vm523_vm9, %v2725_v16  ;;  %274 = vst [vmem:[#allocation3 + $0x60] sm:$0xf0] %v266_v25 }
  0xe0   :  { %2373 = vmatpush.msk.msrb.mxu2 %vm527_vm4, %v693_v18  ;;  %v2464_v18 = vmov 0  }
  0xe1   :  { %v132_v23 = vpop.permute.xlu1 %131  ;;  %2442 = vset.pattern.permute.xlu1 %v2464_v18 }
  0xe2   :  { %v92_v21 = vpop.permute.xlu0 %91  ;;  %v142_v26 = vsel %vm141_vm6, %v132_v23, %v2694_v41 }
  0xe3   :  { %v97_v24 = vsel %vm93_vm8, %v90_v48, %v92_v21  ;;  %v150_v29 = vmul.f32 %v142_v26, %v118_v20 }
  0xe4   :  { %v105_v28 = vmul.f32 %v97_v24, %v73_v19 }
  0xe5   :  { %v510_v32 = vld [vmem:[#allocation3 + $0xd0] sm:$0xff]  ;;  %v158_v34 = vrot.slane %v150_v29, 4 }
  0xe6   :  { %109 = vst [vmem:[#allocation3 + $0xe0] sm:$0xf] %v105_v28  ;;  %614 = vmatpush.msra.mxu3 %v510_v32 }
  0xe7   :  { %2374 = vmatmul.msk.f32.vlgmr.msrb.gmra.mxu2 %vm695_vm10, %v687_v31  ;;  %166 = vst [vmem:[#allocation3 + $0x100] sm:$0xf0] %v158_v34 }
  0xe9   :  { %v194_v30 = vpop.permute.xlu1 %193 }
  0xea   :  { %v192_v36 = vpop.permute.xlu0 %191  ;;  %v203_v38 = vsel %vm201_vm7, %v194_v30, %v2627_v22 }
  0xeb   :  { %v202_v37 = vsel %vm201_vm7, %v192_v36, %v194_v30  ;;  %v211_v40 = vmul.f32 %v203_v38, %v179_v35 }
  0xec   :  { %v210_v39 = vmul.f32 %v202_v37, %v178_v11 }
  0xed   :  { %v506_v41 = vld [vmem:[#allocation3 + $0xe0] sm:$0xff]  ;;  %215 = vst [vmem:[#allocation3 + $0xe8] sm:$0xf] %v211_v40 }
  0xee   :  { %214 = vst [vmem:[#allocation3 + $0x60] sm:$0xf] %v210_v39  ;;  %615 = vmatpush.msra.mxu3 %v506_v41 }
  0xef   :  { %2368 = vmatmul.msk.f32.vlgmr.msra.gmra.mxu3 %vm523_vm9, %v2725_v16 }
  0xf0   :  { %2375 = vmatpush.msk.msrb.mxu3 %vm527_vm4, %v694_v42 }
  0xf2   :  { %v86_v46 = vpop.permute.xlu0 %85 }
  0xf3   :  { %v94_v22 = vsel %vm93_vm8, %v84_v43, %v86_v46  ;;  %v95_v49 = vsel %vm93_vm8, %v86_v46, %v2713_v44 }
  0xf4   :  { %v102_v51 = vmul.f32 %v94_v22, %v70_v27  ;;  %v103_v52 = vmul.f32 %v95_v49, %v71_v45  ;;  %v508_v54 = vld [vmem:[#allocation3 + $0xe8] sm:$0xff] }
  0xf5   :  { %v507_v53 = vld [vmem:[#allocation3 + $0x60] sm:$0xff]  ;;  %574 = vmatpush.msra.mxu1 %v508_v54 }
  0xf6   :  { %106 = vst [vmem:[#allocation3 + $0x100] sm:$0xf] %v102_v51  ;;  %554 = vmatpush.msra.mxu0 %v507_v53 }
  0xf7   :  { %107 = vst [vmem:[#allocation3 + $0x18] sm:$0xf] %v103_v52  ;;  %2376 = vmatmul.msk.f32.vlgmr.msrb.gmra.mxu3 %vm695_vm10, %v687_v31  ;;  %v2383_v52 = vld [vmem:[%s3530_s9 + $0x20] ss:$8 sm:$0xf] }
  0xf8   :  { %v1186_v53 = vperm.slane %v2383_v52, 3 }
  0xfd   :  { %v503_v56 = vld [vmem:[#allocation3 + $0x100] sm:$0xff] }
  0xfe   :  { %555 = vmatpush.msra.mxu0 %v503_v56  ;;  %v504_v57 = vld [vmem:[#allocation3 + $0x18] sm:$0xff] }
  0xff   :  { %575 = vmatpush.msra.mxu1 %v504_v57  ;;  %2362 = vmatmul.msk.f32.vlgmr.msra.gmra.mxu0 %vm523_vm9, %v2725_v16  ;;  %v2882_v57 = vld [vmem:[%s3530_s9 + $0x6] ss:$8 sm:$0xf] }
 0x100   :  { %2364 = vmatmul.msk.f32.vlgmr.msra.gmra.mxu1 %vm523_vm9, %v2725_v16  ;;  %2369 = vmatpush.msk.msrb.mxu0 %vm527_vm4, %v691_v55  ;;  %v2463_v16 = vmov 1  }
 0x101   :  { %2371 = vmatpush.msk.msrb.mxu1 %vm527_vm4, %v692_v50  ;;  %2423 = vset.pattern.permute.xlu0 %v2463_v16 }
 0x102   :  { %2425 = vset.pattern.permute.xlu2 %v2463_v16  ;;  %831 = vperm.xlu0 %2423, %v807_v17  }
 0x107   :  { %2370 = vmatmul.msk.f32.vlgmr.msrb.gmra.mxu0 %vm695_vm10, %v687_v31 }
 0x108   :  { %2372 = vmatmul.msk.f32.vlgmr.msrb.gmra.mxu1 %vm695_vm10, %v687_v31 }
 0x10a   :  { %1204 = vrot.lane.b32.xlu0 %v2454_v0, %s2456_s0 }
 0x10b   :  { %2424 = vset.pattern.permute.xlu0 %v2464_v18 }
 0x162   :  { %v2761_v62 = vpop.f32.mrf.mxu2 }
 0x16a   :  { %v764_v15 = vpop.f32.mrf.mxu2 }
 0x172   :  { %v2767_v2 = vpop.f32.mrf.mxu3 }
 0x174   :  { %v832_v32 = vpop.permute.xlu0 %831 }
 0x17a   :  { %v784_v33 = vpop.f32.mrf.mxu3 }
 0x17c   :  { %v2763_v63 = vpop.f32.mrf.mxu0  ;;  %v1205_v34 = vpop.permute.xlu0 %1204 }
 0x17d   :  { %v2765_v1 = vpop.f32.mrf.mxu1 }
 0x184   :  { %v724_v3 = vpop.f32.mrf.mxu0 }
 0x185   :  { %v744_v47 = vpop.f32.mrf.mxu1 }
 0x186   :  { %v787_v4 = vadd.f32 %v744_v47, %v724_v3 }
 0x188   :  { %v788_v44 = vadd.f32 %v787_v4, %v764_v15 }
 0x18a   :  { %v789_v48 = vadd.f32 %v788_v44, %v784_v33 }
 0x18c   :  { %790 = vadd.xlane.f32.xlu1 %v789_v48 }
 0x1a5   :  { %1158 = vrot.lane.b32.xlu1 %v2454_v0, %s2455_s21 }
 0x1ad   :  { %1004 = vrot.lane.b32.xlu1 %v2454_v0, %s2459_s24 }
 0x1ff   :  { %v791_v5 = vpop.xlane.xlu1 %790 }
 0x200   :  { %v792_v6 = vmul.f32 0.001953125, %v791_v5  ;;  %v1184_v5 = vperm.slane %v2383_v52, 1 }
 0x202   :  { %v793_v7 = vsub.f32 %v724_v3, %v792_v6  ;;  %v794_v8 = vsub.f32 %v744_v47, %v792_v6  ;;  %v795_v61 = vsub.f32 %v764_v15, %v792_v6  ;;  %v796_v10 = vsub.f32 %v784_v33, %v792_v6  ;;  %v2453_v33 = vld [vmem:[#allocation2 + $0x20] sm:$0xff] }
 0x203   :  { %v1094_v3 = vperm.slane %v2882_v57, 3  ;;  %v1185_v6 = vperm.slane %v2383_v52, 2 }
 0x204   :  { %v797_v60 = vmul.f32 %v793_v7, %v793_v7  ;;  %v798_v12 = vmul.f32 %v794_v8, %v794_v8  ;;  %v799_v13 = vmul.f32 %v795_v61, %v795_v61  ;;  %v800_v58 = vmul.f32 %v796_v10, %v796_v10 }
 0x206   :  { %v801_v59 = vadd.f32 %v798_v12, %v797_v60 }
 0x208   :  { %v802_v9 = vadd.f32 %v801_v59, %v799_v13  ;;  %v2900_v59 = vld [vmem:[%s3530_s9 + $0x7] ss:$8 sm:$0xf] }
 0x20a   :  { %v803_v14 = vadd.f32 %v802_v9, %v800_v58  ;;  %v2905_v58 = vld [vmem:[%s3530_s9 + $0x5] ss:$8 sm:$0xf]  ;;  %v1139_v9 = vperm.slane %v2900_v59, 2 }
 0x20c   :  { %804 = vadd.xlane.f32.xlu2 %v803_v14  ;;  %v1140_v14 = vperm.slane %v2900_v59, 3 }
 0x217   :  { %v1159_v50 = vpop.permute.xlu1 %1158 }
 0x21f   :  { %v2889_v44 = vpop.permute.xlu1 %1004 }
 0x224   :  { %1112 = vrot.lane.b32.xlu2 %v2454_v0, %s2458_s23 }
 0x22c   :  { %1066 = vrot.lane.b32.xlu2 %v2454_v0, %s2457_s22 }
 0x234   :  { %958 = vrot.lane.b32.xlu2 %v2454_v0, %s2460_s25 }
 0x23c   :  { %912 = vrot.lane.b32.xlu2 %v2454_v0, %s2461_s26 }
 0x27f   :  { %v805_v25 = vpop.xlane.xlu2 %804 }
 0x280   :  { %v806_v19 = vmul.f32 0.001953125, %v805_v25 }
 0x282   :  { %v808_v20 = vadd.f32 1e-05, %v806_v19 }
 0x284   :  { %2445 = vrsqrt.f32 %v808_v20  ;;  %vm815_vm12 = vweird.f32 %v808_v20 }
 0x287   :  { %v1113_v46 = vpop.permute.xlu2 %1112 }
 0x28a   :  { %v2446_v21 = vpop.eup %2445 }
 0x28b   :  { %v810_v23 = vmul.f32 %v2446_v21, %v808_v20  ;;  %vm816_vm11 = vweird.f32 %v2446_v21 }
 0x28c   :  { %vm817_vm13 = vmor %vm815_vm12, %vm816_vm11  ;;  %vm1514_vm12 = vcmask 15360  }
 0x28d   :  { %v811_v24 = vmul.f32 %v2446_v21, %v810_v23 }
 0x28f   :  { %v812_v26 = vmul.f32 0.5, %v811_v24  ;;  %v2855_v22 = vpop.permute.xlu2 %1066 }
 0x291   :  { %v813_v28 = vsub.f32 1.5, %v812_v26 }
 0x293   :  { %v814_v29 = vmul.f32 %v2446_v21, %v813_v28 }
 0x295   :  { %v818_v31 = vsel %vm817_vm13, %v2446_v21, %v814_v29  ;;  %vm1636_vm13 = vcmask 1031168  }
 0x296   :  { %v819_v0 = vmul.f32 %v818_v31, %v807_v17  ;;  %v1046_v17 = vperm.slane %v2905_v58, 1  ;;  %v1093_v31 = vperm.slane %v2882_v57, 2 }
 0x297   :  { %v2863_v49 = vpop.permute.xlu2 %958 }
 0x298   :  { %822 = vperm.xlu0 %2424, %v819_v0  }
 0x29f   :  { %v2871_v51 = vpop.permute.xlu2 %912 }
 0x2a0   :  { %2443 = vset.pattern.permute.xlu0 %v2463_v16 }
 0x30a   :  { %v823_v11 = vpop.permute.xlu0 %822 }
 0x30b   :  { %v825_v35 = vmul.f32 %v823_v11, %v793_v7  ;;  %v826_v36 = vmul.f32 %v823_v11, %v794_v8  ;;  %v827_v30 = vmul.f32 %v823_v11, %v795_v61  ;;  %v828_v37 = vmul.f32 %v823_v11, %v796_v10 }
 0x30d   :  { %v834_v38 = vadd.f32 %v832_v32, %v825_v35  ;;  %v835_v39 = vadd.f32 %v832_v32, %v826_v36  ;;  %v836_v40 = vadd.f32 %v832_v32, %v827_v30  ;;  %v837_v41 = vadd.f32 %v832_v32, %v828_v37 }
 0x30e   :  { %v1183_v36 = vperm.slane %v2383_v52, 0 }
 0x30f   :  { %v2791_v42 = vmax.f32 %v834_v38, 0.0  ;;  %v2793_v43 = vmax.f32 %v835_v39, 0.0  ;;  %v2795_v27 = vmax.f32 %v836_v40, 0.0  ;;  %v2797_v45 = vmax.f32 %v837_v41, 0.0 }
 0x310   :  { %v2927_v41 = vld [vmem:[%s3530_s9 + $0x3] ss:$8 sm:$0xf] }
 0x311   :  { %842 = vst [vmem:[#allocation2 + $0x10] sm:$0xff] %v2791_v42  ;;  %1202 = vrot.lane.b32.xlu2 %v2797_v45, %s2456_s0  ;;  %1200 = vrot.lane.b32.xlu0 %v2795_v27, %s2456_s0  ;;  %v994_v52 = vperm.slane %v2927_v41, 3 }
 0x312   :  { %843 = vst [vmem:[#allocation2 + $0x8] sm:$0xff] %v2793_v43  ;;  %1154 = vrot.lane.b32.xlu1 %v2795_v27, %s2455_s21 }
 0x313   :  { %844 = vst [vmem:[#allocation2] sm:$0xff] %v2795_v27 }
 0x314   :  { %845 = vst [vmem:[#allocation2 + $0x18] sm:$0xff] %v2797_v45 }
 0x315   :  { %1036 = vst [vmem:[#allocation3 + $0xc0] sm:$0xff] %v2795_v27 }
 0x316   :  { %1037 = vst [vmem:[#allocation3 + $0x68] sm:$0xff] %v2797_v45 }
 0x317   :  { %1035 = vst [vmem:[#allocation3 + $0x70] sm:$0xff] %v2793_v43 }
 0x318   :  { %1034 = vst [vmem:[#allocation3 + $0x88] sm:$0xff] %v2791_v42 }
 0x319   :  { %1110 = vrot.lane.b32.xlu2 %v2797_v45, %s2458_s23  ;;  %1156 = vrot.lane.b32.xlu0 %v2797_v45, %s2455_s21 }
 0x31a   :  { %1062 = vrot.lane.b32.xlu1 %v2795_v27, %s2457_s22 }
 0x321   :  { %1108 = vrot.lane.b32.xlu0 %v2795_v27, %s2458_s23  ;;  %1198 = vrot.lane.b32.xlu2 %v2793_v43, %s2456_s0 }
 0x322   :  { %1150 = vrot.lane.b32.xlu1 %v2791_v42, %s2455_s21 }
 0x329   :  { %1008 = vrot.lane.b32.xlu2 %v2793_v43, %s2459_s24  ;;  %1196 = vrot.lane.b32.xlu0 %v2791_v42, %s2456_s0 }
 0x32a   :  { %1104 = vrot.lane.b32.xlu1 %v2791_v42, %s2458_s23 }
 0x331   :  { %1060 = vrot.lane.b32.xlu2 %v2793_v43, %s2457_s22  ;;  %1064 = vrot.lane.b32.xlu0 %v2797_v45, %s2457_s22 }
 0x332   :  { %1010 = vrot.lane.b32.xlu1 %v2795_v27, %s2459_s24 }
 0x339   :  { %1012 = vrot.lane.b32.xlu2 %v2797_v45, %s2459_s24  ;;  %1152 = vrot.lane.b32.xlu0 %v2793_v43, %s2455_s21 }
 0x33a   :  { %962 = vrot.lane.b32.xlu1 %v2793_v43, %s2460_s25 }
 0x341   :  { %966 = vrot.lane.b32.xlu2 %v2797_v45, %s2460_s25  ;;  %1106 = vrot.lane.b32.xlu0 %v2793_v43, %s2458_s23 }
 0x342   :  { %916 = vrot.lane.b32.xlu1 %v2793_v43, %s2461_s26 }
 0x349   :  { %870 = vrot.lane.b32.xlu2 %v2793_v43, %s2462_s27  ;;  %1058 = vrot.lane.b32.xlu0 %v2791_v42, %s2457_s22 }
 0x34a   :  { %872 = vrot.lane.b32.xlu1 %v2795_v27, %s2462_s27 }
 0x351   :  { %964 = vrot.lane.b32.xlu0 %v2795_v27, %s2460_s25  ;;  %868 = vrot.lane.b32.xlu2 %v2791_v42, %s2462_s27 }
 0x352   :  { %960 = vrot.lane.b32.xlu1 %v2791_v42, %s2460_s25 }
 0x359   :  { %918 = vrot.lane.b32.xlu0 %v2795_v27, %s2461_s26 }
 0x35a   :  { %914 = vrot.lane.b32.xlu1 %v2791_v42, %s2461_s26 }
 0x361   :  { %1006 = vrot.lane.b32.xlu0 %v2791_v42, %s2459_s24 }
 0x369   :  { %920 = vrot.lane.b32.xlu0 %v2797_v45, %s2461_s26 }
 0x36b   :  { %v1203_v54 = vpop.permute.xlu2 %1202 }
 0x36c   :  { %v1209_v56 = vsel %vm485_vm1, %v1203_v54, %v1205_v34 }
 0x36d   :  { %v1217_v55 = vmul.f32 %v1209_v56, %v1186_v53  ;;  %v1048_v53 = vperm.slane %v2905_v58, 3 }
 0x36f   :  { %1330 = vmatpush.msra.mxu3 %v1217_v55 }
 0x371   :  { %874 = vrot.lane.b32.xlu0 %v2797_v45, %s2462_s27 }
 0x373   :  { %v1111_v47 = vpop.permute.xlu2 %1110 }
 0x374   :  { %v1117_v15 = vsel %vm377_vm3, %v1111_v47, %v1113_v46  ;;  %v1047_v46 = vperm.slane %v2905_v58, 2 }
 0x375   :  { %v1125_v4 = vmul.f32 %v1117_v15, %v1094_v3 }
 0x379   :  { %866 = vrot.lane.b32.xlu0 %v2453_v33, %s2462_s27 }
 0x37b   :  { %v1199_v48 = vpop.permute.xlu2 %1198 }
 0x383   :  { %v1201_v7 = vpop.permute.xlu0 %1200  ;;  %v2891_v8 = vpop.permute.xlu2 %1008 }
 0x384   :  { %v1207_v61 = vsel %vm485_vm1, %v1199_v48, %v1201_v7  ;;  %v1208_v10 = vsel %vm485_vm1, %v1201_v7, %v1203_v54  ;;  %v2895_v60 = vpop.permute.xlu1 %1154  ;;  %v993_v54 = vperm.slane %v2927_v41, 2  ;;  %v2942_v7 = vld [vmem:[%s3530_s9] ss:$8 sm:$0xf] }
 0x385   :  { %v1215_v12 = vmul.f32 %v1207_v61, %v1184_v5  ;;  %v1216_v13 = vmul.f32 %v1208_v10, %v1185_v6  ;;  %v1138_v61 = vperm.slane %v2900_v59, 1  ;;  %v854_v10 = vperm.slane %v2942_v7, 1 }
 0x387   :  { %1290 = vmatpush.msra.mxu1 %v1215_v12  ;;  %1310 = vmatpush.msra.mxu2 %v1216_v13 }
 0x38b   :  { %v1157_v25 = vpop.permute.xlu0 %1156  ;;  %v2910_v19 = vpop.permute.xlu2 %1060 }
 0x38c   :  { %v1162_v20 = vsel %vm425_vm2, %v2895_v60, %v1157_v25  ;;  %v1163_v21 = vsel %vm425_vm2, %v1157_v25, %v1159_v50  ;;  %v1063_v23 = vpop.permute.xlu1 %1062 }
 0x38d   :  { %v1170_v24 = vmul.f32 %v1162_v20, %v1139_v9  ;;  %v1171_v26 = vmul.f32 %v1163_v21, %v1140_v14  ;;  %v1069_v28 = vsel %vm317_vm0, %v2910_v19, %v1063_v23  ;;  %v1092_v21 = vperm.slane %v2882_v57, 1 }
 0x38e   :  { %v2917_v29 = vmul.f32 %v1069_v28, %v1046_v17 }
 0x38f   :  { %1311 = vmatpush.msra.mxu2 %v1170_v24  ;;  %1331 = vmatpush.msra.mxu3 %v1171_v26 }
 0x391   :  { %1332 = vmatpush.msra.mxu3 %v1125_v4 }
 0x393   :  { %v1109_v0 = vpop.permute.xlu0 %1108  ;;  %v1013_v32 = vpop.permute.xlu2 %1012 }
 0x394   :  { %v1116_v34 = vsel %vm377_vm3, %v1109_v0, %v1111_v47  ;;  %v1151_v11 = vpop.permute.xlu1 %1150 }
 0x395   :  { %v1124_v35 = vmul.f32 %v1116_v34, %v1093_v31  ;;  %v855_v34 = vperm.slane %v2942_v7, 2 }
 0x397   :  { %1312 = vmatpush.msra.mxu2 %v1124_v35 }
 0x39b   :  { %v2921_v30 = vpop.permute.xlu2 %966  ;;  %v1197_v37 = vpop.permute.xlu0 %1196 }
 0x39c   :  { %v1206_v38 = vsel %vm485_vm1, %v1197_v37, %v1199_v48  ;;  %v1105_v39 = vpop.permute.xlu1 %1104 }
 0x39d   :  { %v1214_v40 = vmul.f32 %v1206_v38, %v1183_v36 }
 0x39f   :  { %1270 = vmatpush.msra.mxu0 %v1214_v40 }
 0x3a3   :  { %v871_v56 = vpop.permute.xlu2 %870  ;;  %v1065_v55 = vpop.permute.xlu0 %1064 }
 0x3a4   :  { %v1070_v50 = vsel %vm317_vm0, %v1063_v23, %v1065_v55  ;;  %v1071_v3 = vsel %vm317_vm0, %v1065_v55, %v2855_v22  ;;  %v1011_v47 = vpop.permute.xlu1 %1010  ;;  %v1137_v22 = vperm.slane %v2900_v59, 0 }
 0x3a5   :  { %v1078_v15 = vmul.f32 %v1070_v50, %v1047_v46  ;;  %v1079_v4 = vmul.f32 %v1071_v3, %v1048_v53  ;;  %v1016_v33 = vsel %vm249_vm5, %v2891_v8, %v1011_v47  ;;  %v1017_v48 = vsel %vm249_vm5, %v1011_v47, %v1013_v32 }
 0x3a6   :  { %v1024_v5 = vmul.f32 %v1016_v33, %v993_v54  ;;  %v1025_v6 = vmul.f32 %v1017_v48, %v994_v52  ;;  %v1045_v32 = vperm.slane %v2905_v58, 0  ;;  %v2378_v58 = vld [vmem:[%s3530_s9 + $0x2] ss:$8 sm:$0xf] }
 0x3a7   :  { %1313 = vmatpush.msra.mxu2 %v1078_v15  ;;  %1333 = vmatpush.msra.mxu3 %v1079_v4  ;;  %v948_v38 = vperm.slane %v2378_v58, 3 }
 0x3a8   :  { %1028 = vst [vmem:[#allocation3 + $0xb0] sm:$0xff] %v1024_v5 }
 0x3a9   :  { %1314 = vmatpush.msra.mxu2 %v2795_v27  ;;  %1334 = vmatpush.msra.mxu3 %v2797_v45  ;;  %1029 = vst [vmem:[#allocation3 + $0x78] sm:$0xff] %v1025_v6  ;;  %v1091_v45 = vperm.slane %v2882_v57, 0 }
 0x3ab   :  { %v1153_v12 = vpop.permute.xlu0 %1152  ;;  %v2949_v13 = vpop.permute.xlu2 %868  ;;  %1315 = vmatpush.msra.mxu2 %v1024_v5  ;;  %1335 = vmatpush.msra.mxu3 %v1025_v6 }
 0x3ac   :  { %v1160_v9 = vsel %vm425_vm2, %v1151_v11, %v1153_v12  ;;  %v1161_v14 = vsel %vm425_vm2, %v1153_v12, %v2895_v60  ;;  %v963_v17 = vpop.permute.xlu1 %962  ;;  %v877_v59 = vsel %vm93_vm8, %v2949_v13, %v871_v56  ;;  %v991_v12 = vperm.slane %v2927_v41, 0 }
 0x3ad   :  { %v1168_v25 = vmul.f32 %v1160_v9, %v1137_v22  ;;  %v1169_v20 = vmul.f32 %v1161_v14, %v1138_v61  ;;  %v2956_v27 = vmul.f32 %v877_v59, %v854_v10  ;;  %v1222_v10 = vld [vmem:[%s3534_s3] sm:$0xf]  ;;  %v992_v9 = vperm.slane %v2927_v41, 1 }
 0x3af   :  { %1271 = vmatpush.msra.mxu0 %v1168_v25  ;;  %1291 = vmatpush.msra.mxu1 %v1169_v20  ;;  %889 = vst [vmem:[#allocation3 + $0x18] sm:$0xff] %v2956_v27 }
 0x3b3   :  { %v1107_v23 = vpop.permute.xlu0 %1106 }
 0x3b4   :  { %v1114_v24 = vsel %vm377_vm3, %v1105_v39, %v1107_v23  ;;  %v1115_v60 = vsel %vm377_vm3, %v1107_v23, %v1109_v0  ;;  %v917_v26 = vpop.permute.xlu1 %916  ;;  %v946_v39 = vperm.slane %v2378_v58, 1 }
 0x3b5   :  { %v1122_v28 = vmul.f32 %v1114_v24, %v1091_v45  ;;  %v1123_v31 = vmul.f32 %v1115_v60, %v1092_v21  ;;  %v853_v60 = vperm.slane %v2942_v7, 0 }
 0x3b7   :  { %1272 = vmatpush.msra.mxu0 %v1122_v28  ;;  %1292 = vmatpush.msra.mxu1 %v1123_v31  ;;  %v1411_v31 = vld [vmem:[#allocation2 + $0x28] sm:$0xf] }
 0x3b8   :  { %1467 = vrot.lane.b32.xlu0 %v1411_v31, %s2461_s26 }
 0x3b9   :  { %1293 = vmatpush.msra.mxu1 %v2917_v29  ;;  %v947_v29 = vperm.slane %v2378_v58, 2 }
 0x3bb   :  { %v1059_v11 = vpop.permute.xlu0 %1058  ;;  %1294 = vmatpush.msra.mxu1 %v2793_v43  ;;  %v945_v43 = vperm.slane %v2378_v58, 0 }
 0x3bc   :  { %v2967_v57 = vpop.permute.xlu1 %872  ;;  %v1068_v35 = vsel %vm317_vm0, %v1059_v11, %v2910_v19 }
 0x3bd   :  { %v878_v0 = vsel %vm93_vm8, %v871_v56, %v2967_v57  ;;  %v1076_v36 = vmul.f32 %v1068_v35, %v1045_v32  ;;  %v3012_v32 = vld [vmem:[#allocation2 + $0x20] sm:$0xf] }
 0x3be   :  { %v886_v37 = vmul.f32 %v878_v0, %v855_v34  ;;  %v1951_v34 = vld [vmem:[#allocation2 + $0x20] sm:$0xf] }
 0x3bf   :  { %1273 = vmatpush.msra.mxu0 %v1076_v36  ;;  %v2426_v11 = vpack.i.bf16 %v1951_v34, %v3012_v32  ;;  %v2009_v0 = vld [vmem:[#allocation2 + $0x20] sm:$0xf] }
 0x3c0   :  { %890 = vst [vmem:[#allocation3 + $0xd8] sm:$0xff] %v886_v37 }
 0x3c1   :  { %1274 = vmatpush.msra.mxu0 %v2791_v42  ;;  %v2377_v42 = vld [vmem:[%s3530_s9 + $0x1] ss:$8 sm:$0xf]  ;;  %2427 = vrot.lane.b32.xlu0 %v2426_v11, %s2457_s22 }
 0x3c2   :  { %v899_v47 = vperm.slane %v2377_v42, 0  ;;  %v900_v15 = vperm.slane %v2377_v42, 1  ;;  %v902_v20 = vperm.slane %v2377_v42, 3 }
 0x3c3   :  { %v965_v40 = vpop.permute.xlu0 %964 }
 0x3c4   :  { %v970_v19 = vsel %vm201_vm7, %v963_v17, %v965_v40  ;;  %v971_v46 = vsel %vm201_vm7, %v965_v40, %v2921_v30  ;;  %v961_v53 = vpop.permute.xlu1 %960  ;;  %v901_v30 = vperm.slane %v2377_v42, 2 }
 0x3c5   :  { %v978_v54 = vmul.f32 %v970_v19, %v947_v29  ;;  %v979_v52 = vmul.f32 %v971_v46, %v948_v38  ;;  %v968_v56 = vsel %vm201_vm7, %v2863_v49, %v961_v53  ;;  %v969_v55 = vsel %vm201_vm7, %v961_v53, %v963_v17  ;;  %v1371_v46 = vld [vmem:[%s3535_s4] sm:$0xf]  ;;  %s2465_s4 = smov 2  }
 0x3c6   :  { %v976_v50 = vmul.f32 %v968_v56, %v945_v43  ;;  %v977_v3 = vmul.f32 %v969_v55, %v946_v39  ;;  %1395 = vperm.xlu2 %2425, %v1371_v46  }
 0x3c7   :  { %982 = vst [vmem:[#allocation3 + $0x50] sm:$0xff] %v978_v54  ;;  %1316 = vmatpush.msra.mxu2 %v978_v54  ;;  %1336 = vmatpush.msra.mxu3 %v979_v52 }
 0x3c8   :  { %983 = vst [vmem:[#allocation3] sm:$0xff] %v979_v52 }
 0x3c9   :  { %980 = vst [vmem:[#allocation3 + $0x28] sm:$0xff] %v976_v50 }
 0x3ca   :  { %981 = vst [vmem:[#allocation3 + $0xa8] sm:$0xff] %v977_v3 }
 0x3cb   :  { %v919_v4 = vpop.permute.xlu0 %918 }
 0x3cc   :  { %v924_v49 = vsel %vm141_vm6, %v917_v26, %v919_v4  ;;  %v915_v33 = vpop.permute.xlu1 %914 }
 0x3cd   :  { %v932_v48 = vmul.f32 %v924_v49, %v901_v30  ;;  %v922_v5 = vsel %vm141_vm6, %v2871_v51, %v915_v33  ;;  %v923_v6 = vsel %vm141_vm6, %v915_v33, %v917_v26 }
 0x3ce   :  { %v930_v22 = vmul.f32 %v922_v5, %v899_v47  ;;  %v931_v61 = vmul.f32 %v923_v6, %v900_v15  ;;  %2441 = vset.pattern.permute.xlu2 %v2464_v18 }
 0x3cf   :  { %936 = vst [vmem:[#allocation3 + $0x118] sm:$0xff] %v932_v48  ;;  %1317 = vmatpush.msra.mxu2 %v932_v48  ;;  %1504 = vrot.lane.b32.xlu2 %v1411_v31, %s2465_s4 }
 0x3d0   :  { %934 = vst [vmem:[#allocation3 + $0x60] sm:$0xff] %v930_v22 }
 0x3d1   :  { %935 = vst [vmem:[#allocation3 + $0xe8] sm:$0xff] %v931_v61  ;;  %1318 = vmatpush.msra.mxu2 %v886_v37 }
 0x3d2   :  { %2386 = vmatmul.msk.f32.vlgmr.msra.gmra.mxu2 %vm1259_vm14, %v1222_v10 }
 0x3d3   :  { %v1007_v51 = vpop.permute.xlu0 %1006 }
 0x3d4   :  { %v1014_v14 = vsel %vm249_vm5, %v2889_v44, %v1007_v51  ;;  %v1015_v17 = vsel %vm249_vm5, %v1007_v51, %v2891_v8  ;;  %v856_v44 = vperm.slane %v2942_v7, 3  ;;  %v2113_v7 = vld [vmem:[#allocation2 + $0x20] sm:$0xf] }
 0x3d5   :  { %v1022_v59 = vmul.f32 %v1014_v14, %v991_v12  ;;  %v1023_v25 = vmul.f32 %v1015_v17, %v992_v9 }
 0x3d7   :  { %1026 = vst [vmem:[#allocation3 + $0x108] sm:$0xff] %v1022_v59  ;;  %1275 = vmatpush.msra.mxu0 %v1022_v59  ;;  %1295 = vmatpush.msra.mxu1 %v1023_v25 }
 0x3d8   :  { %1027 = vst [vmem:[#allocation3 + $0xf0] sm:$0xff] %v1023_v25  ;;  %1634 = vrot.lane.b32.xlu2 %v3012_v32, %s2466_s20 }
 0x3d9   :  { %1276 = vmatpush.msra.mxu0 %v976_v50  ;;  %1296 = vmatpush.msra.mxu1 %v977_v3 }
 0x3db   :  { %v921_v41 = vpop.permute.xlu0 %920  ;;  %1277 = vmatpush.msra.mxu0 %v930_v22  ;;  %1297 = vmatpush.msra.mxu1 %v931_v61 }
 0x3dc   :  { %v925_v45 = vsel %vm141_vm6, %v919_v4, %v921_v41 }
 0x3dd   :  { %v933_v21 = vmul.f32 %v925_v45, %v902_v20  ;;  %1298 = vmatpush.msra.mxu1 %v2956_v27 }
 0x3de   :  { %2385 = vmatmul.msk.f32.vlgmr.msra.gmra.mxu1 %vm1259_vm14, %v1222_v10 }
 0x3df   :  { %937 = vst [vmem:[#allocation3 + $0xd0] sm:$0xff] %v933_v21  ;;  %1337 = vmatpush.msra.mxu3 %v933_v21 }
 0x3e3   :  { %v875_v8 = vpop.permute.xlu0 %874 }
 0x3e4   :  { %v879_v23 = vsel %vm93_vm8, %v2967_v57, %v875_v8  ;;  %v2436_v57 = vpack.i.bf16 %v2113_v7, %v3012_v32  ;;  %v1881_v8 = vld [vmem:[#allocation2 + $0x28] sm:$0xf] }
 0x3e5   :  { %v887_v24 = vmul.f32 %v879_v23, %v856_v44 }
 0x3e6   :  { %2437 = vrot.lane.b32.xlu0 %v2436_v57, %s2456_s0 }
 0x3e7   :  { %891 = vst [vmem:[#allocation3 + $0xe0] sm:$0xff] %v887_v24  ;;  %1338 = vmatpush.msra.mxu3 %v887_v24 }
 0x3e8   :  { %2387 = vmatmul.msk.f32.vlgmr.msra.gmra.mxu3 %vm1259_vm14, %v1222_v10 }
 0x3eb   :  { %v867_v26 = vpop.permute.xlu0 %866 }
 0x3ec   :  { %v876_v27 = vsel %vm93_vm8, %v867_v26, %v2949_v13  ;;  %v1777_v26 = vld [vmem:[#allocation2 + $0x28] sm:$0xf] }
 0x3ed   :  { %v884_v28 = vmul.f32 %v876_v27, %v853_v60  ;;  %v2055_v60 = vld [vmem:[#allocation2 + $0x20] sm:$0xf] }
 0x3ee   :  { %2033 = vrot.lane.b32.xlu0 %v2009_v0, %s2458_s23  ;;  %v2431_v27 = vpack.i.bf16 %v2055_v60, %v3012_v32 }
 0x3ef   :  { %888 = vst [vmem:[#allocation3 + $0x100] sm:$0xff] %v884_v28  ;;  %1278 = vmatpush.msra.mxu0 %v884_v28 }
 0x3f0   :  { %2384 = vmatmul.msk.f32.vlgmr.msra.gmra.mxu0 %vm1259_vm14, %v1222_v10  ;;  %v1835_v10 = vld [vmem:[#allocation2 + $0x28] sm:$0xf] }
 0x3f1   :  { %1855 = vrot.lane.b32.xlu2 %v1835_v10, %s2460_s25 }
 0x420   :  { %v1396_v23 = vpop.permute.xlu2 %1395 }
 0x429   :  { %v3046_v24 = vpop.permute.xlu2 %1504 }
 0x42a   :  { %v3036_v6 = vpop.permute.xlu0 %1467 }
 0x432   :  { %v3050_v28 = vpop.permute.xlu2 %1634 }
 0x433   :  { %v3038_v22 = vpop.permute.xlu0 %2427 }
 0x455   :  { %v1320_v35 = vpop.f32.mrf.mxu2 }
 0x456   :  { %v1346_v38 = vsel %vm527_vm4, %v1320_v35, 0.0 }
 0x458   :  { %v3040_v61 = vpop.permute.xlu0 %2437 }
 0x45b   :  { %v1300_v13 = vpop.f32.mrf.mxu1 }
 0x45c   :  { %v1344_v36 = vsel %vm527_vm4, %v1300_v13, 0.0 }
 0x460   :  { %v3043_v12 = vpop.permute.xlu0 %2033 }
 0x46b   :  { %v1340_v58 = vpop.f32.mrf.mxu3 }
 0x46c   :  { %v1348_v39 = vsel %vm527_vm4, %v1340_v58, 0.0 }
 0x46d   :  { %v1280_v37 = vpop.f32.mrf.mxu0 }
 0x46e   :  { %v1343_v29 = vsel %vm527_vm4, %v1280_v37, 0.0 }
 0x46f   :  { %v1345_v43 = vadd.f32 %v1344_v36, %v1343_v29 }
 0x471   :  { %v1347_v40 = vadd.f32 %v1346_v38, %v1345_v43 }
 0x473   :  { %v1349_v19 = vadd.f32 %v1348_v39, %v1347_v40 }
 0x475   :  { %1350 = vadd.xlane.f32.xlu1 %v1349_v19 }
 0x48e   :  { %1430 = vrot.lane.b32.xlu1 %v1411_v31, %s2462_s27 }
 0x496   :  { %1542 = vrot.lane.b32.xlu1 %v1411_v31, %s2459_s24  ;;  %v3053_v31 = vpop.permute.xlu2 %1855 }
 0x49e   :  { %2432 = vrot.lane.b32.xlu1 %v2431_v27, %s2455_s21 }
 0x4e8   :  { %v1351_v53 = vpop.xlane.xlu1 %1350 }
 0x4e9   :  { %v1352_v54 = vmul.f32 0.001953125, %v1351_v53 }
 0x4eb   :  { %v1353_v52 = vsub.f32 %v1280_v37, %v1352_v54  ;;  %v1354_v56 = vsub.f32 %v1300_v13, %v1352_v54  ;;  %v1355_v55 = vsub.f32 %v1320_v35, %v1352_v54  ;;  %v1356_v50 = vsub.f32 %v1340_v58, %v1352_v54 }
 0x4ed   :  { %v1357_v3 = vmul.f32 %v1353_v52, %v1353_v52  ;;  %v1358_v42 = vmul.f32 %v1354_v56, %v1354_v56  ;;  %v1359_v30 = vmul.f32 %v1355_v55, %v1355_v55  ;;  %v1360_v47 = vmul.f32 %v1356_v50, %v1356_v50 }
 0x4ef   :  { %v1361_v15 = vsel %vm527_vm4, %v1357_v3, 0.0  ;;  %v1362_v4 = vsel %vm527_vm4, %v1358_v42, 0.0  ;;  %v1364_v33 = vsel %vm527_vm4, %v1359_v30, 0.0  ;;  %v1366_v48 = vsel %vm527_vm4, %v1360_v47, 0.0 }
 0x4f0   :  { %v1363_v49 = vadd.f32 %v1362_v4, %v1361_v15 }
 0x4f2   :  { %v1365_v18 = vadd.f32 %v1364_v33, %v1363_v49 }
 0x4f4   :  { %v1367_v5 = vadd.f32 %v1366_v48, %v1365_v18 }
 0x4f6   :  { %1368 = vadd.xlane.f32.xlu0 %v1367_v5 }
 0x50a   :  { %1901 = vrot.lane.b32.xlu0 %v1881_v8, %s2459_s24 }
 0x512   :  { %1797 = vrot.lane.b32.xlu0 %v1777_v26, %s2461_s26 }
 0x569   :  { %v1369_v9 = vpop.xlane.xlu0 %1368 }
 0x56a   :  { %v1370_v51 = vmul.f32 0.001953125, %v1369_v9 }
 0x56c   :  { %v1372_v14 = vadd.f32 1e-05, %v1370_v51 }
 0x56e   :  { %2447 = vrsqrt.f32 %v1372_v14  ;;  %vm1379_vm10 = vweird.f32 %v1372_v14 }
 0x574   :  { %v2448_v17 = vpop.eup %2447 }
 0x575   :  { %v1374_v59 = vmul.f32 %v2448_v17, %v1372_v14  ;;  %vm1380_vm15 = vweird.f32 %v2448_v17 }
 0x576   :  { %vm1381_vm11 = vmor %vm1379_vm10, %vm1380_vm15 }
 0x577   :  { %v1375_v25 = vmul.f32 %v2448_v17, %v1374_v59  ;;  %v3106_v59 = vld [vmem:[%s3536_s10] ss:$8 sm:$0xf] }
 0x579   :  { %v1376_v20 = vmul.f32 0.5, %v1375_v25  ;;  %v3111_v25 = vld [vmem:[%s3536_s10 + $0x1] ss:$8 sm:$0xf] }
 0x57b   :  { %v1377_v41 = vsub.f32 1.5, %v1376_v20  ;;  %v1460_v20 = vperm.slane %v3111_v25, 1 }
 0x57c   :  { %v3090_v3 = vpop.permute.xlu0 %1901 }
 0x57d   :  { %v1378_v45 = vmul.f32 %v2448_v17, %v1377_v41  ;;  %v1418_v41 = vperm.slane %v3106_v59, 1 }
 0x57f   :  { %v1382_v21 = vsel %vm1381_vm11, %v2448_v17, %v1378_v45 }
 0x580   :  { %v1383_v44 = vmul.f32 %v1382_v21, %v1371_v46  ;;  %v3120_v21 = vld [vmem:[%s3536_s10 + $0x2] ss:$8 sm:$0xf] }
 0x582   :  { %1386 = vperm.xlu2 %2441, %v1383_v44   ;;  %v1497_v44 = vperm.slane %v3120_v21, 1 }
 0x584   :  { %v3098_v15 = vpop.permute.xlu0 %1797 }
 0x5dc   :  { %v1387_v34 = vpop.permute.xlu2 %1386 }
 0x5dd   :  { %v1389_v11 = vmul.f32 %v1387_v34, %v1353_v52  ;;  %v1390_v7 = vmul.f32 %v1387_v34, %v1354_v56  ;;  %v1391_v57 = vmul.f32 %v1387_v34, %v1355_v55  ;;  %v1392_v13 = vmul.f32 %v1387_v34, %v1356_v50  ;;  %v3084_v56 = vpop.permute.xlu1 %1430 }
 0x5df   :  { %v1398_v35 = vadd.f32 %v1396_v23, %v1389_v11  ;;  %v1399_v0 = vadd.f32 %v1396_v23, %v1390_v7  ;;  %v1400_v36 = vadd.f32 %v1396_v23, %v1391_v57  ;;  %v1401_v37 = vadd.f32 %v1396_v23, %v1392_v13 }
 0x5e0   :  { %v1462_v7 = vperm.slane %v3111_v25, 3 }
 0x5e1   :  { %v1402_v58 = vmax.f32 %v1398_v35, 0.0  ;;  %v1403_v29 = vmax.f32 %v1399_v0, 0.0  ;;  %v1404_v32 = vmax.f32 %v1400_v36, 0.0  ;;  %v1405_v38 = vmax.f32 %v1401_v37, 0.0 }
 0x5e2   :  { %v1420_v0 = vperm.slane %v3106_v59, 3  ;;  %v1499_v36 = vperm.slane %v3120_v21, 3 }
 0x5e3   :  { %1406 = vst [vmem:[#allocation2 + $0x10] sm:$0xf] %v1402_v58 }
 0x5e4   :  { %1407 = vst [vmem:[#allocation2 + $0x8] sm:$0xf] %v1403_v29 }
 0x5e5   :  { %1408 = vst [vmem:[#allocation2] sm:$0xf] %v1404_v32  ;;  %v3087_v50 = vpop.permute.xlu1 %1542 }
 0x5e6   :  { %1409 = vst [vmem:[#allocation2 + $0x18] sm:$0xf] %v1405_v38  ;;  %v3142_v38 = vld [vmem:[%s3536_s10 + $0x3] ss:$8 sm:$0xf] }
 0x5ea   :  { %v1412_v19 = vld [vmem:[#allocation2 + $0x10] sm:$0xf] }
 0x5eb   :  { %v1413_v43 = vld [vmem:[#allocation2 + $0x8] sm:$0xf]  ;;  %v1570_v52 = vld [vmem:[#allocation2 + $0x10] sm:$0xf] }
 0x5ec   :  { %1471 = vrot.lane.b32.xlu1 %v1413_v43, %s2461_s26  ;;  %1434 = vrot.lane.b32.xlu2 %v1413_v43, %s2462_s27  ;;  %v1414_v40 = vld [vmem:[#allocation2] sm:$0xf]  ;;  %v1571_v54 = vld [vmem:[#allocation2 + $0x8] sm:$0xf] }
 0x5ed   :  { %v1415_v39 = vld [vmem:[#allocation2 + $0x18] sm:$0xf]  ;;  %v1572_v46 = vld [vmem:[#allocation2] sm:$0xf]  ;;  %v3096_v47 = vpop.permute.xlu1 %2432 }
 0x5ee   :  { %1475 = vrot.lane.b32.xlu0 %v1415_v39, %s2461_s26  ;;  %v1573_v53 = vld [vmem:[#allocation2 + $0x18] sm:$0xf] }
 0x5f4   :  { %1436 = vrot.lane.b32.xlu2 %v1414_v40, %s2462_s27  ;;  %1469 = vrot.lane.b32.xlu1 %v1412_v19, %s2461_s26 }
 0x5f6   :  { %1512 = vrot.lane.b32.xlu0 %v1415_v39, %s2465_s4 }
 0x5fc   :  { %1438 = vrot.lane.b32.xlu2 %v1415_v39, %s2462_s27  ;;  %1550 = vrot.lane.b32.xlu1 %v1415_v39, %s2459_s24 }
 0x5fe   :  { %1548 = vrot.lane.b32.xlu0 %v1414_v40, %s2459_s24 }
 0x604   :  { %1473 = vrot.lane.b32.xlu2 %v1414_v40, %s2461_s26  ;;  %1593 = vrot.lane.b32.xlu1 %v1572_v46, %s2457_s22 }
 0x606   :  { %1506 = vrot.lane.b32.xlu0 %v1412_v19, %s2465_s4 }
 0x60c   :  { %1508 = vrot.lane.b32.xlu2 %v1413_v43, %s2465_s4  ;;  %1632 = vrot.lane.b32.xlu1 %v1573_v53, %s2466_s20 }
 0x60e   :  { %1630 = vrot.lane.b32.xlu0 %v1572_v46, %s2466_s20 }
 0x614   :  { %1510 = vrot.lane.b32.xlu2 %v1414_v40, %s2465_s4  ;;  %1591 = vrot.lane.b32.xlu1 %v1571_v54, %s2457_s22  ;;  %v3147_v40 = vld [vmem:[%s3536_s10 + $0x4] ss:$8 sm:$0xf] }
 0x616   :  { %1589 = vrot.lane.b32.xlu0 %v1570_v52, %s2457_s22 }
 0x61c   :  { %1705 = vrot.lane.b32.xlu1 %v1572_v46, %s2456_s0  ;;  %1432 = vrot.lane.b32.xlu2 %v1412_v19, %s2462_s27 }
 0x61e   :  { %1670 = vrot.lane.b32.xlu0 %v1573_v53, %s2455_s21 }
 0x624   :  { %1664 = vrot.lane.b32.xlu1 %v1570_v52, %s2455_s21  ;;  %1546 = vrot.lane.b32.xlu2 %v1413_v43, %s2459_s24 }
 0x626   :  { %1628 = vrot.lane.b32.xlu0 %v1571_v54, %s2466_s20 }
 0x62c   :  { %1703 = vrot.lane.b32.xlu1 %v1571_v54, %s2456_s0  ;;  %1595 = vrot.lane.b32.xlu2 %v1573_v53, %s2457_s22 }
 0x62e   :  { %1701 = vrot.lane.b32.xlu0 %v1570_v52, %s2456_s0 }
 0x634   :  { %1544 = vrot.lane.b32.xlu2 %v1412_v19, %s2459_s24 }
 0x63c   :  { %1668 = vrot.lane.b32.xlu2 %v1572_v46, %s2455_s21  ;;  %v1537_v46 = vperm.slane %v3142_v38, 3 }
 0x644   :  { %1626 = vrot.lane.b32.xlu2 %v1570_v52, %s2466_s20 }
 0x646   :  { %v1435_v55 = vpop.permute.xlu2 %1434 }
 0x64c   :  { %1707 = vrot.lane.b32.xlu2 %v1573_v53, %s2456_s0 }
 0x64e   :  { %v1437_v42 = vpop.permute.xlu2 %1436 }
 0x64f   :  { %v3093_v30 = vsel %vm93_vm8, %v1435_v55, %v1437_v42 }
 0x654   :  { %1666 = vrot.lane.b32.xlu2 %v1571_v54, %s2455_s21 }
 0x656   :  { %v1439_v4 = vpop.permute.xlu2 %1438 }
 0x657   :  { %v1443_v49 = vsel %vm93_vm8, %v1437_v42, %v1439_v4  ;;  %v1579_v42 = vperm.slane %v3147_v40, 3  ;;  %v2429_v4 = vunpack.i.l.bf16 %v3038_v22 }
 0x658   :  { %v1451_v43 = vmul.f32 %v1443_v49, %v1420_v0  ;;  %v1536_v0 = vperm.slane %v3142_v38, 2 }
 0x65e   :  { %v1472_v33 = vpop.permute.xlu1 %1471  ;;  %v1474_v18 = vpop.permute.xlu2 %1473 }
 0x660   :  { %v1476_v48 = vpop.permute.xlu0 %1475 }
 0x661   :  { %v1480_v35 = vsel %vm141_vm6, %v1474_v18, %v1476_v48 }
 0x662   :  { %v1488_v29 = vmul.f32 %v1480_v35, %v1462_v7  ;;  %v1498_v7 = vperm.slane %v3120_v21, 2 }
 0x664   :  { %v1492_v19 = vadd.f32 %v1488_v29, %v1451_v43  ;;  %v1417_v29 = vperm.slane %v3106_v59, 0 }
 0x666   :  { %v1509_v5 = vpop.permute.xlu2 %1508  ;;  %v3101_v10 = vpop.permute.xlu1 %1469 }
 0x667   :  { %v1478_v45 = vsel %vm141_vm6, %v3101_v10, %v1472_v33 }
 0x668   :  { %v1513_v9 = vpop.permute.xlu0 %1512  ;;  %v1486_v60 = vmul.f32 %v1478_v45, %v1460_v20 }
 0x66e   :  { %v1511_v51 = vpop.permute.xlu2 %1510  ;;  %v1551_v14 = vpop.permute.xlu1 %1550 }
 0x66f   :  { %v1518_v58 = vsel %vm1514_vm12, %v1511_v51, %v1513_v9 }
 0x670   :  { %v1549_v17 = vpop.permute.xlu0 %1548  ;;  %v1526_v39 = vmul.f32 %v1518_v58, %v1499_v36 }
 0x671   :  { %v1555_v53 = vsel %vm249_vm5, %v1549_v17, %v1551_v14 }
 0x672   :  { %v1530_v52 = vadd.f32 %v1526_v39, %v1492_v19  ;;  %v1563_v49 = vmul.f32 %v1555_v53, %v1537_v46  ;;  %v1578_v19 = vperm.slane %v3147_v40, 2 }
 0x674   :  { %v1567_v20 = vadd.f32 %v1563_v49, %v1530_v52 }
 0x676   :  { %v1433_v8 = vpop.permute.xlu2 %1432  ;;  %v3128_v11 = vpop.permute.xlu1 %1593 }
 0x677   :  { %v1441_v23 = vsel %vm93_vm8, %v1433_v8, %v1435_v55  ;;  %v1440_v39 = vsel %vm93_vm8, %v3084_v56, %v1433_v8  ;;  %v3193_v56 = vld [vmem:[%s3536_s10 + $0x6] ss:$8 sm:$0xf]  ;;  %v2434_v8 = vunpack.i.l.bf16 %v3096_v47 }
 0x678   :  { %v3124_v26 = vpop.permute.xlu0 %1506  ;;  %v1449_v27 = vmul.f32 %v1441_v23, %v1418_v41  ;;  %v1448_v53 = vmul.f32 %v1440_v39, %v1417_v29  ;;  %v1535_v29 = vperm.slane %v3142_v38, 1 }
 0x679   :  { %v1516_v34 = vsel %vm1514_vm12, %v3124_v26, %v1509_v5 }
 0x67a   :  { %v1524_v57 = vmul.f32 %v1516_v34, %v1497_v44  ;;  %v1490_v13 = vadd.f32 %v1486_v60, %v1449_v27  ;;  %v1461_v60 = vperm.slane %v3111_v25, 2  ;;  %v1479_v27 = vsel %vm141_vm6, %v1472_v33, %v1474_v18 }
 0x67b   :  { %v1419_v34 = vperm.slane %v3106_v59, 2 }
 0x67c   :  { %v3134_v37 = vadd.f32 %v1524_v57, %v1490_v13  ;;  %v1517_v13 = vsel %vm1514_vm12, %v1509_v5, %v1511_v51  ;;  %v1487_v35 = vmul.f32 %v1479_v27, %v1461_v60  ;;  %v1459_v5 = vperm.slane %v3111_v25, 0  ;;  %v3183_v51 = vld [vmem:[%s3536_s10 + $0x5] ss:$8 sm:$0xf] }
 0x67d   :  { %v1450_v33 = vmul.f32 %v3093_v30, %v1419_v34  ;;  %v1525_v18 = vmul.f32 %v1517_v13, %v1498_v7  ;;  %v1477_v30 = vsel %vm141_vm6, %v3036_v6, %v3101_v10  ;;  %v2439_v25 = vunpack.i.l.bf16 %v3040_v61 }
 0x67e   :  { %v3137_v32 = vpop.permute.xlu2 %1546  ;;  %v1633_v54 = vpop.permute.xlu1 %1632  ;;  %v1485_v6 = vmul.f32 %v1477_v30, %v1459_v5  ;;  %v1515_v10 = vsel %vm1514_vm12, %v3046_v24, %v3124_v26  ;;  %v1658_v27 = vperm.slane %v3193_v56, 2  ;;  %v1576_v7 = vperm.slane %v3147_v40, 0 }
 0x67f   :  { %v1554_v43 = vsel %vm249_vm5, %v3137_v32, %v1549_v17  ;;  %v1491_v46 = vadd.f32 %v1487_v35, %v1450_v33  ;;  %v1640_v60 = vsel %vm1636_vm13, %v1633_v54, %v3050_v28 }
 0x680   :  { %v3151_v55 = vpop.permute.xlu0 %1630  ;;  %v1562_v17 = vmul.f32 %v1554_v43, %v1536_v0  ;;  %v1489_v34 = vadd.f32 %v1485_v6, %v1448_v53  ;;  %v1534_v0 = vperm.slane %v3142_v38, 0  ;;  %v1577_v38 = vperm.slane %v3147_v40, 1 }
 0x681   :  { %v1529_v52 = vadd.f32 %v1525_v18, %v1491_v46 }
 0x686   :  { %v1596_v48 = vpop.permute.xlu2 %1595  ;;  %v3158_v44 = vpop.permute.xlu1 %1591 }
 0x687   :  { %v1602_v9 = vsel %vm317_vm0, %v1596_v48, %v2429_v4  ;;  %v1601_v59 = vsel %vm317_vm0, %v3128_v11, %v1596_v48  ;;  %v1620_v4 = vperm.slane %v3183_v51, 2 }
 0x688   :  { %v1610_v41 = vmul.f32 %v1602_v9, %v1579_v42  ;;  %v3160_v23 = vpop.permute.xlu0 %1589  ;;  %v1496_v42 = vperm.slane %v3120_v21, 0  ;;  %v1609_v49 = vmul.f32 %v1601_v59, %v1578_v19  ;;  %v1621_v9 = vperm.slane %v3183_v51, 3 }
 0x689   :  { %v1566_v21 = vadd.f32 %v1562_v17, %v1529_v52  ;;  %v1619_v17 = vperm.slane %v3183_v51, 1 }
 0x68a   :  { %v3156_v45 = vadd.f32 %v1610_v41, %v1567_v20  ;;  %v1659_v20 = vperm.slane %v3193_v56, 3  ;;  %v1639_v41 = vsel %vm1636_vm13, %v3151_v55, %v1633_v54  ;;  %v1523_v26 = vmul.f32 %v1515_v10, %v1496_v42 }
 0x68b   :  { %v1613_v35 = vadd.f32 %v1609_v49, %v1566_v21  ;;  %v1647_v28 = vmul.f32 %v1639_v41, %v1620_v4  ;;  %v1648_v54 = vmul.f32 %v1640_v60, %v1621_v9  ;;  %v1599_v42 = vsel %vm317_vm0, %v3160_v23, %v3158_v44 }
 0x68c   :  { %v1527_v30 = vadd.f32 %v1523_v26, %v1489_v34  ;;  %v1600_v4 = vsel %vm317_vm0, %v3158_v44, %v3128_v11  ;;  %v1607_v11 = vmul.f32 %v1599_v42, %v1576_v7  ;;  %v1657_v26 = vperm.slane %v3193_v56, 1 }
 0x68d   :  { %v1608_v44 = vmul.f32 %v1600_v4, %v1577_v38 }
 0x68e   :  { %v1545_v14 = vpop.permute.xlu2 %1544  ;;  %v3170_v58 = vpop.permute.xlu1 %1705 }
 0x68f   :  { %v1552_v18 = vsel %vm249_vm5, %v3087_v50, %v1545_v14  ;;  %v1553_v39 = vsel %vm249_vm5, %v1545_v14, %v3137_v32  ;;  %v1652_v50 = vadd.f32 %v1648_v54, %v3156_v45  ;;  %v1651_v32 = vadd.f32 %v1647_v28, %v1613_v35 }
 0x690   :  { %v1671_v36 = vpop.permute.xlu0 %1670  ;;  %v1560_v53 = vmul.f32 %v1552_v18, %v1534_v0  ;;  %v1561_v52 = vmul.f32 %v1553_v39, %v1535_v29 }
 0x691   :  { %v1677_v13 = vsel %vm425_vm2, %v1671_v36, %v2434_v8  ;;  %v1618_v8 = vperm.slane %v3183_v51, 0 }
 0x692   :  { %v1685_v19 = vmul.f32 %v1677_v13, %v1659_v20  ;;  %v1564_v41 = vadd.f32 %v1560_v53, %v1527_v30  ;;  %v1565_v23 = vadd.f32 %v1561_v52, %v3134_v37 }
 0x694   :  { %v1689_v51 = vadd.f32 %v1685_v19, %v1652_v50  ;;  %v1611_v0 = vadd.f32 %v1607_v11, %v1564_v41 }
 0x696   :  { %v3166_v57 = vpop.permute.xlu2 %1668  ;;  %v1665_v33 = vpop.permute.xlu1 %1664 }
 0x697   :  { %v1676_v24 = vsel %vm425_vm2, %v3166_v57, %v1671_v36  ;;  %v2394_v36 = vld [vmem:[%s3536_s10 + $0x7] ss:$8 sm:$0xf] }
 0x698   :  { %v1629_v43 = vpop.permute.xlu0 %1628  ;;  %v1684_v5 = vmul.f32 %v1676_v24, %v1658_v27  ;;  %v1695_v59 = vperm.slane %v2394_v36, 2  ;;  %v1696_v46 = vperm.slane %v2394_v36, 3  ;;  %v1656_v24 = vperm.slane %v3193_v56, 0 }
 0x699   :  { %v1638_v9 = vsel %vm1636_vm13, %v1629_v43, %v3151_v55  ;;  %v1612_v55 = vadd.f32 %v1608_v44, %v1565_v23  ;;  %v1693_v35 = vperm.slane %v2394_v36, 0 }
 0x69a   :  { %v1688_v6 = vadd.f32 %v1684_v5, %v1651_v32  ;;  %v1646_v27 = vmul.f32 %v1638_v9, %v1619_v17 }
 0x69c   :  { %v1650_v54 = vadd.f32 %v1646_v27, %v1612_v55 }
 0x69e   :  { %v1627_v48 = vpop.permute.xlu2 %1626  ;;  %v1704_v13 = vpop.permute.xlu1 %1703 }
 0x69f   :  { %v1637_v20 = vsel %vm1636_vm13, %v1627_v48, %v1629_v43  ;;  %v1694_v48 = vperm.slane %v2394_v36, 1  ;;  %v1712_v7 = vsel %vm485_vm1, %v1704_v13, %v3170_v58 }
 0x6a0   :  { %v1702_v34 = vpop.permute.xlu0 %1701 }
 0x6a1   :  { %v1711_v37 = vsel %vm485_vm1, %v1702_v34, %v1704_v13  ;;  %v1720_v5 = vmul.f32 %v1712_v7, %v1694_v48  ;;  %v1731_v48 = vld [vmem:[#allocation2 + $0x28] sm:$0xf] }
 0x6a2   :  { %v1719_v19 = vmul.f32 %v1711_v37, %v1693_v35  ;;  %v3283_v37 = vld [vmem:[%s3530_s9 + $0x20] ss:$8 sm:$0xf] }
 0x6a3   :  { %v2119_v7 = vperm.slane %v3283_v37, 3 }
 0x6a6   :  { %v1708_v14 = vpop.permute.xlu2 %1707 }
 0x6a7   :  { %v1713_v40 = vsel %vm485_vm1, %v3170_v58, %v1708_v14  ;;  %v1714_v49 = vsel %vm485_vm1, %v1708_v14, %v2439_v25  ;;  %v1645_v25 = vmul.f32 %v1637_v20, %v1618_v8 }
 0x6a8   :  { %v1721_v45 = vmul.f32 %v1713_v40, %v1695_v59  ;;  %v1722_v10 = vmul.f32 %v1714_v49, %v1696_v46 }
 0x6a9   :  { %v1649_v18 = vadd.f32 %v1645_v25, %v1611_v0 }
 0x6aa   :  { %v1725_v60 = vadd.f32 %v1721_v45, %v1688_v6  ;;  %v1726_v21 = vadd.f32 %v1722_v10, %v1689_v51 }
 0x6ac   :  { %1729 = vst [vmem:[#allocation2] sm:$0xf] %v1725_v60 }
 0x6ad   :  { %1730 = vst [vmem:[#allocation2 + $0x18] sm:$0xf] %v1726_v21 }
 0x6ae   :  { %v1667_v29 = vpop.permute.xlu2 %1666 }
 0x6af   :  { %v1674_v43 = vsel %vm425_vm2, %v1665_v33, %v1667_v29  ;;  %v1675_v28 = vsel %vm425_vm2, %v1667_v29, %v3166_v57 }
 0x6b0   :  { %v1682_v39 = vmul.f32 %v1674_v43, %v1656_v24  ;;  %v1683_v56 = vmul.f32 %v1675_v28, %v1657_v26  ;;  %v2440_v43 = vunpack.i.h.bf16 %v3040_v61 }
 0x6b2   :  { %v1686_v59 = vadd.f32 %v1682_v39, %v1649_v18  ;;  %v1687_v36 = vadd.f32 %v1683_v56, %v1650_v54 }
 0x6b3   :  { %v2111_v46 = vld [vmem:[#allocation2] sm:$0xf] }
 0x6b4   :  { %v2053_v38 = vld [vmem:[#allocation2] sm:$0xf]  ;;  %v1723_v30 = vadd.f32 %v1719_v19, %v1686_v59  ;;  %v1724_v17 = vadd.f32 %v1720_v5, %v1687_v36  ;;  %v2054_v8 = vld [vmem:[#allocation2 + $0x18] sm:$0xf]  ;;  %2133 = vrot.lane.b32.xlu1 %v2111_v46, %s2456_s0  ;;  %v2118_v5 = vperm.slane %v3283_v37, 2  ;;  %v2435_v36 = vunpack.i.h.bf16 %v3096_v47 }
 0x6b5   :  { %2075 = vrot.lane.b32.xlu2 %v2053_v38, %s2455_s21  ;;  %2077 = vrot.lane.b32.xlu0 %v2054_v8, %s2455_s21  ;;  %v1941_v57 = vld [vmem:[#allocation2] sm:$0xf]  ;;  %v1942_v58 = vld [vmem:[#allocation2 + $0x18] sm:$0xf] }
 0x6b6   :  { %1727 = vst [vmem:[#allocation2 + $0x10] sm:$0xf] %v1723_v30  ;;  %v1950_v33 = vld [vmem:[#allocation2 + $0x18] sm:$0xf]  ;;  %v1949_v53 = vld [vmem:[#allocation2] sm:$0xf] }
 0x6b7   :  { %1728 = vst [vmem:[#allocation2 + $0x8] sm:$0xf] %v1724_v17  ;;  %v2112_v50 = vld [vmem:[#allocation2 + $0x18] sm:$0xf]  ;;  %v2007_v14 = vld [vmem:[#allocation2] sm:$0xf] }
 0x6b8   :  { %1945 = vst [vmem:[#allocation3 + $0x50] sm:$0xf] %v1941_v57  ;;  %v2008_v4 = vld [vmem:[#allocation2 + $0x18] sm:$0xf]  ;;  %v1884_v40 = vld [vmem:[#allocation2] sm:$0xf] }
 0x6b9   :  { %1946 = vst [vmem:[#allocation3] sm:$0xf] %v1942_v58  ;;  %v1780_v10 = vld [vmem:[#allocation2] sm:$0xf]  ;;  %v1885_v41 = vld [vmem:[#allocation2 + $0x18] sm:$0xf] }
 0x6ba   :  { %v1838_v23 = vld [vmem:[#allocation2] sm:$0xf]  ;;  %v1781_v13 = vld [vmem:[#allocation2 + $0x18] sm:$0xf] }
 0x6bb   :  { %v1734_v27 = vld [vmem:[#allocation2] sm:$0xf]  ;;  %v1839_v24 = vld [vmem:[#allocation2 + $0x18] sm:$0xf] }
 0x6bc   :  { %1973 = vrot.lane.b32.xlu1 %v1950_v33, %s2457_s22  ;;  %v1735_v55 = vld [vmem:[#allocation2 + $0x18] sm:$0xf]  ;;  %v3294_v19 = vld [vmem:[%s3530_s9 + $0x7] ss:$8 sm:$0xf]  ;;  %v620_v33 = vsel %vm527_vm4, %v2763_v63, 0.0 }
 0x6bd   :  { %2135 = vrot.lane.b32.xlu2 %v2112_v50, %s2456_s0  ;;  %1971 = vrot.lane.b32.xlu0 %v1949_v53, %s2457_s22  ;;  %v1939_v52 = vld [vmem:[#allocation2 + $0x10] sm:$0xf]  ;;  %v2060_v59 = vperm.slane %v3294_v19, 2  ;;  %v2061_v61 = vperm.slane %v3294_v19, 3  ;;  %v621_v50 = vsel %vm527_vm4, %v2765_v1, 0.0 }
 0x6be   :  { %v1940_v32 = vld [vmem:[#allocation2 + $0x8] sm:$0xf]  ;;  %1943 = vst [vmem:[#allocation3 + $0x28] sm:$0xf] %v1939_v52  ;;  %v2051_v49 = vld [vmem:[#allocation2 + $0x10] sm:$0xf] }
 0x6bf   :  { %v1883_v42 = vld [vmem:[#allocation2 + $0x8] sm:$0xf]  ;;  %1944 = vst [vmem:[#allocation3 + $0xa8] sm:$0xf] %v1940_v32  ;;  %v2109_v51 = vld [vmem:[#allocation2 + $0x10] sm:$0xf] }
 0x6c0   :  { %v2052_v6 = vld [vmem:[#allocation2 + $0x8] sm:$0xf]  ;;  %v1947_v60 = vld [vmem:[#allocation2 + $0x10] sm:$0xf] }
 0x6c1   :  { %v2110_v45 = vld [vmem:[#allocation2 + $0x8] sm:$0xf]  ;;  %v2005_v21 = vld [vmem:[#allocation2 + $0x10] sm:$0xf] }
 0x6c2   :  { %v1779_v9 = vld [vmem:[#allocation2 + $0x8] sm:$0xf]  ;;  %v1836_v25 = vld [vmem:[#allocation2 + $0x10] sm:$0xf] }
 0x6c3   :  { %v1837_v20 = vld [vmem:[#allocation2 + $0x8] sm:$0xf]  ;;  %v1882_v26 = vld [vmem:[#allocation2 + $0x10] sm:$0xf] }
 0x6c4   :  { %1905 = vrot.lane.b32.xlu1 %v1883_v42, %s2459_s24  ;;  %v1948_v11 = vld [vmem:[#allocation2 + $0x8] sm:$0xf]  ;;  %v1778_v35 = vld [vmem:[#allocation2 + $0x10] sm:$0xf]  ;;  %v622_v42 = vadd.f32 %v621_v50, %v620_v33 }
 0x6c5   :  { %2029 = vrot.lane.b32.xlu2 %v2007_v14, %s2458_s23  ;;  %2031 = vrot.lane.b32.xlu0 %v2008_v4, %s2458_s23  ;;  %v2006_v44 = vld [vmem:[#allocation2 + $0x8] sm:$0xf]  ;;  %v1732_v0 = vld [vmem:[#allocation2 + $0x10] sm:$0xf] }
 0x6c6   :  { %v1733_v34 = vld [vmem:[#allocation2 + $0x8] sm:$0xf]  ;;  %v3315_v52 = vld [vmem:[%s3530_s9 + $0x5] ss:$8 sm:$0xf] }
 0x6c7   :  { %v1957_v4 = vperm.slane %v3315_v52, 3 }
 0x6cc   :  { %2071 = vrot.lane.b32.xlu1 %v2051_v49, %s2455_s21  ;;  %v623_v49 = vsel %vm527_vm4, %v2761_v62, 0.0 }
 0x6cd   :  { %1907 = vrot.lane.b32.xlu2 %v1884_v40, %s2459_s24  ;;  %2129 = vrot.lane.b32.xlu0 %v2109_v51, %s2456_s0  ;;  %v2059_v40 = vperm.slane %v3294_v19, 1  ;;  %v2430_v51 = vunpack.i.h.bf16 %v3038_v22  ;;  %v625_v22 = vsel %vm527_vm4, %v2767_v2, 0.0 }
 0x6d4   :  { %2131 = vrot.lane.b32.xlu1 %v2110_v45, %s2456_s0 }
 0x6d5   :  { %2073 = vrot.lane.b32.xlu2 %v2052_v6, %s2455_s21  ;;  %1803 = vrot.lane.b32.xlu0 %v1780_v10, %s2461_s26  ;;  %v1956_v6 = vperm.slane %v3315_v52, 2 }
 0x6dc   :  { %1859 = vrot.lane.b32.xlu1 %v1837_v20, %s2460_s25 }
 0x6dd   :  { %1801 = vrot.lane.b32.xlu2 %v1779_v9, %s2461_s26  ;;  %1909 = vrot.lane.b32.xlu0 %v1885_v41, %s2459_s24 }
 0x6e4   :  { %1967 = vrot.lane.b32.xlu1 %v1947_v60, %s2457_s22 }
 0x6e5   :  { %1861 = vrot.lane.b32.xlu2 %v1838_v23, %s2460_s25  ;;  %2025 = vrot.lane.b32.xlu0 %v2005_v21, %s2458_s23  ;;  %v624_v23 = vadd.f32 %v623_v49, %v622_v42 }
 0x6ec   :  { %2027 = vrot.lane.b32.xlu1 %v2006_v44, %s2458_s23 }
 0x6ed   :  { %1969 = vrot.lane.b32.xlu2 %v1948_v11, %s2457_s22  ;;  %1757 = vrot.lane.b32.xlu0 %v1734_v27, %s2462_s27 }
 0x6f4   :  { %1805 = vrot.lane.b32.xlu1 %v1781_v13, %s2461_s26 }
 0x6f5   :  { %1755 = vrot.lane.b32.xlu2 %v1733_v34, %s2462_s27  ;;  %1857 = vrot.lane.b32.xlu0 %v1836_v25, %s2460_s25  ;;  %v3334_v34 = vld [vmem:[%s3530_s9 + $0x3] ss:$8 sm:$0xf] }
 0x6fc   :  { %1903 = vrot.lane.b32.xlu1 %v1882_v26, %s2459_s24 }
 0x6fd   :  { %1863 = vrot.lane.b32.xlu2 %v1839_v24, %s2460_s25  ;;  %v3340_v24 = vld [vmem:[%s3530_s9 + $0x6] ss:$8 sm:$0xf] }
 0x704   :  { %1799 = vrot.lane.b32.xlu1 %v1778_v35, %s2461_s26  ;;  %v1890_v35 = vperm.slane %v3334_v34, 2 }
 0x705   :  { %1759 = vrot.lane.b32.xlu2 %v1735_v55, %s2462_s27  ;;  %v626_v55 = vadd.f32 %v625_v22, %v624_v23 }
 0x70c   :  { %1751 = vrot.lane.b32.xlu1 %v1731_v48, %s2462_s27  ;;  %v2014_v48 = vperm.slane %v3340_v24, 2 }
 0x70d   :  { %1753 = vrot.lane.b32.xlu2 %v1732_v0, %s2462_s27  ;;  %v2015_v0 = vperm.slane %v3340_v24, 3 }
 0x70f   :  { %v2076_v29 = vpop.permute.xlu2 %2075 }
 0x717   :  { %v2136_v28 = vpop.permute.xlu2 %2135 }
 0x718   :  { %v2142_v54 = vsel %vm485_vm1, %v2136_v28, %v2440_v43 }
 0x719   :  { %v2150_v18 = vmul.f32 %v2142_v54, %v2119_v7 }
 0x71b   :  { %2154 = vst [vmem:[#allocation3 + $0x68] sm:$0xf] %v2150_v18 }
 0x71f   :  { %v3288_v39 = vpop.permute.xlu2 %2029 }
 0x722   :  { %v2175_v56 = vld [vmem:[#allocation3 + $0x68] sm:$0xf] }
 0x723   :  { %2408 = vmatpush.msk.msrb.mxu3 %vm527_vm4, %v2175_v56 }
 0x726   :  { %v3300_v46 = vpop.permute.xlu1 %2133 }
 0x727   :  { %v3302_v38 = vpop.permute.xlu2 %1907  ;;  %v2078_v30 = vpop.permute.xlu0 %2077  ;;  %v2141_v17 = vsel %vm485_vm1, %v3300_v46, %v2136_v28 }
 0x728   :  { %v2083_v8 = vsel %vm425_vm2, %v2076_v29, %v2078_v30  ;;  %v2084_v57 = vsel %vm425_vm2, %v2078_v30, %v2435_v36  ;;  %v2149_v58 = vmul.f32 %v2141_v17, %v2118_v5  ;;  %v2058_v36 = vperm.slane %v3294_v19, 0 }
 0x729   :  { %v2091_v47 = vmul.f32 %v2083_v8, %v2060_v59  ;;  %v2092_v53 = vmul.f32 %v2084_v57, %v2061_v61  ;;  %v2116_v19 = vperm.slane %v3283_v37, 0 }
 0x72a   :  { %2153 = vst [vmem:[#allocation3 + $0xc0] sm:$0xf] %v2149_v58 }
 0x72b   :  { %v2099_v32 = vrot.slane %v2091_v47, 4  ;;  %v2100_v14 = vrot.slane %v2092_v53, 4 }
 0x72d   :  { %2107 = vst [vmem:[#allocation3 + $0xb0] sm:$0xf0] %v2099_v32  ;;  %v2117_v32 = vperm.slane %v3283_v37, 1 }
 0x72e   :  { %2108 = vst [vmem:[#allocation3 + $0x78] sm:$0xf0] %v2100_v14  ;;  %v1974_v45 = vpop.permute.xlu1 %1973  ;;  %v1955_v14 = vperm.slane %v3315_v52, 1 }
 0x72f   :  { %v2074_v10 = vpop.permute.xlu2 %2073  ;;  %v1980_v9 = vsel %vm317_vm0, %v1974_v45, %v2430_v51  ;;  %v3324_v20 = vpop.permute.xlu0 %1971 }
 0x730   :  { %v2082_v41 = vsel %vm425_vm2, %v2074_v10, %v2076_v29  ;;  %v1988_v60 = vmul.f32 %v1980_v9, %v1957_v4  ;;  %v1979_v21 = vsel %vm317_vm0, %v3324_v20, %v1974_v45 }
 0x731   :  { %v2090_v11 = vmul.f32 %v2082_v41, %v2059_v40  ;;  %v1987_v44 = vmul.f32 %v1979_v21, %v1956_v6  ;;  %v2174_v27 = vld [vmem:[#allocation3 + $0xc0] sm:$0xf] }
 0x732   :  { %v1996_v13 = vrot.slane %v1988_v60, 4  ;;  %2406 = vmatpush.msk.msrb.mxu2 %vm527_vm4, %v2174_v27  ;;  %v3380_v21 = vld [vmem:[%s3530_s9 + $0x2] ss:$8 sm:$0xf] }
 0x733   :  { %v2098_v25 = vrot.slane %v2090_v11, 4  ;;  %v1995_v26 = vrot.slane %v1987_v44, 4 }
 0x734   :  { %2004 = vst [vmem:[#allocation3] sm:$0xf0] %v1996_v13 }
 0x735   :  { %2003 = vst [vmem:[#allocation3 + $0x50] sm:$0xf0] %v1995_v26 }
 0x736   :  { %2106 = vst [vmem:[#allocation3 + $0xf0] sm:$0xf0] %v2098_v25  ;;  %v3345_v29 = vpop.permute.xlu1 %1905  ;;  %627 = vadd.xlane.f32.xlu1 %v626_v55 }
 0x737   :  { %v3347_v7 = vpop.permute.xlu2 %1801  ;;  %v2032_v43 = vpop.permute.xlu0 %2031  ;;  %v1913_v28 = vsel %vm249_vm5, %v3345_v29, %v3302_v38 }
 0x738   :  { %v2037_v54 = vsel %vm377_vm3, %v3288_v39, %v2032_v43  ;;  %v2038_v18 = vsel %vm377_vm3, %v2032_v43, %v3043_v12  ;;  %v1921_v56 = vmul.f32 %v1913_v28, %v1890_v35  ;;  %v3361_v12 = vld [vmem:[%s3530_s9 + $0x1] ss:$8 sm:$0xf]  ;;  %v1954_v28 = vperm.slane %v3315_v52, 0 }
 0x739   :  { %v2045_v5 = vmul.f32 %v2037_v54, %v2014_v48  ;;  %v2046_v59 = vmul.f32 %v2038_v18, %v2015_v0  ;;  %v1786_v4 = vperm.slane %v3361_v12, 2  ;;  %v1845_v54 = vperm.slane %v3380_v21, 3  ;;  %v3399_v52 = vld [vmem:[%s3530_s9] ss:$8 sm:$0xf] }
 0x73a   :  { %v1929_v61 = vrot.slane %v1921_v56, 4 }
 0x73b   :  { %2049 = vst [vmem:[#allocation3 + $0xb0] sm:$0xf] %v2045_v5  ;;  %v2167_v42 = vld [vmem:[#allocation3] sm:$0xff] }
 0x73c   :  { %2050 = vst [vmem:[#allocation3 + $0x78] sm:$0xf] %v2046_v59  ;;  %v2166_v53 = vld [vmem:[#allocation3 + $0x50] sm:$0xff] }
 0x73d   :  { %1937 = vst [vmem:[#allocation3 + $0x118] sm:$0xf0] %v1929_v61 }
 0x73e   :  { %v2072_v30 = vpop.permute.xlu1 %2071 }
 0x73f   :  { %v1862_v17 = vpop.permute.xlu2 %1861  ;;  %v2130_v8 = vpop.permute.xlu0 %2129  ;;  %v2081_v57 = vsel %vm425_vm2, %v2072_v30, %v2074_v10 }
 0x740   :  { %v2089_v58 = vmul.f32 %v2081_v57, %v2058_v36  ;;  %v2012_v57 = vperm.slane %v3340_v24, 0 }
 0x742   :  { %v2097_v33 = vrot.slane %v2089_v58, 4  ;;  %v2170_v50 = vld [vmem:[#allocation3 + $0xb0] sm:$0xff]  ;;  %v2013_v58 = vperm.slane %v3340_v24, 1 }
 0x743   :  { %2243 = vmatpush.msrb.mxu2 %v2170_v50  ;;  %v2171_v47 = vld [vmem:[#allocation3 + $0x78] sm:$0xff] }
 0x744   :  { %2105 = vst [vmem:[#allocation3 + $0x108] sm:$0xf0] %v2097_v33  ;;  %2263 = vmatpush.msrb.mxu3 %v2171_v47  ;;  %v1740_v33 = vperm.slane %v3399_v52, 2 }
 0x745   :  { %2244 = vmatpush.msrb.mxu2 %v2166_v53 }
 0x746   :  { %2264 = vmatpush.msrb.mxu3 %v2167_v42  ;;  %v2132_v40 = vpop.permute.xlu1 %2131 }
 0x747   :  { %v1970_v49 = vpop.permute.xlu2 %1969  ;;  %v3367_v51 = vpop.permute.xlu0 %1803  ;;  %v2139_v6 = vsel %vm485_vm1, %v2130_v8, %v2132_v40  ;;  %v2140_v45 = vsel %vm485_vm1, %v2132_v40, %v3300_v46  ;;  %v1844_v46 = vperm.slane %v3380_v21, 2 }
 0x748   :  { %v1978_v10 = vsel %vm317_vm0, %v1970_v49, %v3324_v20  ;;  %v1809_v37 = vsel %vm141_vm6, %v3347_v7, %v3367_v51  ;;  %v2147_v9 = vmul.f32 %v2139_v6, %v2116_v19  ;;  %v2148_v41 = vmul.f32 %v2140_v45, %v2117_v32 }
 0x749   :  { %v1986_v23 = vmul.f32 %v1978_v10, %v1955_v14  ;;  %v1817_v60 = vmul.f32 %v1809_v37, %v1786_v4  ;;  %v1891_v20 = vperm.slane %v3334_v34, 3  ;;  %v1787_v45 = vperm.slane %v3361_v12, 3 }
 0x74a   :  { %2151 = vst [vmem:[#allocation3 + $0x88] sm:$0xf] %v2147_v9  ;;  %v1739_v10 = vperm.slane %v3399_v52, 1  ;;  %v1843_v37 = vperm.slane %v3380_v21, 1 }
 0x74b   :  { %v1994_v11 = vrot.slane %v1986_v23, 4  ;;  %v1825_v22 = vrot.slane %v1817_v60, 4  ;;  %2152 = vst [vmem:[#allocation3 + $0x70] sm:$0xf] %v2148_v41 }
 0x74d   :  { %2002 = vst [vmem:[#allocation3 + $0xa8] sm:$0xf0] %v1994_v11 }
 0x74e   :  { %1833 = vst [vmem:[#allocation3 + $0xd8] sm:$0xf0] %v1825_v22  ;;  %v3384_v44 = vpop.permute.xlu1 %1859 }
 0x74f   :  { %v1756_v27 = vpop.permute.xlu2 %1755  ;;  %v1910_v13 = vpop.permute.xlu0 %1909  ;;  %v1867_v25 = vsel %vm201_vm7, %v3384_v44, %v1862_v17 }
 0x750   :  { %v1914_v26 = vsel %vm249_vm5, %v3302_v38, %v1910_v13  ;;  %v1875_v55 = vmul.f32 %v1867_v25, %v1844_v46 }
 0x751   :  { %v1922_v35 = vmul.f32 %v1914_v26, %v1891_v20  ;;  %v2172_v48 = vld [vmem:[#allocation3 + $0x88] sm:$0xf] }
 0x752   :  { %1879 = vst [vmem:[#allocation3 + $0x118] sm:$0xf] %v1875_v55  ;;  %2402 = vmatpush.msk.msrb.mxu0 %vm527_vm4, %v2172_v48  ;;  %v2173_v0 = vld [vmem:[#allocation3 + $0x70] sm:$0xf] }
 0x753   :  { %v1930_v43 = vrot.slane %v1922_v35, 4  ;;  %2404 = vmatpush.msk.msrb.mxu1 %vm527_vm4, %v2173_v0 }
 0x754   :  { %v2165_v0 = vld [vmem:[#allocation3 + $0xa8] sm:$0xff] }
 0x755   :  { %1938 = vst [vmem:[#allocation3 + $0xd0] sm:$0xf0] %v1930_v43 }
 0x756   :  { %v1968_v18 = vpop.permute.xlu1 %1967 }
 0x757   :  { %v1864_v56 = vpop.permute.xlu2 %1863  ;;  %v2026_v5 = vpop.permute.xlu0 %2025  ;;  %v1977_v38 = vsel %vm317_vm0, %v1968_v18, %v1970_v49 }
 0x758   :  { %v1868_v59 = vsel %vm201_vm7, %v1862_v17, %v1864_v56  ;;  %v1985_v61 = vmul.f32 %v1977_v38, %v1954_v28  ;;  %v1741_v17 = vperm.slane %v3399_v52, 3 }
 0x759   :  { %v1876_v36 = vmul.f32 %v1868_v59, %v1845_v54  ;;  %v2162_v30 = vld [vmem:[#allocation3 + $0x118] sm:$0xff] }
 0x75a   :  { %v1993_v8 = vrot.slane %v1985_v61, 4  ;;  %2245 = vmatpush.msrb.mxu2 %v2162_v30  ;;  %v1785_v61 = vperm.slane %v3361_v12, 1 }
 0x75b   :  { %1880 = vst [vmem:[#allocation3 + $0xd0] sm:$0xf] %v1876_v36 }
 0x75c   :  { %2001 = vst [vmem:[#allocation3 + $0x28] sm:$0xf0] %v1993_v8 }
 0x75e   :  { %v2028_v50 = vpop.permute.xlu1 %2027 }
 0x75f   :  { %v1760_v47 = vpop.permute.xlu2 %1759  ;;  %v1758_v53 = vpop.permute.xlu0 %1757  ;;  %v2035_v19 = vsel %vm377_vm3, %v2026_v5, %v2028_v50  ;;  %v2036_v32 = vsel %vm377_vm3, %v2028_v50, %v3288_v39  ;;  %v1842_v39 = vperm.slane %v3380_v21, 0 }
 0x760   :  { %v1763_v14 = vsel %vm93_vm8, %v1756_v27, %v1758_v53  ;;  %v2043_v42 = vmul.f32 %v2035_v19, %v2012_v57  ;;  %v2044_v4 = vmul.f32 %v2036_v32, %v2013_v58  ;;  %v1764_v40 = vsel %vm93_vm8, %v1758_v53, %v1760_v47 }
 0x761   :  { %v1771_v49 = vmul.f32 %v1763_v14, %v1740_v33  ;;  %v1772_v24 = vmul.f32 %v1764_v40, %v1741_v17 }
 0x762   :  { %v2163_v6 = vld [vmem:[#allocation3 + $0xd0] sm:$0xff]  ;;  %2047 = vst [vmem:[#allocation3 + $0x108] sm:$0xf] %v2043_v42 }
 0x763   :  { %2265 = vmatpush.msrb.mxu3 %v2163_v6  ;;  %1775 = vst [vmem:[#allocation3 + $0xd8] sm:$0xf] %v1771_v49  ;;  %v2164_v48 = vld [vmem:[#allocation3 + $0x28] sm:$0xff] }
 0x764   :  { %2048 = vst [vmem:[#allocation3 + $0xf0] sm:$0xf] %v2044_v4 }
 0x765   :  { %1776 = vst [vmem:[#allocation3 + $0xe0] sm:$0xf] %v1772_v24 }
 0x766   :  { %v1806_v9 = vpop.permute.xlu1 %1805 }
 0x767   :  { %v1754_v41 = vpop.permute.xlu2 %1753  ;;  %v1810_v23 = vsel %vm141_vm6, %v3367_v51, %v1806_v9  ;;  %v1858_v60 = vpop.permute.xlu0 %1857  ;;  %v2155_v51 = vld [vmem:[%s3537_s5] sm:$0xf] }
 0x768   :  { %v1762_v11 = vsel %vm93_vm8, %v1754_v41, %v1756_v27  ;;  %v1818_v22 = vmul.f32 %v1810_v23, %v1787_v45  ;;  %v1865_v46 = vsel %vm201_vm7, %v3053_v31, %v1858_v60  ;;  %v1866_v20 = vsel %vm201_vm7, %v1858_v60, %v3384_v44 }
 0x769   :  { %v1770_v13 = vmul.f32 %v1762_v11, %v1739_v10  ;;  %v1873_v25 = vmul.f32 %v1865_v46, %v1842_v39  ;;  %v1874_v26 = vmul.f32 %v1866_v20, %v1843_v37  ;;  %v2168_v55 = vld [vmem:[#allocation3 + $0x108] sm:$0xff]  ;;  %v1888_v31 = vperm.slane %v3334_v34, 0 }
 0x76a   :  { %v1826_v21 = vrot.slane %v1818_v22, 4  ;;  %2203 = vmatpush.msrb.mxu0 %v2168_v55  ;;  %v2158_v35 = vld [vmem:[#allocation3 + $0xd8] sm:$0xff]  ;;  %v1889_v44 = vperm.slane %v3334_v34, 1  ;;  %v1784_v34 = vperm.slane %v3361_v12, 0  ;;  %v1738_v12 = vperm.slane %v3399_v52, 0 }
 0x76b   :  { %1774 = vst [vmem:[#allocation3 + $0x18] sm:$0xf] %v1770_v13  ;;  %v2169_v27 = vld [vmem:[#allocation3 + $0xf0] sm:$0xff]  ;;  %2246 = vmatpush.msrb.mxu2 %v2158_v35 }
 0x76c   :  { %1877 = vst [vmem:[#allocation3 + $0x60] sm:$0xf] %v1873_v25  ;;  %2223 = vmatpush.msrb.mxu1 %v2169_v27  ;;  %2204 = vmatpush.msrb.mxu0 %v2164_v48 }
 0x76d   :  { %1834 = vst [vmem:[#allocation3 + $0xe0] sm:$0xf0] %v1826_v21  ;;  %2407 = vmatmul.msk.f32.vlgmr.msrb.gmra.mxu2 %vm523_vm9, %v2155_v51 }
 0x76e   :  { %1878 = vst [vmem:[#allocation3 + $0xe8] sm:$0xf] %v1874_v26  ;;  %2224 = vmatpush.msrb.mxu1 %v2165_v0  ;;  %v1904_v43 = vpop.permute.xlu1 %1903 }
 0x76f   :  { %v1911_v28 = vsel %vm249_vm5, %v3090_v3, %v1904_v43  ;;  %v1912_v54 = vsel %vm249_vm5, %v1904_v43, %v3345_v29 }
 0x770   :  { %v1919_v18 = vmul.f32 %v1911_v28, %v1888_v31  ;;  %v1920_v56 = vmul.f32 %v1912_v54, %v1889_v44 }
 0x772   :  { %v1927_v5 = vrot.slane %v1919_v18, 4  ;;  %v1928_v38 = vrot.slane %v1920_v56, 4 }
 0x774   :  { %v2159_v59 = vld [vmem:[#allocation3 + $0xe0] sm:$0xff]  ;;  %1935 = vst [vmem:[#allocation3 + $0x60] sm:$0xf0] %v1927_v5 }
 0x775   :  { %2266 = vmatpush.msrb.mxu3 %v2159_v59  ;;  %1936 = vst [vmem:[#allocation3 + $0xe8] sm:$0xf0] %v1928_v38 }
 0x776   :  { %2409 = vmatmul.msk.f32.vlgmr.msrb.gmra.mxu3 %vm523_vm9, %v2155_v51  ;;  %v1800_v36 = vpop.permute.xlu1 %1799 }
 0x777   :  { %v1807_v3 = vsel %vm141_vm6, %v3098_v15, %v1800_v36  ;;  %v1808_v29 = vsel %vm141_vm6, %v1800_v36, %v3347_v7 }
 0x778   :  { %v1815_v30 = vmul.f32 %v1807_v3, %v1784_v34  ;;  %v1816_v8 = vmul.f32 %v1808_v29, %v1785_v61 }
 0x77a   :  { %v1823_v57 = vrot.slane %v1815_v30, 4  ;;  %v1824_v58 = vrot.slane %v1816_v8, 4 }
 0x77b   :  { %v2160_v33 = vld [vmem:[#allocation3 + $0x60] sm:$0xff] }
 0x77c   :  { %1831 = vst [vmem:[#allocation3 + $0x100] sm:$0xf0] %v1823_v57  ;;  %2205 = vmatpush.msrb.mxu0 %v2160_v33  ;;  %v2161_v17 = vld [vmem:[#allocation3 + $0xe8] sm:$0xff] }
 0x77d   :  { %1832 = vst [vmem:[#allocation3 + $0x18] sm:$0xf0] %v1824_v58  ;;  %2225 = vmatpush.msrb.mxu1 %v2161_v17  ;;  %v648_v58 = vld [vmem:[%s3538_s8] sm:$0xf] }
 0x77e   :  { %v1752_v50 = vpop.permute.xlu1 %1751 }
 0x77f   :  { %v1761_v47 = vsel %vm93_vm8, %v1752_v50, %v1754_v41 }
 0x780   :  { %v1769_v53 = vmul.f32 %v1761_v47, %v1738_v12  ;;  %v2299_v12 = vld [vmem:[%s3539_s6] sm:$0xf] }
 0x782   :  { %1773 = vst [vmem:[#allocation3 + $0x100] sm:$0xf] %v1769_v53 }
 0x784   :  { %v2157_v15 = vld [vmem:[#allocation3 + $0x18] sm:$0xff] }
 0x785   :  { %2226 = vmatpush.msrb.mxu1 %v2157_v15 }
 0x786   :  { %2405 = vmatmul.msk.f32.vlgmr.msrb.gmra.mxu1 %vm523_vm9, %v2155_v51 }
 0x789   :  { %v2156_v7 = vld [vmem:[#allocation3 + $0x100] sm:$0xff] }
 0x78a   :  { %2206 = vmatpush.msrb.mxu0 %v2156_v7 }
 0x78b   :  { %2403 = vmatmul.msk.f32.vlgmr.msrb.gmra.mxu0 %vm523_vm9, %v2155_v51 }
 0x7a9   :  { %v628_v19 = vpop.xlane.xlu1 %627 }
 0x7aa   :  { %v629_v32 = vmul.f32 0.001953125, %v628_v19 }
 0x7ac   :  { %v3443_v14 = vsub.f32 %v2763_v63, %v629_v32  ;;  %v3446_v52 = vsub.f32 %v2765_v1, %v629_v32  ;;  %v3454_v10 = vsub.f32 %v2761_v62, %v629_v32  ;;  %v3462_v60 = vsub.f32 %v2767_v2, %v629_v32 }
 0x7ae   :  { %v634_v40 = vmul.f32 %v3443_v14, %v3443_v14  ;;  %v635_v49 = vmul.f32 %v3446_v52, %v3446_v52  ;;  %v636_v11 = vmul.f32 %v3454_v10, %v3454_v10  ;;  %v637_v46 = vmul.f32 %v3462_v60, %v3462_v60 }
 0x7b0   :  { %v638_v9 = vsel %vm527_vm4, %v634_v40, 0.0  ;;  %v639_v41 = vsel %vm527_vm4, %v635_v49, 0.0  ;;  %v641_v20 = vsel %vm527_vm4, %v636_v11, 0.0  ;;  %v643_v25 = vsel %vm527_vm4, %v637_v46, 0.0 }
 0x7b1   :  { %v640_v22 = vadd.f32 %v639_v41, %v638_v9 }
 0x7b3   :  { %v642_v13 = vadd.f32 %v641_v20, %v640_v22 }
 0x7b5   :  { %v644_v26 = vadd.f32 %v643_v25, %v642_v13 }
 0x7f0   :  { %v2248_v4 = vpop.f32.mrf.mxu2 }
 0x7f1   :  { %v2274_v1 = vsel %vm527_vm4, %v2248_v4, 0.0 }
 0x7f9   :  { %v2268_v45 = vpop.f32.mrf.mxu3 }
 0x7fa   :  { %v2276_v37 = vsel %vm527_vm4, %v2268_v45, 0.0 }
 0x803   :  { %v2228_v42 = vpop.f32.mrf.mxu1 }
 0x804   :  { %v2272_v24 = vsel %vm527_vm4, %v2228_v42, 0.0 }
 0x808   :  { %v2208_v6 = vpop.f32.mrf.mxu0 }
 0x809   :  { %v2271_v63 = vsel %vm527_vm4, %v2208_v6, 0.0 }
 0x80a   :  { %v2273_v39 = vadd.f32 %v2272_v24, %v2271_v63 }
 0x80c   :  { %v2275_v23 = vadd.f32 %v2274_v1, %v2273_v39 }
 0x80e   :  { %v2277_v62 = vadd.f32 %v2276_v37, %v2275_v23 }
 0x810   :  { %2278 = vadd.xlane.f32.xlu0 %v2277_v62 }
 0x818   :  { %645 = vadd.xlane.f32.xlu0 %v644_v26 }
 0x82c   :  { %2323 = vperm.xlu0 %2443, %v2299_v12  }
 0x883   :  { %v2279_v55 = vpop.xlane.xlu0 %2278 }
 0x884   :  { %v2280_v21 = vmul.f32 0.001953125, %v2279_v55 }
 0x886   :  { %v3470_v2 = vsub.f32 %v2208_v6, %v2280_v21  ;;  %v3472_v35 = vsub.f32 %v2228_v42, %v2280_v21  ;;  %v3474_v51 = vsub.f32 %v2248_v4, %v2280_v21  ;;  %v3476_v27 = vsub.f32 %v2268_v45, %v2280_v21 }
 0x888   :  { %v2285_v48 = vmul.f32 %v3470_v2, %v3470_v2  ;;  %v2286_v31 = vmul.f32 %v3472_v35, %v3472_v35  ;;  %v2287_v44 = vmul.f32 %v3474_v51, %v3474_v51  ;;  %v2288_v0 = vmul.f32 %v3476_v27, %v3476_v27 }
 0x88a   :  { %v2289_v43 = vsel %vm527_vm4, %v2285_v48, 0.0  ;;  %v2290_v28 = vsel %vm527_vm4, %v2286_v31, 0.0  ;;  %v2292_v5 = vsel %vm527_vm4, %v2287_v44, 0.0  ;;  %v2294_v34 = vsel %vm527_vm4, %v2288_v0, 0.0 }
 0x88b   :  { %v646_v54 = vpop.xlane.xlu0 %645  ;;  %v2291_v18 = vadd.f32 %v2290_v28, %v2289_v43 }
 0x88c   :  { %v647_v56 = vmul.f32 0.001953125, %v646_v54 }
 0x88d   :  { %v2293_v38 = vadd.f32 %v2292_v5, %v2291_v18 }
 0x88e   :  { %v649_v59 = vadd.f32 1e-05, %v647_v56 }
 0x88f   :  { %v2295_v61 = vadd.f32 %v2294_v34, %v2293_v38 }
 0x890   :  { %2449 = vrsqrt.f32 %v649_v59  ;;  %vm656_vm1 = vweird.f32 %v649_v59 }
 0x891   :  { %2296 = vadd.xlane.f32.xlu2 %v2295_v61 }
 0x896   :  { %v2450_v36 = vpop.eup %2449 }
 0x897   :  { %v651_v3 = vmul.f32 %v2450_v36, %v649_v59  ;;  %vm657_vm0 = vweird.f32 %v2450_v36 }
 0x898   :  { %vm658_vm2 = vmor %vm656_vm1, %vm657_vm0 }
 0x899   :  { %v652_v29 = vmul.f32 %v2450_v36, %v651_v3 }
 0x89b   :  { %v653_v30 = vmul.f32 0.5, %v652_v29 }
 0x89d   :  { %v654_v8 = vsub.f32 1.5, %v653_v30 }
 0x89f   :  { %v655_v57 = vmul.f32 %v2450_v36, %v654_v8 }
 0x8a1   :  { %v659_v33 = vsel %vm658_vm2, %v2450_v36, %v655_v57 }
 0x8a2   :  { %v660_v17 = vmul.f32 %v659_v33, %v648_v58 }
 0x8a4   :  { %663 = vperm.xlu1 %2442, %v660_v17  }
 0x8ac   :  { %2444 = vset.pattern.permute.xlu1 %v2463_v16 }
 0x8ad   :  { %672 = vperm.xlu1 %2444, %v648_v58  }
 0x904   :  { %v2297_v50 = vpop.xlane.xlu2 %2296 }
 0x905   :  { %v2298_v47 = vmul.f32 0.001953125, %v2297_v50 }
 0x907   :  { %v2300_v53 = vadd.f32 1e-05, %v2298_v47 }
 0x909   :  { %2451 = vrsqrt.f32 %v2300_v53  ;;  %vm2307_vm4 = vweird.f32 %v2300_v53 }
 0x90f   :  { %v2452_v15 = vpop.eup %2451 }
 0x910   :  { %v2302_v7 = vmul.f32 %v2452_v15, %v2300_v53  ;;  %vm2308_vm3 = vweird.f32 %v2452_v15 }
 0x911   :  { %vm2309_vm5 = vmor %vm2307_vm4, %vm2308_vm3 }
 0x912   :  { %v2303_v19 = vmul.f32 %v2452_v15, %v2302_v7 }
 0x914   :  { %v2304_v32 = vmul.f32 0.5, %v2303_v19 }
 0x916   :  { %v2305_v42 = vsub.f32 1.5, %v2304_v32  ;;  %v664_v4 = vpop.permute.xlu1 %663 }
 0x917   :  { %v666_v24 = vmul.f32 %v664_v4, %v3443_v14  ;;  %v667_v6 = vmul.f32 %v664_v4, %v3446_v52  ;;  %v668_v45 = vmul.f32 %v664_v4, %v3454_v10  ;;  %v669_v63 = vmul.f32 %v664_v4, %v3462_v60  ;;  %v2324_v52 = vpop.permute.xlu0 %2323 }
 0x918   :  { %v2306_v40 = vmul.f32 %v2452_v15, %v2305_v42 }
 0x91a   :  { %v2310_v16 = vsel %vm2309_vm5, %v2452_v15, %v2306_v40 }
 0x91b   :  { %v2311_v49 = vmul.f32 %v2310_v16, %v2299_v12 }
 0x91d   :  { %2314 = vperm.xlu2 %2441, %v2311_v49  }
 0x91f   :  { %v673_v1 = vpop.permute.xlu1 %672 }
 0x920   :  { %v675_v39 = vadd.f32 %v673_v1, %v666_v24  ;;  %v676_v37 = vadd.f32 %v673_v1, %v667_v6  ;;  %v677_v9 = vadd.f32 %v673_v1, %v668_v45  ;;  %v678_v41 = vadd.f32 %v673_v1, %v669_v63 }
 0x922   :  { %v679_v23 = vmax.f32 %v675_v39, 0.0  ;;  %v680_v11 = vmax.f32 %v676_v37, 0.0  ;;  %v681_v62 = vmax.f32 %v677_v9, 0.0  ;;  %v682_v22 = vmax.f32 %v678_v41, 0.0 }
 0x924   :  { %683 = vst [vmem:[%s3540_s11] sm:$0xf] %v679_v23 }
 0x925   :  { %684 = vst [vmem:[%s3540_s11 + $0x8] sm:$0xf] %v680_v11 }
 0x926   :  { %685 = vst [vmem:[%s3540_s11 + $0x10] sm:$0xf] %v681_v62 }
 0x927   :  { %686 = vst [vmem:[%s3540_s11 + $0x18] sm:$0xf] %v682_v22 }
 0x977   :  { %v2315_v14 = vpop.permute.xlu2 %2314 }
 0x978   :  { %v2317_v10 = vmul.f32 %v2315_v14, %v3470_v2  ;;  %v2318_v60 = vmul.f32 %v2315_v14, %v3472_v35  ;;  %v2319_v46 = vmul.f32 %v2315_v14, %v3474_v51  ;;  %v2320_v20 = vmul.f32 %v2315_v14, %v3476_v27 }
 0x97a   :  { %v2326_v13 = vadd.f32 %v2324_v52, %v2317_v10  ;;  %v2327_v25 = vadd.f32 %v2324_v52, %v2318_v60  ;;  %v2328_v26 = vadd.f32 %v2324_v52, %v2319_v46  ;;  %v2329_v55 = vadd.f32 %v2324_v52, %v2320_v20 }
 0x97c   :  { %v2330_v21 = vmax.f32 %v2326_v13, 0.0  ;;  %v2331_v48 = vmax.f32 %v2327_v25, 0.0  ;;  %v2332_v31 = vmax.f32 %v2328_v26, 0.0  ;;  %v2333_v44 = vmax.f32 %v2329_v55, 0.0 }
 0x97e   :  { %v2338_v0 = vrot.slane %v2330_v21, 4  ;;  %v2339_v43 = vrot.slane %v2331_v48, 4  ;;  %v2340_v28 = vrot.slane %v2332_v31, 4  ;;  %v2341_v54 = vrot.slane %v2333_v44, 4 }
 0x980   :  { %2346 = vst [vmem:[%s3540_s11] sm:$0xf0] %v2338_v0 }
 0x981   :  { %2347 = vst [vmem:[%s3540_s11 + $0x8] sm:$0xf0] %v2339_v43 }
 0x982   :  { %2348 = vst [vmem:[%s3540_s11 + $0x10] sm:$0xf0] %v2340_v28 }
 0x983   :  { %2349 = vst [vmem:[%s3540_s11 + $0x18] sm:$0xf0] %v2341_v54 }

</bundles_post_ra>
